<compile_context>
chip_gen: v7x
topology: tpu7x:2x2x1
jax: 0.10.0
libtpu: 0.0.40
codegen_flags: <defaults>
</compile_context>

<pallas_src>
import functools
import math

import jax
import jax.numpy as jnp
from jax.experimental import pallas as pl
from jax.experimental.pallas import tpu as pltpu

NUM_AUDIO_TOKENS = 1024
NUM_TEXT_TOKENS = 128
NEG_INF = -1e30            # finite "minus infinity" for additive masks (f32)
MXU_DTYPE = jnp.bfloat16   # MXU input dtype (f32 accumulation)
VMEM_LIMIT = 48 * 1024 * 1024  # safe on v5e/v6e (128 MiB phys) and v7x (64 MiB)


def _tile(dim, desired, align):
    """Largest tile <= desired that is a multiple of `align` and divides `dim`;
    falls back to the full dim (legal: block == full array dim)."""
    if dim <= desired:
        return dim
    t = (desired // align) * align
    while t >= align:
        if dim % t == 0:
            return t
        t -= align
    return dim


# ----------------------------- linear (tiled matmul) -----------------------------

def _linear_kernel(x_ref, w_ref, b_ref, o_ref, acc_ref, *, activation):
    @pl.when(pl.program_id(2) == 0)
    def _():
        acc_ref[...] = jnp.zeros_like(acc_ref)

    acc_ref[...] += jnp.dot(x_ref[...], w_ref[...],
                            preferred_element_type=jnp.float32)

    @pl.when(pl.program_id(2) == pl.num_programs(2) - 1)
    def _():
        y = acc_ref[...] + b_ref[...]
        if activation == "relu":
            y = jnp.maximum(y, 0.0)
        o_ref[...] = y.astype(o_ref.dtype)


def linear(x, w, b, activation="none", out_dtype=jnp.float32):
    """x: (..., K); w: (K, N) bf16 (pre-transposed); b: (1, N) f32 -> (..., N)."""
    lead = x.shape[:-1]
    K = x.shape[-1]
    N = w.shape[1]
    x2 = x.reshape(-1, K).astype(MXU_DTYPE)
    M = x2.shape[0]
    tm = _tile(M, 256, 8)
    tn = _tile(N, 512, 128)
    tk = _tile(K, 512, 128)
    grid = (M // tm, N // tn, K // tk)
    out = pl.pallas_call(
        functools.partial(_linear_kernel, activation=activation),
        grid=grid,
        in_specs=[
            pl.BlockSpec((tm, tk), lambda i, j, k: (i, k)),
            pl.BlockSpec((tk, tn), lambda i, j, k: (k, j)),
            pl.BlockSpec((1, tn), lambda i, j, k: (0, j)),
        ],
        out_specs=pl.BlockSpec((tm, tn), lambda i, j, k: (i, j)),
        out_shape=jax.ShapeDtypeStruct((M, N), out_dtype),
        scratch_shapes=[pltpu.VMEM((tm, tn), jnp.float32)],
        compiler_params=pltpu.CompilerParams(
            dimension_semantics=("parallel", "parallel", "arbitrary"),
            vmem_limit_bytes=VMEM_LIMIT),
    )(x2, w, b)
    return out.reshape(*lead, N)


# ------------------- linear fused with residual add + LayerNorm -------------------

def _linear_addln_kernel(x_ref, w_ref, b_ref, r_ref, g_ref, beta_ref,
                         o_ref, acc_ref):
    k = pl.program_id(1)

    @pl.when(k == 0)
    def _():
        acc_ref[...] = jnp.zeros_like(acc_ref)

    acc_ref[...] += jnp.dot(x_ref[...], w_ref[...],
                            preferred_element_type=jnp.float32)

    @pl.when(k == pl.num_programs(1) - 1)
    def _():
        y = acc_ref[...] + b_ref[...] + r_ref[...]
        mu = jnp.mean(y, axis=-1, keepdims=True)
        yc = y - mu
        var = jnp.mean(yc * yc, axis=-1, keepdims=True)
        o_ref[...] = (yc * jax.lax.rsqrt(var + 1e-5) * g_ref[...]
                      + beta_ref[...]).astype(o_ref.dtype)


def linear_add_ln(x, w, b, resid, g, beta):
    """LayerNorm(x @ w + b + resid).  Out dim N kept whole in the block so the
    LayerNorm row reduction happens in VMEM; K is the reduction grid axis."""
    lead = x.shape[:-1]
    K = x.shape[-1]
    N = w.shape[1]
    x2 = x.reshape(-1, K).astype(MXU_DTYPE)
    r2 = resid.reshape(-1, N).astype(jnp.float32)
    M = x2.shape[0]
    tm = _tile(M, 256, 8)
    tk = _tile(K, 512, 128)
    grid = (M // tm, K // tk)
    out = pl.pallas_call(
        _linear_addln_kernel,
        grid=grid,
        in_specs=[
            pl.BlockSpec((tm, tk), lambda i, k: (i, k)),
            pl.BlockSpec((tk, N), lambda i, k: (k, 0)),
            pl.BlockSpec((1, N), lambda i, k: (0, 0)),
            pl.BlockSpec((tm, N), lambda i, k: (i, 0)),
            pl.BlockSpec((1, N), lambda i, k: (0, 0)),
            pl.BlockSpec((1, N), lambda i, k: (0, 0)),
        ],
        out_specs=pl.BlockSpec((tm, N), lambda i, k: (i, 0)),
        out_shape=jax.ShapeDtypeStruct((M, N), jnp.float32),
        scratch_shapes=[pltpu.VMEM((tm, N), jnp.float32)],
        compiler_params=pltpu.CompilerParams(
            dimension_semantics=("parallel", "arbitrary"),
            vmem_limit_bytes=VMEM_LIMIT),
    )(x2, w, b, r2, g, beta)
    return out.reshape(*lead, N)


# ---------------- fused feed-forward (linear1+ReLU+linear2) + add + LN ----------------

def _ffn_addln_kernel(x_ref, w1_ref, b1_ref, w2_ref, b2_ref, g_ref, beta_ref,
                      o_ref, acc_ref):
    k = pl.program_id(1)

    @pl.when(k == 0)
    def _():
        acc_ref[...] = jnp.zeros_like(acc_ref)

    xb = x_ref[...].astype(MXU_DTYPE)
    h = jnp.dot(xb, w1_ref[...], preferred_element_type=jnp.float32) + b1_ref[...]
    h = jnp.maximum(h, 0.0).astype(MXU_DTYPE)
    acc_ref[...] += jnp.dot(h, w2_ref[...], preferred_element_type=jnp.float32)

    @pl.when(k == pl.num_programs(1) - 1)
    def _():
        y = acc_ref[...] + b2_ref[...] + x_ref[...]      # residual add (f32)
        mu = jnp.mean(y, axis=-1, keepdims=True)
        yc = y - mu
        var = jnp.mean(yc * yc, axis=-1, keepdims=True)
        o_ref[...] = (yc * jax.lax.rsqrt(var + 1e-5) * g_ref[...]
                      + beta_ref[...]).astype(o_ref.dtype)


def ffn_add_ln(x, w1, b1, w2, b2, g, beta):
    """LayerNorm(x + relu(x@w1+b1)@w2 + b2).  Hidden dim (4*D) is the reduction
    grid axis, so the hidden activation stays in VMEM and never hits HBM."""
    lead = x.shape[:-1]
    D = x.shape[-1]
    H = w1.shape[1]
    x2 = x.reshape(-1, D).astype(jnp.float32)
    M = x2.shape[0]
    tm = _tile(M, 256, 8)
    th = _tile(H, 512, 128)
    grid = (M // tm, H // th)
    out = pl.pallas_call(
        _ffn_addln_kernel,
        grid=grid,
        in_specs=[
            pl.BlockSpec((tm, D), lambda i, k: (i, 0)),
            pl.BlockSpec((D, th), lambda i, k: (0, k)),
            pl.BlockSpec((1, th), lambda i, k: (0, k)),
            pl.BlockSpec((th, D), lambda i, k: (k, 0)),
            pl.BlockSpec((1, D), lambda i, k: (0, 0)),
            pl.BlockSpec((1, D), lambda i, k: (0, 0)),
            pl.BlockSpec((1, D), lambda i, k: (0, 0)),
        ],
        out_specs=pl.BlockSpec((tm, D), lambda i, k: (i, 0)),
        out_shape=jax.ShapeDtypeStruct((M, D), jnp.float32),
        scratch_shapes=[pltpu.VMEM((tm, D), jnp.float32)],
        compiler_params=pltpu.CompilerParams(
            dimension_semantics=("parallel", "arbitrary"),
            vmem_limit_bytes=VMEM_LIMIT),
    )(x2, w1, b1, w2, b2, g, beta)
    return out.reshape(*lead, D)


# ----------------------------- flash attention -----------------------------

def _flash_kernel(q_ref, k_ref, v_ref, kbias_ref, o_ref,
                  m_sc, l_sc, acc_sc, *, causal, block_q, block_k):
    qi = pl.program_id(1)
    ki = pl.program_id(2)

    @pl.when(ki == 0)
    def _():
        m_sc[...] = jnp.full_like(m_sc, -jnp.inf)
        l_sc[...] = jnp.zeros_like(l_sc)
        acc_sc[...] = jnp.zeros_like(acc_sc)

    q = q_ref[0]                                     # (H, tq, hd) bf16, pre-scaled
    k = k_ref[0]                                     # (H, tk, hd) bf16
    s = jnp.einsum("hqd,hkd->hqk", q, k,
                   preferred_element_type=jnp.float32)   # (H, tq, tk) f32
    s = s + kbias_ref[0]                             # per-key padding bias (1, tk)
    if causal:
        q_pos = jax.lax.broadcasted_iota(jnp.int32, s.shape, 1) + qi * block_q
        k_pos = jax.lax.broadcasted_iota(jnp.int32, s.shape, 2) + ki * block_k
        s = jnp.where(k_pos > q_pos, NEG_INF, s)

    m_prev = m_sc[...]
    m_new = jnp.maximum(m_prev, jnp.max(s, axis=-1, keepdims=True))
    alpha = jnp.exp(m_prev - m_new)
    p = jnp.exp(s - m_new)
    l_sc[...] = alpha * l_sc[...] + jnp.sum(p, axis=-1, keepdims=True)
    acc_sc[...] = alpha * acc_sc[...] + jnp.einsum(
        "hqk,hkd->hqd", p.astype(v_ref.dtype), v_ref[0],
        preferred_element_type=jnp.float32)
    m_sc[...] = m_new

    @pl.when(ki == pl.num_programs(2) - 1)
    def _():
        o_ref[0] = (acc_sc[...] *
                    pl.reciprocal(l_sc[...], approx=True)).astype(o_ref.dtype)


def flash_sdpa(q, k, v, key_bias, scale, causal):
    """q: (N, H, Tq, hd); k/v: (N, H, Tk, hd); key_bias: (N, 1, Tk) f32 additive.
    All heads of a batch are processed in one block (batched einsum), so the
    padding bias is shared without any per-head index arithmetic."""
    N, H, Tq, hd = q.shape
    Tk = k.shape[2]
    tq = _tile(Tq, 256, 8)
    tk = _tile(Tk, 256, 128)
    q = (q * scale).astype(MXU_DTYPE)        # fold 1/sqrt(hd) into q once
    k = k.astype(MXU_DTYPE)
    v = v.astype(MXU_DTYPE)
    grid = (N, Tq // tq, Tk // tk)
    return pl.pallas_call(
        functools.partial(_flash_kernel, causal=causal, block_q=tq, block_k=tk),
        grid=grid,
        in_specs=[
            pl.BlockSpec((1, H, tq, hd), lambda b, i, j: (b, 0, i, 0)),
            pl.BlockSpec((1, H, tk, hd), lambda b, i, j: (b, 0, j, 0)),
            pl.BlockSpec((1, H, tk, hd), lambda b, i, j: (b, 0, j, 0)),
            pl.BlockSpec((1, 1, tk), lambda b, i, j: (b, 0, j)),
        ],
        out_specs=pl.BlockSpec((1, H, tq, hd), lambda b, i, j: (b, 0, i, 0)),
        out_shape=jax.ShapeDtypeStruct((N, H, Tq, hd), MXU_DTYPE),
        scratch_shapes=[pltpu.VMEM((H, tq, 1), jnp.float32),
                        pltpu.VMEM((H, tq, 1), jnp.float32),
                        pltpu.VMEM((H, tq, hd), jnp.float32)],
        compiler_params=pltpu.CompilerParams(
            dimension_semantics=("parallel", "parallel", "arbitrary"),
            vmem_limit_bytes=VMEM_LIMIT),
    )(q, k, v, key_bias)


# ----------------------------- fused predict + cross-entropy -----------------------------

def _predict_ce_kernel(h_ref, w_ref, b_ref, tgt_ref, valid_ref, o_ref):
    i = pl.program_id(0)

    @pl.when(i == 0)
    def _():
        o_ref[...] = jnp.zeros_like(o_ref)

    logits = jnp.dot(h_ref[...], w_ref[...],
                     preferred_element_type=jnp.float32) + b_ref[...]
    m = jnp.max(logits, axis=-1, keepdims=True)
    lse = jnp.log(jnp.sum(jnp.exp(logits - m), axis=-1, keepdims=True)) + m
    col = jax.lax.broadcasted_iota(jnp.int32, logits.shape, 1)
    hit = (col == tgt_ref[...]).astype(jnp.float32)
    tgt_logit = jnp.sum(logits * hit, axis=-1, keepdims=True)
    o_ref[...] += jnp.sum((lse - tgt_logit) * valid_ref[...])


def predict_ce_sum(h, w, b, targets, valid):
    """h: (..., D); w: (D, V) bf16; b: (1, V) f32; targets/valid: (M,) -> scalar sum.
    Logits are computed tile-by-tile in VMEM (never written to HBM) and the loss
    is reduced to a single scalar inside the kernel (accumulator output block)."""
    D = h.shape[-1]
    h2 = h.reshape(-1, D).astype(MXU_DTYPE)
    M = h2.shape[0]
    V = w.shape[1]
    tm = _tile(M, 256, 8)
    out = pl.pallas_call(
        _predict_ce_kernel,
        grid=(M // tm,),
        in_specs=[pl.BlockSpec((tm, D), lambda i: (i, 0)),
                  pl.BlockSpec((D, V), lambda i: (0, 0)),
                  pl.BlockSpec((1, V), lambda i: (0, 0)),
                  pl.BlockSpec((tm, 1), lambda i: (i, 0)),
                  pl.BlockSpec((tm, 1), lambda i: (i, 0))],
        out_specs=pl.BlockSpec((1, 1), lambda i: (0, 0)),
        out_shape=jax.ShapeDtypeStruct((1, 1), jnp.float32),
        compiler_params=pltpu.CompilerParams(
            dimension_semantics=("arbitrary",), vmem_limit_bytes=VMEM_LIMIT),
    )(h2, w, b,
      targets.reshape(M, 1).astype(jnp.int32),
      valid.reshape(M, 1).astype(jnp.float32))
    return out[0, 0]


# ----------------------------- model pieces -----------------------------

def mha_core(query, key, p_in, nhead, causal, key_bias):
    """QKV projection + flash attention; returns concatenated heads (N, Tq, D)
    WITHOUT the output projection (that is fused with add+LN by the caller)."""
    w_in, b_in = p_in
    N, Tq, D = query.shape
    Tk = key.shape[1]
    hd = D // nhead

    if query is key:                            # self-attn: fused QKV projection
        qkv = linear(query, w_in, b_in, out_dtype=MXU_DTYPE)
        q, k, v = jnp.split(qkv, 3, axis=-1)
    else:                                       # cross-attn: Q separate, fused KV
        q = linear(query, w_in[:, :D], b_in[:, :D], out_dtype=MXU_DTYPE)
        kv = linear(key, w_in[:, D:], b_in[:, D:], out_dtype=MXU_DTYPE)
        k, v = jnp.split(kv, 2, axis=-1)

    def split_heads(t, T):
        return t.reshape(N, T, nhead, hd).transpose(0, 2, 1, 3)

    oh = flash_sdpa(split_heads(q, Tq), split_heads(k, Tk), split_heads(v, Tk),
                    key_bias, 1.0 / math.sqrt(hd), causal)
    return oh.transpose(0, 2, 1, 3).reshape(N, Tq, D)


def decoder_layer(x, memory, p, nhead, causal, tgt_bias, mem_bias):
    """Post-norm (norm_first=False) TransformerDecoderLayer, dropout skipped (eval).
    Each sublayer's output projection / FFN is fused with residual add + LN."""
    w_in_sa, b_in_sa, w_out_sa, b_out_sa = p["self_attn"]
    sa = mha_core(x, x, (w_in_sa, b_in_sa), nhead, causal, tgt_bias)
    x = linear_add_ln(sa, w_out_sa, b_out_sa, x, *p["norm1"])

    w_in_ca, b_in_ca, w_out_ca, b_out_ca = p["cross_attn"]
    ca = mha_core(x, memory, (w_in_ca, b_in_ca), nhead, False, mem_bias)
    x = linear_add_ln(ca, w_out_ca, b_out_ca, x, *p["norm2"])

    x = ffn_add_ln(x, *p["linear1"], *p["linear2"], *p["norm3"])
    return x


def sine_pe(T, d_model):
    pos = jnp.arange(T, dtype=jnp.float32)[:, None]
    div = jnp.exp(jnp.arange(0, d_model, 2, dtype=jnp.float32)
                  * (-math.log(10000.0) / d_model))
    pe = jnp.zeros((T, d_model), jnp.float32)
    pe = pe.at[:, 0::2].set(jnp.sin(pos * div))
    pe = pe.at[:, 1::2].set(jnp.cos(pos * div))
    return pe


def make_pad_mask(lengths, max_len):
    return jnp.arange(max_len)[None, :] >= lengths[:, None]


def init_params(key, d_model, num_layers):
    keys = iter(jax.random.split(key, 512))

    def nrm(shape, scale=0.02):
        return scale * jax.random.normal(next(keys), shape, jnp.float32)

    def lin(out_dim, in_dim):
        # torch nn.Linear layout (out, in) generated, then stored pre-transposed
        # (in, out) bf16 + (1, out) f32 bias — done ONCE, not per forward call.
        w = nrm((out_dim, in_dim))
        b = nrm((out_dim,))
        return w.T.astype(MXU_DTYPE), b.reshape(1, out_dim).astype(jnp.float32)

    params = {
        "text_emb": nrm((NUM_TEXT_TOKENS, d_model)),
        "audio_embs": [nrm((NUM_AUDIO_TOKENS + 1, d_model))]
        + [nrm((NUM_AUDIO_TOKENS, d_model)) for _ in range(6)],
        "stage_emb": nrm((8, d_model)),   # unused with norm_first=False
    }

    # predict_layers: weights 0..5 tied to audio embeddings as in PyTorch __init__,
    # stored pre-transposed (D, V) bf16.
    def tied_predict(emb, out_dim):
        return (emb.T.astype(MXU_DTYPE),
                nrm((out_dim,)).reshape(1, out_dim).astype(jnp.float32))

    pred = [tied_predict(params["audio_embs"][0], NUM_AUDIO_TOKENS + 1)]
    for j in range(1, 6):
        pred.append(tied_predict(params["audio_embs"][j + 1], NUM_AUDIO_TOKENS))
    for _ in range(6, 8):
        pred.append(lin(NUM_AUDIO_TOKENS, d_model))
    params["predict"] = pred

    def layer_params():
        return {
            "self_attn": lin(3 * d_model, d_model) + lin(d_model, d_model),
            "cross_attn": lin(3 * d_model, d_model) + lin(d_model, d_model),
            "linear1": lin(4 * d_model, d_model),
            "linear2": lin(d_model, 4 * d_model),
            "norm1": (jnp.ones((1, d_model), jnp.float32), jnp.zeros((1, d_model), jnp.float32)),
            "norm2": (jnp.ones((1, d_model), jnp.float32), jnp.zeros((1, d_model), jnp.float32)),
            "norm3": (jnp.ones((1, d_model), jnp.float32), jnp.zeros((1, d_model), jnp.float32)),
        }

    params["decoder_blocks"] = [[layer_params() for _ in range(num_layers)]
                                for _ in range(2)]
    return params


@functools.partial(jax.jit, static_argnames=("d_model", "nhead", "train_stage"))
def vallf_forward(params, x_tokens, x_lens, y, y_lens, d_model, nhead,
                  train_stage=6):
    """VALLF.forward (reduction='sum'). train_stage=6 matches the first draw of
    random.Random(0).choices((1..7), weights=[1/7]*7)."""
    N, S = x_tokens.shape
    T = y.shape[1]

    x_mask = make_pad_mask(x_lens, S)                       # (N, S) True = pad
    x = params["text_emb"][x_tokens] + sine_pe(S, d_model)[None]

    y_mask = make_pad_mask(y_lens, T)                       # (N, T)
    y_mask_int = y_mask.astype(jnp.int32)
    codes = y.astype(jnp.int32) * (1 - y_mask_int[..., None])

    # pad_y_eos on the first codebook
    eos = NUM_AUDIO_TOKENS
    y0 = (jnp.pad(codes[..., 0], ((0, 0), (0, 1)))
          + eos * jnp.pad(y_mask_int, ((0, 0), (0, 1)), constant_values=1))
    y_in, targets = y0[:, :-1], y0[:, 1:]

    y_emb = params["audio_embs"][0][y_in]
    y_pos = y_emb + sine_pe(T, d_model)[None]

    # key-padding additive biases, built once (tiny) and broadcast per head
    # inside the attention kernel — no (N*H, Tq, Tk) mask in HBM.
    x_bias = jnp.where(x_mask, NEG_INF, 0.0).astype(jnp.float32).reshape(N, 1, S)
    y_bias = jnp.where(y_mask, NEG_INF, 0.0).astype(jnp.float32).reshape(N, 1, T)

    # ---------- AR decoder block (causal mask generated in-kernel) ----------
    # TODO(synk): stage_embeddings.embedding(0) is only consumed by
    # AdaptiveLayerNorm when norm_first=True; with norm_first=False (as here)
    # it is unused, so it is not wired into the layers.
    h = y_pos
    for lp in params["decoder_blocks"][0]:
        h = decoder_layer(h, x, lp, nhead, True, y_bias, x_bias)
    loss1 = predict_ce_sum(h, *params["predict"][0],
                           targets.reshape(-1), jnp.ones((N * T,), jnp.float32))

    # ---------- NAR decoder block ----------
    for i in range(train_stage - 1):
        y_pos = y_pos + params["audio_embs"][i + 1][codes[..., i + 1]]
    targets2 = codes[..., train_stage] + NUM_AUDIO_TOKENS * y_mask_int
    h = y_pos
    for lp in params["decoder_blocks"][1]:
        h = decoder_layer(h, x, lp, nhead, False, y_bias, x_bias)
    valid2 = (targets2.reshape(-1) != NUM_AUDIO_TOKENS).astype(jnp.float32)
    loss2 = predict_ce_sum(h, *params["predict"][train_stage],
                           targets2.reshape(-1), valid2)

    total_loss = loss1 + loss2
    return codes, total_loss / 2.0
    # TODO(synk): dropout (p=0.1) is stochastic; eval-mode (no dropout) is used.


if __name__ == "__main__":
    d_model, nhead, num_layers = 32, 4, 2
    N, S, T = 2, 8, 8

    key = jax.random.PRNGKey(0)
    kp, kx, ky = jax.random.split(key, 3)
    params = init_params(kp, d_model, num_layers)

    x_tokens = jax.random.randint(kx, (N, S), 0, NUM_TEXT_TOKENS, dtype=jnp.int32)
    x_lens = jnp.array([S, S - 2], dtype=jnp.int32)
    y = jax.random.randint(ky, (N, T, 8), 0, NUM_AUDIO_TOKENS, dtype=jnp.int32)
    y_lens = jnp.array([T, T - 3], dtype=jnp.int32)

    codes, loss = vallf_forward(params, x_tokens, x_lens, y, y_lens,
                                d_model=d_model, nhead=nhead, train_stage=6)
    jax.block_until_ready((codes, loss))
    assert codes.shape == (N, T, 8)
    assert loss.shape == ()
    print("KERNEL_OK")
</pallas_src>

<mosaic_0001>
module attributes {stable_mosaic.version = 11 : i64} {
  func.func @_linear_kernel(%arg0: i32, %arg1: i32, %arg2: i32, %arg3: memref<16x32xbf16, #tpu.memory_space<vmem>>, %arg4: memref<32x96xbf16, #tpu.memory_space<vmem>>, %arg5: memref<1x96xf32, #tpu.memory_space<vmem>>, %arg6: memref<16x96xbf16, #tpu.memory_space<vmem>>, %arg7: memref<16x96xf32, #tpu.memory_space<vmem>>) attributes {dimension_semantics = [#tpu.dimension_semantics<parallel>, #tpu.dimension_semantics<parallel>, #tpu.dimension_semantics<arbitrary>], iteration_bounds = array<i64: 1, 1, 1>, scalar_prefetch = 0 : i64, scratch_operands = 1 : i64, tpu.core_type = #tpu.core_type<tc>, window_params = [{transform_indices = @transform_0, window_bounds = array<i64: 16, 32>}, {transform_indices = @transform_1, window_bounds = array<i64: 32, 96>}, {transform_indices = @transform_2, window_bounds = array<i64: 1, 96>}, {transform_indices = @transform_3, window_bounds = array<i64: 16, 96>}]} {
    %c0_i32 = arith.constant 0 : i32
    %0 = arith.cmpi eq, %arg2, %c0_i32 : i32
    %1 = arith.extui %0 : i1 to i32
    %c0_i32_0 = arith.constant 0 : i32
    %2 = arith.cmpi ne, %1, %c0_i32_0 : i32
    scf.if %2 {
      %cst_10 = arith.constant 0.000000e+00 : f32
      %12 = vector.broadcast %cst_10 : f32 to vector<16x96xf32>
      %c0_11 = arith.constant 0 : index
      %c0_12 = arith.constant 0 : index
      %13 = vector.load %arg7[%c0_11, %c0_12] : memref<16x96xf32, #tpu.memory_space<vmem>>, vector<16x96xf32>
      tpu.vector_store %arg7[%c0_11, %c0_12], %12 {strides = array<i32>} : memref<16x96xf32, #tpu.memory_space<vmem>>, vector<16x96xf32>,
    } else {
    }
    %c0 = arith.constant 0 : index
    %c0_1 = arith.constant 0 : index
    %3 = vector.load %arg7[%c0, %c0_1] : memref<16x96xf32, #tpu.memory_space<vmem>>, vector<16x96xf32>
    %c0_2 = arith.constant 0 : index
    %c0_3 = arith.constant 0 : index
    %4 = vector.load %arg3[%c0_2, %c0_3] : memref<16x32xbf16, #tpu.memory_space<vmem>>, vector<16x32xbf16>
    %c0_4 = arith.constant 0 : index
    %c0_5 = arith.constant 0 : index
    %5 = vector.load %arg4[%c0_4, %c0_5] : memref<32x96xbf16, #tpu.memory_space<vmem>>, vector<32x96xbf16>
    %cst = arith.constant dense<0.000000e+00> : vector<16x96xf32>
    %6 = tpu.matmul %4, %5, %cst {dimension_numbers = #tpu.dot_dimension_numbers<[1], [0], [0], [1], [0, 0, 1, 1], [], []>} : vector<16x32xbf16>, vector<32x96xbf16>, vector<16x96xf32> -> vector<16x96xf32>
    %7 = arith.addf %3, %6 : vector<16x96xf32>
    %c0_6 = arith.constant 0 : index
    %c0_7 = arith.constant 0 : index
    %8 = vector.load %arg7[%c0_6, %c0_7] : memref<16x96xf32, #tpu.memory_space<vmem>>, vector<16x96xf32>
    tpu.vector_store %arg7[%c0_6, %c0_7], %7 {strides = array<i32>} : memref<16x96xf32, #tpu.memory_space<vmem>>, vector<16x96xf32>,
    %c0_i32_8 = arith.constant 0 : i32
    %9 = arith.cmpi eq, %arg2, %c0_i32_8 : i32
    %10 = arith.extui %9 : i1 to i32
    %c0_i32_9 = arith.constant 0 : i32
    %11 = arith.cmpi ne, %10, %c0_i32_9 : i32
    scf.if %11 {
      %c0_10 = arith.constant 0 : index
      %c0_11 = arith.constant 0 : index
      %12 = vector.load %arg7[%c0_10, %c0_11] : memref<16x96xf32, #tpu.memory_space<vmem>>, vector<16x96xf32>
      %c0_12 = arith.constant 0 : index
      %c0_13 = arith.constant 0 : index
      %13 = vector.load %arg5[%c0_12, %c0_13] : memref<1x96xf32, #tpu.memory_space<vmem>>, vector<1x96xf32>
      %14 = vector.broadcast %13 : vector<1x96xf32> to vector<16x96xf32>
      %15 = arith.addf %12, %14 : vector<16x96xf32>
      %16 = arith.truncf %15 : vector<16x96xf32> to vector<16x96xbf16>
      %c0_14 = arith.constant 0 : index
      %c0_15 = arith.constant 0 : index
      %17 = vector.load %arg6[%c0_14, %c0_15] : memref<16x96xbf16, #tpu.memory_space<vmem>>, vector<16x96xbf16>
      tpu.vector_store %arg6[%c0_14, %c0_15], %16 {strides = array<i32>} : memref<16x96xbf16, #tpu.memory_space<vmem>>, vector<16x96xbf16>,
    } else {
    }
    return
  }
  func.func @transform_0(%arg0: i32, %arg1: i32, %arg2: i32) -> (i32, i32) {
    %c0_i32 = arith.constant 0 : i32
    return %arg0, %arg2 : i32, i32
  }
  func.func @transform_1(%arg0: i32, %arg1: i32, %arg2: i32) -> (i32, i32) {
    %c0_i32 = arith.constant 0 : i32
    return %arg2, %arg1 : i32, i32
  }
  func.func @transform_2(%arg0: i32, %arg1: i32, %arg2: i32) -> (i32, i32) {
    %c0_i32 = arith.constant 0 : i32
    %c0_i32_0 = arith.constant 0 : i32
    return %c0_i32, %arg1 : i32, i32
  }
  func.func @transform_3(%arg0: i32, %arg1: i32, %arg2: i32) -> (i32, i32) {
    %c0_i32 = arith.constant 0 : i32
    return %arg0, %arg1 : i32, i32
  }
}

module attributes {stable_mosaic.version = 11 : i64} {
  func.func @_flash_kernel(%arg0: i32, %arg1: i32, %arg2: i32, %arg3: memref<1x4x8x8xbf16, #tpu.memory_space<vmem>>, %arg4: memref<1x4x8x8xbf16, #tpu.memory_space<vmem>>, %arg5: memref<1x4x8x8xbf16, #tpu.memory_space<vmem>>, %arg6: memref<1x1x8xf32, #tpu.memory_space<vmem>>, %arg7: memref<1x4x8x8xbf16, #tpu.memory_space<vmem>>, %arg8: memref<4x8x1xf32, #tpu.memory_space<vmem>>, %arg9: memref<4x8x1xf32, #tpu.memory_space<vmem>>, %arg10: memref<4x8x8xf32, #tpu.memory_space<vmem>>) attributes {dimension_semantics = [#tpu.dimension_semantics<parallel>, #tpu.dimension_semantics<parallel>, #tpu.dimension_semantics<arbitrary>], iteration_bounds = array<i64: 2, 1, 1>, scalar_prefetch = 0 : i64, scratch_operands = 3 : i64, tpu.core_type = #tpu.core_type<tc>, window_params = [{transform_indices = @transform_0, window_bounds = array<i64: 1, 4, 8, 8>}, {transform_indices = @transform_1, window_bounds = array<i64: 1, 4, 8, 8>}, {transform_indices = @transform_2, window_bounds = array<i64: 1, 4, 8, 8>}, {transform_indices = @transform_3, window_bounds = array<i64: 1, 1, 8>}, {transform_indices = @transform_4, window_bounds = array<i64: 1, 4, 8, 8>}]} {
    %c0_i32 = arith.constant 0 : i32
    %0 = arith.cmpi eq, %arg2, %c0_i32 : i32
    %1 = arith.extui %0 : i1 to i32
    %c0_i32_0 = arith.constant 0 : i32
    %2 = arith.cmpi ne, %1, %c0_i32_0 : i32
    scf.if %2 {
      %cst_38 = arith.constant 0xFF800000 : f32
      %41 = vector.broadcast %cst_38 : f32 to vector<4x8x1xf32>
      %c0_39 = arith.constant 0 : index
      %c0_40 = arith.constant 0 : index
      %c0_41 = arith.constant 0 : index
      %42 = vector.load %arg8[%c0_39, %c0_40, %c0_41] : memref<4x8x1xf32, #tpu.memory_space<vmem>>, vector<4x8x1xf32>
      tpu.vector_store %arg8[%c0_39, %c0_40, %c0_41], %41 {strides = array<i32>} : memref<4x8x1xf32, #tpu.memory_space<vmem>>, vector<4x8x1xf32>,
      %cst_42 = arith.constant 0.000000e+00 : f32
      %43 = vector.broadcast %cst_42 : f32 to vector<4x8x1xf32>
      %c0_43 = arith.constant 0 : index
      %c0_44 = arith.constant 0 : index
      %c0_45 = arith.constant 0 : index
      %44 = vector.load %arg9[%c0_43, %c0_44, %c0_45] : memref<4x8x1xf32, #tpu.memory_space<vmem>>, vector<4x8x1xf32>
      tpu.vector_store %arg9[%c0_43, %c0_44, %c0_45], %43 {strides = array<i32>} : memref<4x8x1xf32, #tpu.memory_space<vmem>>, vector<4x8x1xf32>,
      %cst_46 = arith.constant 0.000000e+00 : f32
      %45 = vector.broadcast %cst_46 : f32 to vector<4x8x8xf32>
      %c0_47 = arith.constant 0 : index
      %c0_48 = arith.constant 0 : index
      %c0_49 = arith.constant 0 : index
      %46 = vector.load %arg10[%c0_47, %c0_48, %c0_49] : memref<4x8x8xf32, #tpu.memory_space<vmem>>, vector<4x8x8xf32>
      tpu.vector_store %arg10[%c0_47, %c0_48, %c0_49], %45 {strides = array<i32>} : memref<4x8x8xf32, #tpu.memory_space<vmem>>, vector<4x8x8xf32>,
    } else {
    }
    %c0 = arith.constant 0 : index
    %c0_1 = arith.constant 0 : index
    %c0_2 = arith.constant 0 : index
    %c0_3 = arith.constant 0 : index
    %3 = vector.load %arg3[%c0, %c0_1, %c0_2, %c0_3] : memref<1x4x8x8xbf16, #tpu.memory_space<vmem>>, vector<1x4x8x8xbf16>
    %4 = vector.shape_cast %3 : vector<1x4x8x8xbf16> to vector<4x8x8xbf16>
    %c0_4 = arith.constant 0 : index
    %c0_5 = arith.constant 0 : index
    %c0_6 = arith.constant 0 : index
    %c0_7 = arith.constant 0 : index
    %5 = vector.load %arg4[%c0_4, %c0_5, %c0_6, %c0_7] : memref<1x4x8x8xbf16, #tpu.memory_space<vmem>>, vector<1x4x8x8xbf16>
    %6 = vector.shape_cast %5 : vector<1x4x8x8xbf16> to vector<4x8x8xbf16>
    "tpu.trace_start"() <{level = 10 : i32, message = "hqd,hkd->hqk"}> : () -> ()
    %cst = arith.constant dense<0.000000e+00> : vector<4x8x8xf32>
    %7 = tpu.matmul %4, %6, %cst {dimension_numbers = #tpu.dot_dimension_numbers<[2], [2], [1], [1], [0, 0, 0, 1, 1, 1], [0], [0]>} : vector<4x8x8xbf16>, vector<4x8x8xbf16>, vector<4x8x8xf32> -> vector<4x8x8xf32>
    "tpu.trace_stop"() : () -> ()
    %c0_8 = arith.constant 0 : index
    %c0_9 = arith.constant 0 : index
    %c0_10 = arith.constant 0 : index
    %8 = vector.load %arg6[%c0_8, %c0_9, %c0_10] : memref<1x1x8xf32, #tpu.memory_space<vmem>>, vector<1x1x8xf32>
    %9 = vector.shape_cast %8 : vector<1x1x8xf32> to vector<1x8xf32>
    %10 = vector.shape_cast %9 : vector<1x8xf32> to vector<1x1x8xf32>
    %11 = vector.broadcast %10 : vector<1x1x8xf32> to vector<4x8x8xf32>
    %12 = arith.addf %7, %11 : vector<4x8x8xf32>
    %c0_11 = arith.constant 0 : index
    %c0_12 = arith.constant 0 : index
    %c0_13 = arith.constant 0 : index
    %13 = vector.load %arg8[%c0_11, %c0_12, %c0_13] : memref<4x8x1xf32, #tpu.memory_space<vmem>>, vector<4x8x1xf32>
    %cst_14 = arith.constant dense<0xFF800000> : vector<4x8xf32>
    %14 = vector.multi_reduction <maximumf>, %12, %cst_14 [2] : vector<4x8x8xf32> to vector<4x8xf32>
    %15 = vector.shape_cast %14 : vector<4x8xf32> to vector<4x8x1xf32>
    %16 = arith.maximumf %13, %15 : vector<4x8x1xf32>
    %17 = arith.subf %13, %16 : vector<4x8x1xf32>
    %18 = math.exp %17 : vector<4x8x1xf32>
    %19 = vector.broadcast %16 : vector<4x8x1xf32> to vector<4x8x8xf32>
    %20 = arith.subf %12, %19 : vector<4x8x8xf32>
    %21 = math.exp %20 : vector<4x8x8xf32>
    %c0_15 = arith.constant 0 : index
    %c0_16 = arith.constant 0 : index
    %c0_17 = arith.constant 0 : index
    %22 = vector.load %arg9[%c0_15, %c0_16, %c0_17] : memref<4x8x1xf32, #tpu.memory_space<vmem>>, vector<4x8x1xf32>
    %23 = arith.mulf %18, %22 : vector<4x8x1xf32>
    %cst_18 = arith.constant dense<0.000000e+00> : vector<4x8xf32>
    %24 = vector.multi_reduction <add>, %21, %cst_18 [2] : vector<4x8x8xf32> to vector<4x8xf32>
    %25 = vector.shape_cast %24 : vector<4x8xf32> to vector<4x8x1xf32>
    %26 = arith.addf %23, %25 : vector<4x8x1xf32>
    %c0_19 = arith.constant 0 : index
    %c0_20 = arith.constant 0 : index
    %c0_21 = arith.constant 0 : index
    %27 = vector.load %arg9[%c0_19, %c0_20, %c0_21] : memref<4x8x1xf32, #tpu.memory_space<vmem>>, vector<4x8x1xf32>
    tpu.vector_store %arg9[%c0_19, %c0_20, %c0_21], %26 {strides = array<i32>} : memref<4x8x1xf32, #tpu.memory_space<vmem>>, vector<4x8x1xf32>,
    %c0_22 = arith.constant 0 : index
    %c0_23 = arith.constant 0 : index
    %c0_24 = arith.constant 0 : index
    %28 = vector.load %arg10[%c0_22, %c0_23, %c0_24] : memref<4x8x8xf32, #tpu.memory_space<vmem>>, vector<4x8x8xf32>
    %29 = vector.broadcast %18 : vector<4x8x1xf32> to vector<4x8x8xf32>
    %30 = arith.mulf %29, %28 : vector<4x8x8xf32>
    %31 = arith.truncf %21 : vector<4x8x8xf32> to vector<4x8x8xbf16>
    %c0_25 = arith.constant 0 : index
    %c0_26 = arith.constant 0 : index
    %c0_27 = arith.constant 0 : index
    %c0_28 = arith.constant 0 : index
    %32 = vector.load %arg5[%c0_25, %c0_26, %c0_27, %c0_28] : memref<1x4x8x8xbf16, #tpu.memory_space<vmem>>, vector<1x4x8x8xbf16>
    %33 = vector.shape_cast %32 : vector<1x4x8x8xbf16> to vector<4x8x8xbf16>
    "tpu.trace_start"() <{level = 10 : i32, message = "hqk,hkd->hqd"}> : () -> ()
    %cst_29 = arith.constant dense<0.000000e+00> : vector<4x8x8xf32>
    %34 = tpu.matmul %31, %33, %cst_29 {dimension_numbers = #tpu.dot_dimension_numbers<[2], [1], [1], [2], [0, 0, 0, 1, 1, 2], [0], [0]>} : vector<4x8x8xbf16>, vector<4x8x8xbf16>, vector<4x8x8xf32> -> vector<4x8x8xf32>
    "tpu.trace_stop"() : () -> ()
    %35 = arith.addf %30, %34 : vector<4x8x8xf32>
    %c0_30 = arith.constant 0 : index
    %c0_31 = arith.constant 0 : index
    %c0_32 = arith.constant 0 : index
    %36 = vector.load %arg10[%c0_30, %c0_31, %c0_32] : memref<4x8x8xf32, #tpu.memory_space<vmem>>, vector<4x8x8xf32>
    tpu.vector_store %arg10[%c0_30, %c0_31, %c0_32], %35 {strides = array<i32>} : memref<4x8x8xf32, #tpu.memory_space<vmem>>, vector<4x8x8xf32>,
    %c0_33 = arith.constant 0 : index
    %c0_34 = arith.constant 0 : index
    %c0_35 = arith.constant 0 : index
    %37 = vector.load %arg8[%c0_33, %c0_34, %c0_35] : memref<4x8x1xf32, #tpu.memory_space<vmem>>, vector<4x8x1xf32>
    tpu.vector_store %arg8[%c0_33, %c0_34, %c0_35], %16 {strides = array<i32>} : memref<4x8x1xf32, #tpu.memory_space<vmem>>, vector<4x8x1xf32>,
    %c0_i32_36 = arith.constant 0 : i32
    %38 = arith.cmpi eq, %arg2, %c0_i32_36 : i32
    %39 = arith.extui %38 : i1 to i32
    %c0_i32_37 = arith.constant 0 : i32
    %40 = arith.cmpi ne, %39, %c0_i32_37 : i32
    scf.if %40 {
      %c0_38 = arith.constant 0 : index
      %c0_39 = arith.constant 0 : index
      %c0_40 = arith.constant 0 : index
      %41 = vector.load %arg10[%c0_38, %c0_39, %c0_40] : memref<4x8x8xf32, #tpu.memory_space<vmem>>, vector<4x8x8xf32>
      %c0_41 = arith.constant 0 : index
      %c0_42 = arith.constant 0 : index
      %c0_43 = arith.constant 0 : index
      %42 = vector.load %arg9[%c0_41, %c0_42, %c0_43] : memref<4x8x1xf32, #tpu.memory_space<vmem>>, vector<4x8x1xf32>
      %43 = tpu.reciprocal %42 {approx = true} : vector<4x8x1xf32> -> vector<4x8x1xf32>
      %44 = vector.broadcast %43 : vector<4x8x1xf32> to vector<4x8x8xf32>
      %45 = arith.mulf %41, %44 : vector<4x8x8xf32>
      %46 = arith.truncf %45 : vector<4x8x8xf32> to vector<4x8x8xbf16>
      %c0_44 = arith.constant 0 : index
      %c0_45 = arith.constant 0 : index
      %c0_46 = arith.constant 0 : index
      %c0_47 = arith.constant 0 : index
      %47 = vector.load %arg7[%c0_44, %c0_45, %c0_46, %c0_47] : memref<1x4x8x8xbf16, #tpu.memory_space<vmem>>, vector<1x4x8x8xbf16>
      %48 = vector.shape_cast %47 : vector<1x4x8x8xbf16> to vector<4x8x8xbf16>
      %49 = vector.shape_cast %46 : vector<4x8x8xbf16> to vector<1x4x8x8xbf16>
      tpu.vector_store %arg7[%c0_44, %c0_45, %c0_46, %c0_47], %49 {strides = array<i32>} : memref<1x4x8x8xbf16, #tpu.memory_space<vmem>>, vector<1x4x8x8xbf16>,
    } else {
    }
    return
  }
  func.func @transform_0(%arg0: i32, %arg1: i32, %arg2: i32) -> (i32, i32, i32, i32) {
    %c0_i32 = arith.constant 0 : i32
    %c0_i32_0 = arith.constant 0 : i32
    %c0_i32_1 = arith.constant 0 : i32
    return %arg0, %c0_i32, %arg1, %c0_i32_0 : i32, i32, i32, i32
  }
  func.func @transform_1(%arg0: i32, %arg1: i32, %arg2: i32) -> (i32, i32, i32, i32) {
    %c0_i32 = arith.constant 0 : i32
    %c0_i32_0 = arith.constant 0 : i32
    %c0_i32_1 = arith.constant 0 : i32
    return %arg0, %c0_i32, %arg2, %c0_i32_0 : i32, i32, i32, i32
  }
  func.func @transform_2(%arg0: i32, %arg1: i32, %arg2: i32) -> (i32, i32, i32, i32) {
    %c0_i32 = arith.constant 0 : i32
    %c0_i32_0 = arith.constant 0 : i32
    %c0_i32_1 = arith.constant 0 : i32
    return %arg0, %c0_i32, %arg2, %c0_i32_0 : i32, i32, i32, i32
  }
  func.func @transform_3(%arg0: i32, %arg1: i32, %arg2: i32) -> (i32, i32, i32) {
    %c0_i32 = arith.constant 0 : i32
    %c0_i32_0 = arith.constant 0 : i32
    return %arg0, %c0_i32, %arg2 : i32, i32, i32
  }
  func.func @transform_4(%arg0: i32, %arg1: i32, %arg2: i32) -> (i32, i32, i32, i32) {
    %c0_i32 = arith.constant 0 : i32
    %c0_i32_0 = arith.constant 0 : i32
    %c0_i32_1 = arith.constant 0 : i32
    return %arg0, %c0_i32, %arg1, %c0_i32_0 : i32, i32, i32, i32
  }
}

module attributes {stable_mosaic.version = 11 : i64} {
  func.func @_linear_addln_kernel(%arg0: i32, %arg1: i32, %arg2: memref<16x32xbf16, #tpu.memory_space<vmem>>, %arg3: memref<32x32xbf16, #tpu.memory_space<vmem>>, %arg4: memref<1x32xf32, #tpu.memory_space<vmem>>, %arg5: memref<16x32xf32, #tpu.memory_space<vmem>>, %arg6: memref<1x32xf32, #tpu.memory_space<vmem>>, %arg7: memref<1x32xf32, #tpu.memory_space<vmem>>, %arg8: memref<16x32xf32, #tpu.memory_space<vmem>>, %arg9: memref<16x32xf32, #tpu.memory_space<vmem>>) attributes {dimension_semantics = [#tpu.dimension_semantics<parallel>, #tpu.dimension_semantics<arbitrary>], iteration_bounds = array<i64: 1, 1>, scalar_prefetch = 0 : i64, scratch_operands = 1 : i64, tpu.core_type = #tpu.core_type<tc>, window_params = [{transform_indices = @transform_0, window_bounds = array<i64: 16, 32>}, {transform_indices = @transform_1, window_bounds = array<i64: 32, 32>}, {pipeline_mode = #tpu.pipeline_mode<synchronous>, transform_indices = @transform_2, window_bounds = array<i64: 1, 32>}, {transform_indices = @transform_3, window_bounds = array<i64: 16, 32>}, {pipeline_mode = #tpu.pipeline_mode<synchronous>, transform_indices = @transform_4, window_bounds = array<i64: 1, 32>}, {pipeline_mode = #tpu.pipeline_mode<synchronous>, transform_indices = @transform_5, window_bounds = array<i64: 1, 32>}, {transform_indices = @transform_6, window_bounds = array<i64: 16, 32>}]} {
    %c0_i32 = arith.constant 0 : i32
    %0 = arith.cmpi eq, %arg1, %c0_i32 : i32
    %1 = arith.extui %0 : i1 to i32
    %c0_i32_0 = arith.constant 0 : i32
    %2 = arith.cmpi ne, %1, %c0_i32_0 : i32
    scf.if %2 {
      %cst_10 = arith.constant 0.000000e+00 : f32
      %12 = vector.broadcast %cst_10 : f32 to vector<16x32xf32>
      %c0_11 = arith.constant 0 : index
      %c0_12 = arith.constant 0 : index
      %13 = vector.load %arg9[%c0_11, %c0_12] : memref<16x32xf32, #tpu.memory_space<vmem>>, vector<16x32xf32>
      tpu.vector_store %arg9[%c0_11, %c0_12], %12 {strides = array<i32>} : memref<16x32xf32, #tpu.memory_space<vmem>>, vector<16x32xf32>,
    } else {
    }
    %c0 = arith.constant 0 : index
    %c0_1 = arith.constant 0 : index
    %3 = vector.load %arg9[%c0, %c0_1] : memref<16x32xf32, #tpu.memory_space<vmem>>, vector<16x32xf32>
    %c0_2 = arith.constant 0 : index
    %c0_3 = arith.constant 0 : index
    %4 = vector.load %arg2[%c0_2, %c0_3] : memref<16x32xbf16, #tpu.memory_space<vmem>>, vector<16x32xbf16>
    %c0_4 = arith.constant 0 : index
    %c0_5 = arith.constant 0 : index
    %5 = vector.load %arg3[%c0_4, %c0_5] : memref<32x32xbf16, #tpu.memory_space<vmem>>, vector<32x32xbf16>
    %cst = arith.constant dense<0.000000e+00> : vector<16x32xf32>
    %6 = tpu.matmul %4, %5, %cst {dimension_numbers = #tpu.dot_dimension_numbers<[1], [0], [0], [1], [0, 0, 1, 1], [], []>} : vector<16x32xbf16>, vector<32x32xbf16>, vector<16x32xf32> -> vector<16x32xf32>
    %7 = arith.addf %3, %6 : vector<16x32xf32>
    %c0_6 = arith.constant 0 : index
    %c0_7 = arith.constant 0 : index
    %8 = vector.load %arg9[%c0_6, %c0_7] : memref<16x32xf32, #tpu.memory_space<vmem>>, vector<16x32xf32>
    tpu.vector_store %arg9[%c0_6, %c0_7], %7 {strides = array<i32>} : memref<16x32xf32, #tpu.memory_space<vmem>>, vector<16x32xf32>,
    %c0_i32_8 = arith.constant 0 : i32
    %9 = arith.cmpi eq, %arg1, %c0_i32_8 : i32
    %10 = arith.extui %9 : i1 to i32
    %c0_i32_9 = arith.constant 0 : i32
    %11 = arith.cmpi ne, %10, %c0_i32_9 : i32
    scf.if %11 {
      %c0_10 = arith.constant 0 : index
      %c0_11 = arith.constant 0 : index
      %12 = vector.load %arg9[%c0_10, %c0_11] : memref<16x32xf32, #tpu.memory_space<vmem>>, vector<16x32xf32>
      %c0_12 = arith.constant 0 : index
      %c0_13 = arith.constant 0 : index
      %13 = vector.load %arg4[%c0_12, %c0_13] : memref<1x32xf32, #tpu.memory_space<vmem>>, vector<1x32xf32>
      %14 = vector.broadcast %13 : vector<1x32xf32> to vector<16x32xf32>
      %15 = arith.addf %12, %14 : vector<16x32xf32>
      %c0_14 = arith.constant 0 : index
      %c0_15 = arith.constant 0 : index
      %16 = vector.load %arg5[%c0_14, %c0_15] : memref<16x32xf32, #tpu.memory_space<vmem>>, vector<16x32xf32>
      %17 = arith.addf %15, %16 : vector<16x32xf32>
      %cst_16 = arith.constant dense<0.000000e+00> : vector<16xf32>
      %18 = vector.multi_reduction <add>, %17, %cst_16 [1] : vector<16x32xf32> to vector<16xf32>
      %19 = vector.shape_cast %18 : vector<16xf32> to vector<16x1xf32>
      %cst_17 = arith.constant 3.200000e+01 : f32
      %20 = vector.broadcast %cst_17 : f32 to vector<16x1xf32>
      %21 = arith.divf %19, %20 : vector<16x1xf32>
      %22 = vector.broadcast %21 : vector<16x1xf32> to vector<16x32xf32>
      %23 = arith.subf %17, %22 : vector<16x32xf32>
      %24 = arith.mulf %23, %23 : vector<16x32xf32>
      %cst_18 = arith.constant dense<0.000000e+00> : vector<16xf32>
      %25 = vector.multi_reduction <add>, %24, %cst_18 [1] : vector<16x32xf32> to vector<16xf32>
      %26 = vector.shape_cast %25 : vector<16xf32> to vector<16x1xf32>
      %cst_19 = arith.constant 3.200000e+01 : f32
      %27 = vector.broadcast %cst_19 : f32 to vector<16x1xf32>
      %28 = arith.divf %26, %27 : vector<16x1xf32>
      %cst_20 = arith.constant 9.99999974E-6 : f32
      %29 = vector.broadcast %cst_20 : f32 to vector<16x1xf32>
      %30 = arith.addf %28, %29 : vector<16x1xf32>
      %31 = math.rsqrt %30 : vector<16x1xf32>
      %32 = vector.broadcast %31 : vector<16x1xf32> to vector<16x32xf32>
      %33 = arith.mulf %23, %32 : vector<16x32xf32>
      %c0_21 = arith.constant 0 : index
      %c0_22 = arith.constant 0 : index
      %34 = vector.load %arg6[%c0_21, %c0_22] : memref<1x32xf32, #tpu.memory_space<vmem>>, vector<1x32xf32>
      %35 = vector.broadcast %34 : vector<1x32xf32> to vector<16x32xf32>
      %36 = arith.mulf %33, %35 : vector<16x32xf32>
      %c0_23 = arith.constant 0 : index
      %c0_24 = arith.constant 0 : index
      %37 = vector.load %arg7[%c0_23, %c0_24] : memref<1x32xf32, #tpu.memory_space<vmem>>, vector<1x32xf32>
      %38 = vector.broadcast %37 : vector<1x32xf32> to vector<16x32xf32>
      %39 = arith.addf %36, %38 : vector<16x32xf32>
      %c0_25 = arith.constant 0 : index
      %c0_26 = arith.constant 0 : index
      %40 = vector.load %arg8[%c0_25, %c0_26] : memref<16x32xf32, #tpu.memory_space<vmem>>, vector<16x32xf32>
      tpu.vector_store %arg8[%c0_25, %c0_26], %39 {strides = array<i32>} : memref<16x32xf32, #tpu.memory_space<vmem>>, vector<16x32xf32>,
    } else {
    }
    return
  }
  func.func @transform_0(%arg0: i32, %arg1: i32) -> (i32, i32) {
    %c0_i32 = arith.constant 0 : i32
    return %arg0, %arg1 : i32, i32
  }
  func.func @transform_1(%arg0: i32, %arg1: i32) -> (i32, i32) {
    %c0_i32 = arith.constant 0 : i32
    %c0_i32_0 = arith.constant 0 : i32
    return %arg1, %c0_i32 : i32, i32
  }
  func.func @transform_2(%arg0: i32, %arg1: i32) -> (i32, i32) {
    %c0_i32 = arith.constant 0 : i32
    %c0_i32_0 = arith.constant 0 : i32
    %c0_i32_1 = arith.constant 0 : i32
    return %c0_i32, %c0_i32_0 : i32, i32
  }
  func.func @transform_3(%arg0: i32, %arg1: i32) -> (i32, i32) {
    %c0_i32 = arith.constant 0 : i32
    %c0_i32_0 = arith.constant 0 : i32
    return %arg0, %c0_i32 : i32, i32
  }
  func.func @transform_4(%arg0: i32, %arg1: i32) -> (i32, i32) {
    %c0_i32 = arith.constant 0 : i32
    %c0_i32_0 = arith.constant 0 : i32
    %c0_i32_1 = arith.constant 0 : i32
    return %c0_i32, %c0_i32_0 : i32, i32
  }
  func.func @transform_5(%arg0: i32, %arg1: i32) -> (i32, i32) {
    %c0_i32 = arith.constant 0 : i32
    %c0_i32_0 = arith.constant 0 : i32
    %c0_i32_1 = arith.constant 0 : i32
    return %c0_i32, %c0_i32_0 : i32, i32
  }
  func.func @transform_6(%arg0: i32, %arg1: i32) -> (i32, i32) {
    %c0_i32 = arith.constant 0 : i32
    %c0_i32_0 = arith.constant 0 : i32
    return %arg0, %c0_i32 : i32, i32
  }
}

module attributes {stable_mosaic.version = 11 : i64} {
  func.func @_linear_kernel(%arg0: i32, %arg1: i32, %arg2: i32, %arg3: memref<16x32xbf16, #tpu.memory_space<vmem>>, %arg4: memref<32x32xbf16, #tpu.memory_space<vmem>>, %arg5: memref<1x32xf32, #tpu.memory_space<vmem>>, %arg6: memref<16x32xbf16, #tpu.memory_space<vmem>>, %arg7: memref<16x32xf32, #tpu.memory_space<vmem>>) attributes {dimension_semantics = [#tpu.dimension_semantics<parallel>, #tpu.dimension_semantics<parallel>, #tpu.dimension_semantics<arbitrary>], iteration_bounds = array<i64: 1, 1, 1>, scalar_prefetch = 0 : i64, scratch_operands = 1 : i64, tpu.core_type = #tpu.core_type<tc>, window_params = [{transform_indices = @transform_0, window_bounds = array<i64: 16, 32>}, {transform_indices = @transform_1, window_bounds = array<i64: 32, 32>}, {transform_indices = @transform_2, window_bounds = array<i64: 1, 32>}, {transform_indices = @transform_3, window_bounds = array<i64: 16, 32>}]} {
    %c0_i32 = arith.constant 0 : i32
    %0 = arith.cmpi eq, %arg2, %c0_i32 : i32
    %1 = arith.extui %0 : i1 to i32
    %c0_i32_0 = arith.constant 0 : i32
    %2 = arith.cmpi ne, %1, %c0_i32_0 : i32
    scf.if %2 {
      %cst_10 = arith.constant 0.000000e+00 : f32
      %12 = vector.broadcast %cst_10 : f32 to vector<16x32xf32>
      %c0_11 = arith.constant 0 : index
      %c0_12 = arith.constant 0 : index
      %13 = vector.load %arg7[%c0_11, %c0_12] : memref<16x32xf32, #tpu.memory_space<vmem>>, vector<16x32xf32>
      tpu.vector_store %arg7[%c0_11, %c0_12], %12 {strides = array<i32>} : memref<16x32xf32, #tpu.memory_space<vmem>>, vector<16x32xf32>,
    } else {
    }
    %c0 = arith.constant 0 : index
    %c0_1 = arith.constant 0 : index
    %3 = vector.load %arg7[%c0, %c0_1] : memref<16x32xf32, #tpu.memory_space<vmem>>, vector<16x32xf32>
    %c0_2 = arith.constant 0 : index
    %c0_3 = arith.constant 0 : index
    %4 = vector.load %arg3[%c0_2, %c0_3] : memref<16x32xbf16, #tpu.memory_space<vmem>>, vector<16x32xbf16>
    %c0_4 = arith.constant 0 : index
    %c0_5 = arith.constant 0 : index
    %5 = vector.load %arg4[%c0_4, %c0_5] : memref<32x32xbf16, #tpu.memory_space<vmem>>, vector<32x32xbf16>
    %cst = arith.constant dense<0.000000e+00> : vector<16x32xf32>
    %6 = tpu.matmul %4, %5, %cst {dimension_numbers = #tpu.dot_dimension_numbers<[1], [0], [0], [1], [0, 0, 1, 1], [], []>} : vector<16x32xbf16>, vector<32x32xbf16>, vector<16x32xf32> -> vector<16x32xf32>
    %7 = arith.addf %3, %6 : vector<16x32xf32>
    %c0_6 = arith.constant 0 : index
    %c0_7 = arith.constant 0 : index
    %8 = vector.load %arg7[%c0_6, %c0_7] : memref<16x32xf32, #tpu.memory_space<vmem>>, vector<16x32xf32>
    tpu.vector_store %arg7[%c0_6, %c0_7], %7 {strides = array<i32>} : memref<16x32xf32, #tpu.memory_space<vmem>>, vector<16x32xf32>,
    %c0_i32_8 = arith.constant 0 : i32
    %9 = arith.cmpi eq, %arg2, %c0_i32_8 : i32
    %10 = arith.extui %9 : i1 to i32
    %c0_i32_9 = arith.constant 0 : i32
    %11 = arith.cmpi ne, %10, %c0_i32_9 : i32
    scf.if %11 {
      %c0_10 = arith.constant 0 : index
      %c0_11 = arith.constant 0 : index
      %12 = vector.load %arg7[%c0_10, %c0_11] : memref<16x32xf32, #tpu.memory_space<vmem>>, vector<16x32xf32>
      %c0_12 = arith.constant 0 : index
      %c0_13 = arith.constant 0 : index
      %13 = vector.load %arg5[%c0_12, %c0_13] : memref<1x32xf32, #tpu.memory_space<vmem>>, vector<1x32xf32>
      %14 = vector.broadcast %13 : vector<1x32xf32> to vector<16x32xf32>
      %15 = arith.addf %12, %14 : vector<16x32xf32>
      %16 = arith.truncf %15 : vector<16x32xf32> to vector<16x32xbf16>
      %c0_14 = arith.constant 0 : index
      %c0_15 = arith.constant 0 : index
      %17 = vector.load %arg6[%c0_14, %c0_15] : memref<16x32xbf16, #tpu.memory_space<vmem>>, vector<16x32xbf16>
      tpu.vector_store %arg6[%c0_14, %c0_15], %16 {strides = array<i32>} : memref<16x32xbf16, #tpu.memory_space<vmem>>, vector<16x32xbf16>,
    } else {
    }
    return
  }
  func.func @transform_0(%arg0: i32, %arg1: i32, %arg2: i32) -> (i32, i32) {
    %c0_i32 = arith.constant 0 : i32
    return %arg0, %arg2 : i32, i32
  }
  func.func @transform_1(%arg0: i32, %arg1: i32, %arg2: i32) -> (i32, i32) {
    %c0_i32 = arith.constant 0 : i32
    return %arg2, %arg1 : i32, i32
  }
  func.func @transform_2(%arg0: i32, %arg1: i32, %arg2: i32) -> (i32, i32) {
    %c0_i32 = arith.constant 0 : i32
    %c0_i32_0 = arith.constant 0 : i32
    return %c0_i32, %arg1 : i32, i32
  }
  func.func @transform_3(%arg0: i32, %arg1: i32, %arg2: i32) -> (i32, i32) {
    %c0_i32 = arith.constant 0 : i32
    return %arg0, %arg1 : i32, i32
  }
}

module attributes {stable_mosaic.version = 11 : i64} {
  func.func @_linear_kernel(%arg0: i32, %arg1: i32, %arg2: i32, %arg3: memref<16x32xbf16, #tpu.memory_space<vmem>>, %arg4: memref<32x64xbf16, #tpu.memory_space<vmem>>, %arg5: memref<1x64xf32, #tpu.memory_space<vmem>>, %arg6: memref<16x64xbf16, #tpu.memory_space<vmem>>, %arg7: memref<16x64xf32, #tpu.memory_space<vmem>>) attributes {dimension_semantics = [#tpu.dimension_semantics<parallel>, #tpu.dimension_semantics<parallel>, #tpu.dimension_semantics<arbitrary>], iteration_bounds = array<i64: 1, 1, 1>, scalar_prefetch = 0 : i64, scratch_operands = 1 : i64, tpu.core_type = #tpu.core_type<tc>, window_params = [{transform_indices = @transform_0, window_bounds = array<i64: 16, 32>}, {transform_indices = @transform_1, window_bounds = array<i64: 32, 64>}, {transform_indices = @transform_2, window_bounds = array<i64: 1, 64>}, {transform_indices = @transform_3, window_bounds = array<i64: 16, 64>}]} {
    %c0_i32 = arith.constant 0 : i32
    %0 = arith.cmpi eq, %arg2, %c0_i32 : i32
    %1 = arith.extui %0 : i1 to i32
    %c0_i32_0 = arith.constant 0 : i32
    %2 = arith.cmpi ne, %1, %c0_i32_0 : i32
    scf.if %2 {
      %cst_10 = arith.constant 0.000000e+00 : f32
      %12 = vector.broadcast %cst_10 : f32 to vector<16x64xf32>
      %c0_11 = arith.constant 0 : index
      %c0_12 = arith.constant 0 : index
      %13 = vector.load %arg7[%c0_11, %c0_12] : memref<16x64xf32, #tpu.memory_space<vmem>>, vector<16x64xf32>
      tpu.vector_store %arg7[%c0_11, %c0_12], %12 {strides = array<i32>} : memref<16x64xf32, #tpu.memory_space<vmem>>, vector<16x64xf32>,
    } else {
    }
    %c0 = arith.constant 0 : index
    %c0_1 = arith.constant 0 : index
    %3 = vector.load %arg7[%c0, %c0_1] : memref<16x64xf32, #tpu.memory_space<vmem>>, vector<16x64xf32>
    %c0_2 = arith.constant 0 : index
    %c0_3 = arith.constant 0 : index
    %4 = vector.load %arg3[%c0_2, %c0_3] : memref<16x32xbf16, #tpu.memory_space<vmem>>, vector<16x32xbf16>
    %c0_4 = arith.constant 0 : index
    %c0_5 = arith.constant 0 : index
    %5 = vector.load %arg4[%c0_4, %c0_5] : memref<32x64xbf16, #tpu.memory_space<vmem>>, vector<32x64xbf16>
    %cst = arith.constant dense<0.000000e+00> : vector<16x64xf32>
    %6 = tpu.matmul %4, %5, %cst {dimension_numbers = #tpu.dot_dimension_numbers<[1], [0], [0], [1], [0, 0, 1, 1], [], []>} : vector<16x32xbf16>, vector<32x64xbf16>, vector<16x64xf32> -> vector<16x64xf32>
    %7 = arith.addf %3, %6 : vector<16x64xf32>
    %c0_6 = arith.constant 0 : index
    %c0_7 = arith.constant 0 : index
    %8 = vector.load %arg7[%c0_6, %c0_7] : memref<16x64xf32, #tpu.memory_space<vmem>>, vector<16x64xf32>
    tpu.vector_store %arg7[%c0_6, %c0_7], %7 {strides = array<i32>} : memref<16x64xf32, #tpu.memory_space<vmem>>, vector<16x64xf32>,
    %c0_i32_8 = arith.constant 0 : i32
    %9 = arith.cmpi eq, %arg2, %c0_i32_8 : i32
    %10 = arith.extui %9 : i1 to i32
    %c0_i32_9 = arith.constant 0 : i32
    %11 = arith.cmpi ne, %10, %c0_i32_9 : i32
    scf.if %11 {
      %c0_10 = arith.constant 0 : index
      %c0_11 = arith.constant 0 : index
      %12 = vector.load %arg7[%c0_10, %c0_11] : memref<16x64xf32, #tpu.memory_space<vmem>>, vector<16x64xf32>
      %c0_12 = arith.constant 0 : index
      %c0_13 = arith.constant 0 : index
      %13 = vector.load %arg5[%c0_12, %c0_13] : memref<1x64xf32, #tpu.memory_space<vmem>>, vector<1x64xf32>
      %14 = vector.broadcast %13 : vector<1x64xf32> to vector<16x64xf32>
      %15 = arith.addf %12, %14 : vector<16x64xf32>
      %16 = arith.truncf %15 : vector<16x64xf32> to vector<16x64xbf16>
      %c0_14 = arith.constant 0 : index
      %c0_15 = arith.constant 0 : index
      %17 = vector.load %arg6[%c0_14, %c0_15] : memref<16x64xbf16, #tpu.memory_space<vmem>>, vector<16x64xbf16>
      tpu.vector_store %arg6[%c0_14, %c0_15], %16 {strides = array<i32>} : memref<16x64xbf16, #tpu.memory_space<vmem>>, vector<16x64xbf16>,
    } else {
    }
    return
  }
  func.func @transform_0(%arg0: i32, %arg1: i32, %arg2: i32) -> (i32, i32) {
    %c0_i32 = arith.constant 0 : i32
    return %arg0, %arg2 : i32, i32
  }
  func.func @transform_1(%arg0: i32, %arg1: i32, %arg2: i32) -> (i32, i32) {
    %c0_i32 = arith.constant 0 : i32
    return %arg2, %arg1 : i32, i32
  }
  func.func @transform_2(%arg0: i32, %arg1: i32, %arg2: i32) -> (i32, i32) {
    %c0_i32 = arith.constant 0 : i32
    %c0_i32_0 = arith.constant 0 : i32
    return %c0_i32, %arg1 : i32, i32
  }
  func.func @transform_3(%arg0: i32, %arg1: i32, %arg2: i32) -> (i32, i32) {
    %c0_i32 = arith.constant 0 : i32
    return %arg0, %arg1 : i32, i32
  }
}

module attributes {stable_mosaic.version = 11 : i64} {
  func.func @_ffn_addln_kernel(%arg0: i32, %arg1: i32, %arg2: memref<16x32xf32, #tpu.memory_space<vmem>>, %arg3: memref<32x128xbf16, #tpu.memory_space<vmem>>, %arg4: memref<1x128xf32, #tpu.memory_space<vmem>>, %arg5: memref<128x32xbf16, #tpu.memory_space<vmem>>, %arg6: memref<1x32xf32, #tpu.memory_space<vmem>>, %arg7: memref<1x32xf32, #tpu.memory_space<vmem>>, %arg8: memref<1x32xf32, #tpu.memory_space<vmem>>, %arg9: memref<16x32xf32, #tpu.memory_space<vmem>>, %arg10: memref<16x32xf32, #tpu.memory_space<vmem>>) attributes {dimension_semantics = [#tpu.dimension_semantics<parallel>, #tpu.dimension_semantics<arbitrary>], iteration_bounds = array<i64: 1, 1>, scalar_prefetch = 0 : i64, scratch_operands = 1 : i64, tpu.core_type = #tpu.core_type<tc>, window_params = [{transform_indices = @transform_0, window_bounds = array<i64: 16, 32>}, {transform_indices = @transform_1, window_bounds = array<i64: 32, 128>}, {transform_indices = @transform_2, window_bounds = array<i64: 1, 128>}, {transform_indices = @transform_3, window_bounds = array<i64: 128, 32>}, {pipeline_mode = #tpu.pipeline_mode<synchronous>, transform_indices = @transform_4, window_bounds = array<i64: 1, 32>}, {pipeline_mode = #tpu.pipeline_mode<synchronous>, transform_indices = @transform_5, window_bounds = array<i64: 1, 32>}, {pipeline_mode = #tpu.pipeline_mode<synchronous>, transform_indices = @transform_6, window_bounds = array<i64: 1, 32>}, {transform_indices = @transform_7, window_bounds = array<i64: 16, 32>}]} {
    %c0_i32 = arith.constant 0 : i32
    %0 = arith.cmpi eq, %arg1, %c0_i32 : i32
    %1 = arith.extui %0 : i1 to i32
    %c0_i32_0 = arith.constant 0 : i32
    %2 = arith.cmpi ne, %1, %c0_i32_0 : i32
    scf.if %2 {
      %cst_16 = arith.constant 0.000000e+00 : f32
      %21 = vector.broadcast %cst_16 : f32 to vector<16x32xf32>
      %c0_17 = arith.constant 0 : index
      %c0_18 = arith.constant 0 : index
      %22 = vector.load %arg10[%c0_17, %c0_18] : memref<16x32xf32, #tpu.memory_space<vmem>>, vector<16x32xf32>
      tpu.vector_store %arg10[%c0_17, %c0_18], %21 {strides = array<i32>} : memref<16x32xf32, #tpu.memory_space<vmem>>, vector<16x32xf32>,
    } else {
    }
    %c0 = arith.constant 0 : index
    %c0_1 = arith.constant 0 : index
    %3 = vector.load %arg2[%c0, %c0_1] : memref<16x32xf32, #tpu.memory_space<vmem>>, vector<16x32xf32>
    %4 = arith.truncf %3 : vector<16x32xf32> to vector<16x32xbf16>
    %c0_2 = arith.constant 0 : index
    %c0_3 = arith.constant 0 : index
    %5 = vector.load %arg3[%c0_2, %c0_3] : memref<32x128xbf16, #tpu.memory_space<vmem>>, vector<32x128xbf16>
    %cst = arith.constant dense<0.000000e+00> : vector<16x128xf32>
    %6 = tpu.matmul %4, %5, %cst {dimension_numbers = #tpu.dot_dimension_numbers<[1], [0], [0], [1], [0, 0, 1, 1], [], []>} : vector<16x32xbf16>, vector<32x128xbf16>, vector<16x128xf32> -> vector<16x128xf32>
    %c0_4 = arith.constant 0 : index
    %c0_5 = arith.constant 0 : index
    %7 = vector.load %arg4[%c0_4, %c0_5] : memref<1x128xf32, #tpu.memory_space<vmem>>, vector<1x128xf32>
    %8 = vector.broadcast %7 : vector<1x128xf32> to vector<16x128xf32>
    %9 = arith.addf %6, %8 : vector<16x128xf32>
    %cst_6 = arith.constant 0.000000e+00 : f32
    %10 = vector.broadcast %cst_6 : f32 to vector<16x128xf32>
    %11 = arith.maximumf %9, %10 : vector<16x128xf32>
    %12 = arith.truncf %11 : vector<16x128xf32> to vector<16x128xbf16>
    %c0_7 = arith.constant 0 : index
    %c0_8 = arith.constant 0 : index
    %13 = vector.load %arg10[%c0_7, %c0_8] : memref<16x32xf32, #tpu.memory_space<vmem>>, vector<16x32xf32>
    %c0_9 = arith.constant 0 : index
    %c0_10 = arith.constant 0 : index
    %14 = vector.load %arg5[%c0_9, %c0_10] : memref<128x32xbf16, #tpu.memory_space<vmem>>, vector<128x32xbf16>
    %cst_11 = arith.constant dense<0.000000e+00> : vector<16x32xf32>
    %15 = tpu.matmul %12, %14, %cst_11 {dimension_numbers = #tpu.dot_dimension_numbers<[1], [0], [0], [1], [0, 0, 1, 1], [], []>} : vector<16x128xbf16>, vector<128x32xbf16>, vector<16x32xf32> -> vector<16x32xf32>
    %16 = arith.addf %13, %15 : vector<16x32xf32>
    %c0_12 = arith.constant 0 : index
    %c0_13 = arith.constant 0 : index
    %17 = vector.load %arg10[%c0_12, %c0_13] : memref<16x32xf32, #tpu.memory_space<vmem>>, vector<16x32xf32>
    tpu.vector_store %arg10[%c0_12, %c0_13], %16 {strides = array<i32>} : memref<16x32xf32, #tpu.memory_space<vmem>>, vector<16x32xf32>,
    %c0_i32_14 = arith.constant 0 : i32
    %18 = arith.cmpi eq, %arg1, %c0_i32_14 : i32
    %19 = arith.extui %18 : i1 to i32
    %c0_i32_15 = arith.constant 0 : i32
    %20 = arith.cmpi ne, %19, %c0_i32_15 : i32
    scf.if %20 {
      %c0_16 = arith.constant 0 : index
      %c0_17 = arith.constant 0 : index
      %21 = vector.load %arg10[%c0_16, %c0_17] : memref<16x32xf32, #tpu.memory_space<vmem>>, vector<16x32xf32>
      %c0_18 = arith.constant 0 : index
      %c0_19 = arith.constant 0 : index
      %22 = vector.load %arg6[%c0_18, %c0_19] : memref<1x32xf32, #tpu.memory_space<vmem>>, vector<1x32xf32>
      %23 = vector.broadcast %22 : vector<1x32xf32> to vector<16x32xf32>
      %24 = arith.addf %21, %23 : vector<16x32xf32>
      %c0_20 = arith.constant 0 : index
      %c0_21 = arith.constant 0 : index
      %25 = vector.load %arg2[%c0_20, %c0_21] : memref<16x32xf32, #tpu.memory_space<vmem>>, vector<16x32xf32>
      %26 = arith.addf %24, %25 : vector<16x32xf32>
      %cst_22 = arith.constant dense<0.000000e+00> : vector<16xf32>
      %27 = vector.multi_reduction <add>, %26, %cst_22 [1] : vector<16x32xf32> to vector<16xf32>
      %28 = vector.shape_cast %27 : vector<16xf32> to vector<16x1xf32>
      %cst_23 = arith.constant 3.200000e+01 : f32
      %29 = vector.broadcast %cst_23 : f32 to vector<16x1xf32>
      %30 = arith.divf %28, %29 : vector<16x1xf32>
      %31 = vector.broadcast %30 : vector<16x1xf32> to vector<16x32xf32>
      %32 = arith.subf %26, %31 : vector<16x32xf32>
      %33 = arith.mulf %32, %32 : vector<16x32xf32>
      %cst_24 = arith.constant dense<0.000000e+00> : vector<16xf32>
      %34 = vector.multi_reduction <add>, %33, %cst_24 [1] : vector<16x32xf32> to vector<16xf32>
      %35 = vector.shape_cast %34 : vector<16xf32> to vector<16x1xf32>
      %cst_25 = arith.constant 3.200000e+01 : f32
      %36 = vector.broadcast %cst_25 : f32 to vector<16x1xf32>
      %37 = arith.divf %35, %36 : vector<16x1xf32>
      %cst_26 = arith.constant 9.99999974E-6 : f32
      %38 = vector.broadcast %cst_26 : f32 to vector<16x1xf32>
      %39 = arith.addf %37, %38 : vector<16x1xf32>
      %40 = math.rsqrt %39 : vector<16x1xf32>
      %41 = vector.broadcast %40 : vector<16x1xf32> to vector<16x32xf32>
      %42 = arith.mulf %32, %41 : vector<16x32xf32>
      %c0_27 = arith.constant 0 : index
      %c0_28 = arith.constant 0 : index
      %43 = vector.load %arg7[%c0_27, %c0_28] : memref<1x32xf32, #tpu.memory_space<vmem>>, vector<1x32xf32>
      %44 = vector.broadcast %43 : vector<1x32xf32> to vector<16x32xf32>
      %45 = arith.mulf %42, %44 : vector<16x32xf32>
      %c0_29 = arith.constant 0 : index
      %c0_30 = arith.constant 0 : index
      %46 = vector.load %arg8[%c0_29, %c0_30] : memref<1x32xf32, #tpu.memory_space<vmem>>, vector<1x32xf32>
      %47 = vector.broadcast %46 : vector<1x32xf32> to vector<16x32xf32>
      %48 = arith.addf %45, %47 : vector<16x32xf32>
      %c0_31 = arith.constant 0 : index
      %c0_32 = arith.constant 0 : index
      %49 = vector.load %arg9[%c0_31, %c0_32] : memref<16x32xf32, #tpu.memory_space<vmem>>, vector<16x32xf32>
      tpu.vector_store %arg9[%c0_31, %c0_32], %48 {strides = array<i32>} : memref<16x32xf32, #tpu.memory_space<vmem>>, vector<16x32xf32>,
    } else {
    }
    return
  }
  func.func @transform_0(%arg0: i32, %arg1: i32) -> (i32, i32) {
    %c0_i32 = arith.constant 0 : i32
    %c0_i32_0 = arith.constant 0 : i32
    return %arg0, %c0_i32 : i32, i32
  }
  func.func @transform_1(%arg0: i32, %arg1: i32) -> (i32, i32) {
    %c0_i32 = arith.constant 0 : i32
    %c0_i32_0 = arith.constant 0 : i32
    return %c0_i32, %arg1 : i32, i32
  }
  func.func @transform_2(%arg0: i32, %arg1: i32) -> (i32, i32) {
    %c0_i32 = arith.constant 0 : i32
    %c0_i32_0 = arith.constant 0 : i32
    return %c0_i32, %arg1 : i32, i32
  }
  func.func @transform_3(%arg0: i32, %arg1: i32) -> (i32, i32) {
    %c0_i32 = arith.constant 0 : i32
    %c0_i32_0 = arith.constant 0 : i32
    return %arg1, %c0_i32 : i32, i32
  }
  func.func @transform_4(%arg0: i32, %arg1: i32) -> (i32, i32) {
    %c0_i32 = arith.constant 0 : i32
    %c0_i32_0 = arith.constant 0 : i32
    %c0_i32_1 = arith.constant 0 : i32
    return %c0_i32, %c0_i32_0 : i32, i32
  }
  func.func @transform_5(%arg0: i32, %arg1: i32) -> (i32, i32) {
    %c0_i32 = arith.constant 0 : i32
    %c0_i32_0 = arith.constant 0 : i32
    %c0_i32_1 = arith.constant 0 : i32
    return %c0_i32, %c0_i32_0 : i32, i32
  }
  func.func @transform_6(%arg0: i32, %arg1: i32) -> (i32, i32) {
    %c0_i32 = arith.constant 0 : i32
    %c0_i32_0 = arith.constant 0 : i32
    %c0_i32_1 = arith.constant 0 : i32
    return %c0_i32, %c0_i32_0 : i32, i32
  }
  func.func @transform_7(%arg0: i32, %arg1: i32) -> (i32, i32) {
    %c0_i32 = arith.constant 0 : i32
    %c0_i32_0 = arith.constant 0 : i32
    return %arg0, %c0_i32 : i32, i32
  }
}

module attributes {stable_mosaic.version = 11 : i64} {
  func.func @_predict_ce_kernel(%arg0: i32, %arg1: memref<16x32xbf16, #tpu.memory_space<vmem>>, %arg2: memref<32x1024xbf16, #tpu.memory_space<vmem>>, %arg3: memref<1x1024xf32, #tpu.memory_space<vmem>>, %arg4: memref<16x1xi32, #tpu.memory_space<vmem>>, %arg5: memref<16x1xf32, #tpu.memory_space<vmem>>, %arg6: memref<1x1xf32, #tpu.memory_space<vmem>>) attributes {dimension_semantics = [#tpu.dimension_semantics<arbitrary>], iteration_bounds = array<i64: 1>, scalar_prefetch = 0 : i64, scratch_operands = 0 : i64, tpu.core_type = #tpu.core_type<tc>, window_params = [{transform_indices = @transform_0, window_bounds = array<i64: 16, 32>}, {pipeline_mode = #tpu.pipeline_mode<synchronous>, transform_indices = @transform_1, window_bounds = array<i64: 32, 1024>}, {pipeline_mode = #tpu.pipeline_mode<synchronous>, transform_indices = @transform_2, window_bounds = array<i64: 1, 1024>}, {transform_indices = @transform_3, window_bounds = array<i64: 16, 1>}, {transform_indices = @transform_4, window_bounds = array<i64: 16, 1>}, {pipeline_mode = #tpu.pipeline_mode<synchronous>, transform_indices = @transform_5, window_bounds = array<i64: 1, 1>}]} {
    %c0_i32 = arith.constant 0 : i32
    %0 = arith.cmpi eq, %arg0, %c0_i32 : i32
    %1 = arith.extui %0 : i1 to i32
    %c0_i32_0 = arith.constant 0 : i32
    %2 = arith.cmpi ne, %1, %c0_i32_0 : i32
    scf.if %2 {
      %cst_18 = arith.constant 0.000000e+00 : f32
      %38 = vector.broadcast %cst_18 : f32 to vector<1x1xf32>
      %c0_19 = arith.constant 0 : index
      %c0_20 = arith.constant 0 : index
      %39 = vector.load %arg6[%c0_19, %c0_20] : memref<1x1xf32, #tpu.memory_space<vmem>>, vector<1x1xf32>
      tpu.vector_store %arg6[%c0_19, %c0_20], %38 {strides = array<i32>} : memref<1x1xf32, #tpu.memory_space<vmem>>, vector<1x1xf32>,
    } else {
    }
    %c0 = arith.constant 0 : index
    %c0_1 = arith.constant 0 : index
    %3 = vector.load %arg1[%c0, %c0_1] : memref<16x32xbf16, #tpu.memory_space<vmem>>, vector<16x32xbf16>
    %c0_2 = arith.constant 0 : index
    %c0_3 = arith.constant 0 : index
    %4 = vector.load %arg2[%c0_2, %c0_3] : memref<32x1024xbf16, #tpu.memory_space<vmem>>, vector<32x1024xbf16>
    %cst = arith.constant dense<0.000000e+00> : vector<16x1024xf32>
    %5 = tpu.matmul %3, %4, %cst {dimension_numbers = #tpu.dot_dimension_numbers<[1], [0], [0], [1], [0, 0, 1, 1], [], []>} : vector<16x32xbf16>, vector<32x1024xbf16>, vector<16x1024xf32> -> vector<16x1024xf32>
    %c0_4 = arith.constant 0 : index
    %c0_5 = arith.constant 0 : index
    %6 = vector.load %arg3[%c0_4, %c0_5] : memref<1x1024xf32, #tpu.memory_space<vmem>>, vector<1x1024xf32>
    %7 = vector.broadcast %6 : vector<1x1024xf32> to vector<16x1024xf32>
    %8 = arith.addf %5, %7 : vector<16x1024xf32>
    %cst_6 = arith.constant dense<0xFF800000> : vector<16xf32>
    %9 = vector.multi_reduction <maximumf>, %8, %cst_6 [1] : vector<16x1024xf32> to vector<16xf32>
    %10 = vector.shape_cast %9 : vector<16xf32> to vector<16x1xf32>
    %11 = vector.broadcast %10 : vector<16x1xf32> to vector<16x1024xf32>
    %12 = arith.subf %8, %11 : vector<16x1024xf32>
    %13 = math.exp %12 : vector<16x1024xf32>
    %cst_7 = arith.constant dense<0.000000e+00> : vector<16xf32>
    %14 = vector.multi_reduction <add>, %13, %cst_7 [1] : vector<16x1024xf32> to vector<16xf32>
    %15 = vector.shape_cast %14 : vector<16xf32> to vector<16x1xf32>
    %16 = math.log %15 : vector<16x1xf32>
    %17 = arith.addf %16, %10 : vector<16x1xf32>
    %18 = tpu.iota {dimensions = array<i32: 1>} : vector<16x1024xi32>
    %c0_8 = arith.constant 0 : index
    %c0_9 = arith.constant 0 : index
    %19 = vector.load %arg4[%c0_8, %c0_9] : memref<16x1xi32, #tpu.memory_space<vmem>>, vector<16x1xi32>
    %20 = vector.broadcast %19 : vector<16x1xi32> to vector<16x1024xi32>
    %21 = arith.cmpi eq, %18, %20 : vector<16x1024xi32>
    %22 = arith.extui %21 : vector<16x1024xi1> to vector<16x1024xi32>
    %23 = arith.sitofp %22 : vector<16x1024xi32> to vector<16x1024xf32>
    %24 = arith.mulf %8, %23 : vector<16x1024xf32>
    %cst_10 = arith.constant dense<0.000000e+00> : vector<16xf32>
    %25 = vector.multi_reduction <add>, %24, %cst_10 [1] : vector<16x1024xf32> to vector<16xf32>
    %26 = vector.shape_cast %25 : vector<16xf32> to vector<16x1xf32>
    %c0_11 = arith.constant 0 : index
    %c0_12 = arith.constant 0 : index
    %27 = vector.load %arg6[%c0_11, %c0_12] : memref<1x1xf32, #tpu.memory_space<vmem>>, vector<1x1xf32>
    %28 = arith.subf %17, %26 : vector<16x1xf32>
    %c0_13 = arith.constant 0 : index
    %c0_14 = arith.constant 0 : index
    %29 = vector.load %arg5[%c0_13, %c0_14] : memref<16x1xf32, #tpu.memory_space<vmem>>, vector<16x1xf32>
    %30 = arith.mulf %28, %29 : vector<16x1xf32>
    %31 = vector.shape_cast %30 : vector<16x1xf32> to vector<1x16x1xf32>
    %cst_15 = arith.constant dense<0.000000e+00> : vector<1xf32>
    %32 = vector.multi_reduction <add>, %31, %cst_15 [1, 2] : vector<1x16x1xf32> to vector<1xf32>
    %33 = vector.shape_cast %32 : vector<1xf32> to vector<1x1x1xf32>
    %34 = vector.extract %33[0, 0, 0] : f32 from vector<1x1x1xf32>
    %35 = vector.broadcast %34 : f32 to vector<1x1xf32>
    %36 = arith.addf %27, %35 : vector<1x1xf32>
    %c0_16 = arith.constant 0 : index
    %c0_17 = arith.constant 0 : index
    %37 = vector.load %arg6[%c0_16, %c0_17] : memref<1x1xf32, #tpu.memory_space<vmem>>, vector<1x1xf32>
    tpu.vector_store %arg6[%c0_16, %c0_17], %36 {strides = array<i32>} : memref<1x1xf32, #tpu.memory_space<vmem>>, vector<1x1xf32>,
    return
  }
  func.func @transform_0(%arg0: i32) -> (i32, i32) {
    %c0_i32 = arith.constant 0 : i32
    %c0_i32_0 = arith.constant 0 : i32
    return %arg0, %c0_i32 : i32, i32
  }
  func.func @transform_1(%arg0: i32) -> (i32, i32) {
    %c0_i32 = arith.constant 0 : i32
    %c0_i32_0 = arith.constant 0 : i32
    %c0_i32_1 = arith.constant 0 : i32
    return %c0_i32, %c0_i32_0 : i32, i32
  }
  func.func @transform_2(%arg0: i32) -> (i32, i32) {
    %c0_i32 = arith.constant 0 : i32
    %c0_i32_0 = arith.constant 0 : i32
    %c0_i32_1 = arith.constant 0 : i32
    return %c0_i32, %c0_i32_0 : i32, i32
  }
  func.func @transform_3(%arg0: i32) -> (i32, i32) {
    %c0_i32 = arith.constant 0 : i32
    %c0_i32_0 = arith.constant 0 : i32
    return %arg0, %c0_i32 : i32, i32
  }
  func.func @transform_4(%arg0: i32) -> (i32, i32) {
    %c0_i32 = arith.constant 0 : i32
    %c0_i32_0 = arith.constant 0 : i32
    return %arg0, %c0_i32 : i32, i32
  }
  func.func @transform_5(%arg0: i32) -> (i32, i32) {
    %c0_i32 = arith.constant 0 : i32
    %c0_i32_0 = arith.constant 0 : i32
    %c0_i32_1 = arith.constant 0 : i32
    return %c0_i32, %c0_i32_0 : i32, i32
  }
}

module attributes {stable_mosaic.version = 11 : i64} {
  func.func @_flash_kernel(%arg0: i32, %arg1: i32, %arg2: i32, %arg3: memref<1x4x8x8xbf16, #tpu.memory_space<vmem>>, %arg4: memref<1x4x8x8xbf16, #tpu.memory_space<vmem>>, %arg5: memref<1x4x8x8xbf16, #tpu.memory_space<vmem>>, %arg6: memref<1x1x8xf32, #tpu.memory_space<vmem>>, %arg7: memref<1x4x8x8xbf16, #tpu.memory_space<vmem>>, %arg8: memref<4x8x1xf32, #tpu.memory_space<vmem>>, %arg9: memref<4x8x1xf32, #tpu.memory_space<vmem>>, %arg10: memref<4x8x8xf32, #tpu.memory_space<vmem>>) attributes {dimension_semantics = [#tpu.dimension_semantics<parallel>, #tpu.dimension_semantics<parallel>, #tpu.dimension_semantics<arbitrary>], iteration_bounds = array<i64: 2, 1, 1>, scalar_prefetch = 0 : i64, scratch_operands = 3 : i64, tpu.core_type = #tpu.core_type<tc>, window_params = [{transform_indices = @transform_0, window_bounds = array<i64: 1, 4, 8, 8>}, {transform_indices = @transform_1, window_bounds = array<i64: 1, 4, 8, 8>}, {transform_indices = @transform_2, window_bounds = array<i64: 1, 4, 8, 8>}, {transform_indices = @transform_3, window_bounds = array<i64: 1, 1, 8>}, {transform_indices = @transform_4, window_bounds = array<i64: 1, 4, 8, 8>}]} {
    %c0_i32 = arith.constant 0 : i32
    %0 = arith.cmpi eq, %arg2, %c0_i32 : i32
    %1 = arith.extui %0 : i1 to i32
    %c0_i32_0 = arith.constant 0 : i32
    %2 = arith.cmpi ne, %1, %c0_i32_0 : i32
    scf.if %2 {
      %cst_40 = arith.constant 0xFF800000 : f32
      %52 = vector.broadcast %cst_40 : f32 to vector<4x8x1xf32>
      %c0_41 = arith.constant 0 : index
      %c0_42 = arith.constant 0 : index
      %c0_43 = arith.constant 0 : index
      %53 = vector.load %arg8[%c0_41, %c0_42, %c0_43] : memref<4x8x1xf32, #tpu.memory_space<vmem>>, vector<4x8x1xf32>
      tpu.vector_store %arg8[%c0_41, %c0_42, %c0_43], %52 {strides = array<i32>} : memref<4x8x1xf32, #tpu.memory_space<vmem>>, vector<4x8x1xf32>,
      %cst_44 = arith.constant 0.000000e+00 : f32
      %54 = vector.broadcast %cst_44 : f32 to vector<4x8x1xf32>
      %c0_45 = arith.constant 0 : index
      %c0_46 = arith.constant 0 : index
      %c0_47 = arith.constant 0 : index
      %55 = vector.load %arg9[%c0_45, %c0_46, %c0_47] : memref<4x8x1xf32, #tpu.memory_space<vmem>>, vector<4x8x1xf32>
      tpu.vector_store %arg9[%c0_45, %c0_46, %c0_47], %54 {strides = array<i32>} : memref<4x8x1xf32, #tpu.memory_space<vmem>>, vector<4x8x1xf32>,
      %cst_48 = arith.constant 0.000000e+00 : f32
      %56 = vector.broadcast %cst_48 : f32 to vector<4x8x8xf32>
      %c0_49 = arith.constant 0 : index
      %c0_50 = arith.constant 0 : index
      %c0_51 = arith.constant 0 : index
      %57 = vector.load %arg10[%c0_49, %c0_50, %c0_51] : memref<4x8x8xf32, #tpu.memory_space<vmem>>, vector<4x8x8xf32>
      tpu.vector_store %arg10[%c0_49, %c0_50, %c0_51], %56 {strides = array<i32>} : memref<4x8x8xf32, #tpu.memory_space<vmem>>, vector<4x8x8xf32>,
    } else {
    }
    %c0 = arith.constant 0 : index
    %c0_1 = arith.constant 0 : index
    %c0_2 = arith.constant 0 : index
    %c0_3 = arith.constant 0 : index
    %3 = vector.load %arg3[%c0, %c0_1, %c0_2, %c0_3] : memref<1x4x8x8xbf16, #tpu.memory_space<vmem>>, vector<1x4x8x8xbf16>
    %4 = vector.shape_cast %3 : vector<1x4x8x8xbf16> to vector<4x8x8xbf16>
    %c0_4 = arith.constant 0 : index
    %c0_5 = arith.constant 0 : index
    %c0_6 = arith.constant 0 : index
    %c0_7 = arith.constant 0 : index
    %5 = vector.load %arg4[%c0_4, %c0_5, %c0_6, %c0_7] : memref<1x4x8x8xbf16, #tpu.memory_space<vmem>>, vector<1x4x8x8xbf16>
    %6 = vector.shape_cast %5 : vector<1x4x8x8xbf16> to vector<4x8x8xbf16>
    "tpu.trace_start"() <{level = 10 : i32, message = "hqd,hkd->hqk"}> : () -> ()
    %cst = arith.constant dense<0.000000e+00> : vector<4x8x8xf32>
    %7 = tpu.matmul %4, %6, %cst {dimension_numbers = #tpu.dot_dimension_numbers<[2], [2], [1], [1], [0, 0, 0, 1, 1, 1], [0], [0]>} : vector<4x8x8xbf16>, vector<4x8x8xbf16>, vector<4x8x8xf32> -> vector<4x8x8xf32>
    "tpu.trace_stop"() : () -> ()
    %c0_8 = arith.constant 0 : index
    %c0_9 = arith.constant 0 : index
    %c0_10 = arith.constant 0 : index
    %8 = vector.load %arg6[%c0_8, %c0_9, %c0_10] : memref<1x1x8xf32, #tpu.memory_space<vmem>>, vector<1x1x8xf32>
    %9 = vector.shape_cast %8 : vector<1x1x8xf32> to vector<1x8xf32>
    %10 = vector.shape_cast %9 : vector<1x8xf32> to vector<1x1x8xf32>
    %11 = vector.broadcast %10 : vector<1x1x8xf32> to vector<4x8x8xf32>
    %12 = arith.addf %7, %11 : vector<4x8x8xf32>
    %13 = tpu.iota {dimensions = array<i32: 1>} : vector<4x8x8xi32>
    %c8_i32 = arith.constant 8 : i32
    %14 = arith.muli %arg1, %c8_i32 : i32
    %15 = vector.broadcast %14 : i32 to vector<4x8x8xi32>
    %16 = arith.addi %13, %15 : vector<4x8x8xi32>
    %17 = tpu.iota {dimensions = array<i32: 2>} : vector<4x8x8xi32>
    %c8_i32_11 = arith.constant 8 : i32
    %18 = arith.muli %arg2, %c8_i32_11 : i32
    %19 = vector.broadcast %18 : i32 to vector<4x8x8xi32>
    %20 = arith.addi %17, %19 : vector<4x8x8xi32>
    %21 = arith.cmpi sgt, %20, %16 : vector<4x8x8xi32>
    %cst_12 = arith.constant -1.000000e+30 : f32
    %22 = vector.broadcast %cst_12 : f32 to vector<4x8x8xf32>
    %23 = arith.select %21, %22, %12 : vector<4x8x8xi1>, vector<4x8x8xf32>
    %c0_13 = arith.constant 0 : index
    %c0_14 = arith.constant 0 : index
    %c0_15 = arith.constant 0 : index
    %24 = vector.load %arg8[%c0_13, %c0_14, %c0_15] : memref<4x8x1xf32, #tpu.memory_space<vmem>>, vector<4x8x1xf32>
    %cst_16 = arith.constant dense<0xFF800000> : vector<4x8xf32>
    %25 = vector.multi_reduction <maximumf>, %23, %cst_16 [2] : vector<4x8x8xf32> to vector<4x8xf32>
    %26 = vector.shape_cast %25 : vector<4x8xf32> to vector<4x8x1xf32>
    %27 = arith.maximumf %24, %26 : vector<4x8x1xf32>
    %28 = arith.subf %24, %27 : vector<4x8x1xf32>
    %29 = math.exp %28 : vector<4x8x1xf32>
    %30 = vector.broadcast %27 : vector<4x8x1xf32> to vector<4x8x8xf32>
    %31 = arith.subf %23, %30 : vector<4x8x8xf32>
    %32 = math.exp %31 : vector<4x8x8xf32>
    %c0_17 = arith.constant 0 : index
    %c0_18 = arith.constant 0 : index
    %c0_19 = arith.constant 0 : index
    %33 = vector.load %arg9[%c0_17, %c0_18, %c0_19] : memref<4x8x1xf32, #tpu.memory_space<vmem>>, vector<4x8x1xf32>
    %34 = arith.mulf %29, %33 : vector<4x8x1xf32>
    %cst_20 = arith.constant dense<0.000000e+00> : vector<4x8xf32>
    %35 = vector.multi_reduction <add>, %32, %cst_20 [2] : vector<4x8x8xf32> to vector<4x8xf32>
    %36 = vector.shape_cast %35 : vector<4x8xf32> to vector<4x8x1xf32>
    %37 = arith.addf %34, %36 : vector<4x8x1xf32>
    %c0_21 = arith.constant 0 : index
    %c0_22 = arith.constant 0 : index
    %c0_23 = arith.constant 0 : index
    %38 = vector.load %arg9[%c0_21, %c0_22, %c0_23] : memref<4x8x1xf32, #tpu.memory_space<vmem>>, vector<4x8x1xf32>
    tpu.vector_store %arg9[%c0_21, %c0_22, %c0_23], %37 {strides = array<i32>} : memref<4x8x1xf32, #tpu.memory_space<vmem>>, vector<4x8x1xf32>,
    %c0_24 = arith.constant 0 : index
    %c0_25 = arith.constant 0 : index
    %c0_26 = arith.constant 0 : index
    %39 = vector.load %arg10[%c0_24, %c0_25, %c0_26] : memref<4x8x8xf32, #tpu.memory_space<vmem>>, vector<4x8x8xf32>
    %40 = vector.broadcast %29 : vector<4x8x1xf32> to vector<4x8x8xf32>
    %41 = arith.mulf %40, %39 : vector<4x8x8xf32>
    %42 = arith.truncf %32 : vector<4x8x8xf32> to vector<4x8x8xbf16>
    %c0_27 = arith.constant 0 : index
    %c0_28 = arith.constant 0 : index
    %c0_29 = arith.constant 0 : index
    %c0_30 = arith.constant 0 : index
    %43 = vector.load %arg5[%c0_27, %c0_28, %c0_29, %c0_30] : memref<1x4x8x8xbf16, #tpu.memory_space<vmem>>, vector<1x4x8x8xbf16>
    %44 = vector.shape_cast %43 : vector<1x4x8x8xbf16> to vector<4x8x8xbf16>
    "tpu.trace_start"() <{level = 10 : i32, message = "hqk,hkd->hqd"}> : () -> ()
    %cst_31 = arith.constant dense<0.000000e+00> : vector<4x8x8xf32>
    %45 = tpu.matmul %42, %44, %cst_31 {dimension_numbers = #tpu.dot_dimension_numbers<[2], [1], [1], [2], [0, 0, 0, 1, 1, 2], [0], [0]>} : vector<4x8x8xbf16>, vector<4x8x8xbf16>, vector<4x8x8xf32> -> vector<4x8x8xf32>
    "tpu.trace_stop"() : () -> ()
    %46 = arith.addf %41, %45 : vector<4x8x8xf32>
    %c0_32 = arith.constant 0 : index
    %c0_33 = arith.constant 0 : index
    %c0_34 = arith.constant 0 : index
    %47 = vector.load %arg10[%c0_32, %c0_33, %c0_34] : memref<4x8x8xf32, #tpu.memory_space<vmem>>, vector<4x8x8xf32>
    tpu.vector_store %arg10[%c0_32, %c0_33, %c0_34], %46 {strides = array<i32>} : memref<4x8x8xf32, #tpu.memory_space<vmem>>, vector<4x8x8xf32>,
    %c0_35 = arith.constant 0 : index
    %c0_36 = arith.constant 0 : index
    %c0_37 = arith.constant 0 : index
    %48 = vector.load %arg8[%c0_35, %c0_36, %c0_37] : memref<4x8x1xf32, #tpu.memory_space<vmem>>, vector<4x8x1xf32>
    tpu.vector_store %arg8[%c0_35, %c0_36, %c0_37], %27 {strides = array<i32>} : memref<4x8x1xf32, #tpu.memory_space<vmem>>, vector<4x8x1xf32>,
    %c0_i32_38 = arith.constant 0 : i32
    %49 = arith.cmpi eq, %arg2, %c0_i32_38 : i32
    %50 = arith.extui %49 : i1 to i32
    %c0_i32_39 = arith.constant 0 : i32
    %51 = arith.cmpi ne, %50, %c0_i32_39 : i32
    scf.if %51 {
      %c0_40 = arith.constant 0 : index
      %c0_41 = arith.constant 0 : index
      %c0_42 = arith.constant 0 : index
      %52 = vector.load %arg10[%c0_40, %c0_41, %c0_42] : memref<4x8x8xf32, #tpu.memory_space<vmem>>, vector<4x8x8xf32>
      %c0_43 = arith.constant 0 : index
      %c0_44 = arith.constant 0 : index
      %c0_45 = arith.constant 0 : index
      %53 = vector.load %arg9[%c0_43, %c0_44, %c0_45] : memref<4x8x1xf32, #tpu.memory_space<vmem>>, vector<4x8x1xf32>
      %54 = tpu.reciprocal %53 {approx = true} : vector<4x8x1xf32> -> vector<4x8x1xf32>
      %55 = vector.broadcast %54 : vector<4x8x1xf32> to vector<4x8x8xf32>
      %56 = arith.mulf %52, %55 : vector<4x8x8xf32>
      %57 = arith.truncf %56 : vector<4x8x8xf32> to vector<4x8x8xbf16>
      %c0_46 = arith.constant 0 : index
      %c0_47 = arith.constant 0 : index
      %c0_48 = arith.constant 0 : index
      %c0_49 = arith.constant 0 : index
      %58 = vector.load %arg7[%c0_46, %c0_47, %c0_48, %c0_49] : memref<1x4x8x8xbf16, #tpu.memory_space<vmem>>, vector<1x4x8x8xbf16>
      %59 = vector.shape_cast %58 : vector<1x4x8x8xbf16> to vector<4x8x8xbf16>
      %60 = vector.shape_cast %57 : vector<4x8x8xbf16> to vector<1x4x8x8xbf16>
      tpu.vector_store %arg7[%c0_46, %c0_47, %c0_48, %c0_49], %60 {strides = array<i32>} : memref<1x4x8x8xbf16, #tpu.memory_space<vmem>>, vector<1x4x8x8xbf16>,
    } else {
    }
    return
  }
  func.func @transform_0(%arg0: i32, %arg1: i32, %arg2: i32) -> (i32, i32, i32, i32) {
    %c0_i32 = arith.constant 0 : i32
    %c0_i32_0 = arith.constant 0 : i32
    %c0_i32_1 = arith.constant 0 : i32
    return %arg0, %c0_i32, %arg1, %c0_i32_0 : i32, i32, i32, i32
  }
  func.func @transform_1(%arg0: i32, %arg1: i32, %arg2: i32) -> (i32, i32, i32, i32) {
    %c0_i32 = arith.constant 0 : i32
    %c0_i32_0 = arith.constant 0 : i32
    %c0_i32_1 = arith.constant 0 : i32
    return %arg0, %c0_i32, %arg2, %c0_i32_0 : i32, i32, i32, i32
  }
  func.func @transform_2(%arg0: i32, %arg1: i32, %arg2: i32) -> (i32, i32, i32, i32) {
    %c0_i32 = arith.constant 0 : i32
    %c0_i32_0 = arith.constant 0 : i32
    %c0_i32_1 = arith.constant 0 : i32
    return %arg0, %c0_i32, %arg2, %c0_i32_0 : i32, i32, i32, i32
  }
  func.func @transform_3(%arg0: i32, %arg1: i32, %arg2: i32) -> (i32, i32, i32) {
    %c0_i32 = arith.constant 0 : i32
    %c0_i32_0 = arith.constant 0 : i32
    return %arg0, %c0_i32, %arg2 : i32, i32, i32
  }
  func.func @transform_4(%arg0: i32, %arg1: i32, %arg2: i32) -> (i32, i32, i32, i32) {
    %c0_i32 = arith.constant 0 : i32
    %c0_i32_0 = arith.constant 0 : i32
    %c0_i32_1 = arith.constant 0 : i32
    return %arg0, %c0_i32, %arg1, %c0_i32_0 : i32, i32, i32, i32
  }
}

module attributes {stable_mosaic.version = 11 : i64} {
  func.func @_predict_ce_kernel(%arg0: i32, %arg1: memref<16x32xbf16, #tpu.memory_space<vmem>>, %arg2: memref<32x1025xbf16, #tpu.memory_space<vmem>>, %arg3: memref<1x1025xf32, #tpu.memory_space<vmem>>, %arg4: memref<16x1xi32, #tpu.memory_space<vmem>>, %arg5: memref<16x1xf32, #tpu.memory_space<vmem>>, %arg6: memref<1x1xf32, #tpu.memory_space<vmem>>) attributes {dimension_semantics = [#tpu.dimension_semantics<arbitrary>], iteration_bounds = array<i64: 1>, scalar_prefetch = 0 : i64, scratch_operands = 0 : i64, tpu.core_type = #tpu.core_type<tc>, window_params = [{transform_indices = @transform_0, window_bounds = array<i64: 16, 32>}, {pipeline_mode = #tpu.pipeline_mode<synchronous>, transform_indices = @transform_1, window_bounds = array<i64: 32, 1025>}, {pipeline_mode = #tpu.pipeline_mode<synchronous>, transform_indices = @transform_2, window_bounds = array<i64: 1, 1025>}, {transform_indices = @transform_3, window_bounds = array<i64: 16, 1>}, {transform_indices = @transform_4, window_bounds = array<i64: 16, 1>}, {pipeline_mode = #tpu.pipeline_mode<synchronous>, transform_indices = @transform_5, window_bounds = array<i64: 1, 1>}]} {
    %c0_i32 = arith.constant 0 : i32
    %0 = arith.cmpi eq, %arg0, %c0_i32 : i32
    %1 = arith.extui %0 : i1 to i32
    %c0_i32_0 = arith.constant 0 : i32
    %2 = arith.cmpi ne, %1, %c0_i32_0 : i32
    scf.if %2 {
      %cst_18 = arith.constant 0.000000e+00 : f32
      %38 = vector.broadcast %cst_18 : f32 to vector<1x1xf32>
      %c0_19 = arith.constant 0 : index
      %c0_20 = arith.constant 0 : index
      %39 = vector.load %arg6[%c0_19, %c0_20] : memref<1x1xf32, #tpu.memory_space<vmem>>, vector<1x1xf32>
      tpu.vector_store %arg6[%c0_19, %c0_20], %38 {strides = array<i32>} : memref<1x1xf32, #tpu.memory_space<vmem>>, vector<1x1xf32>,
    } else {
    }
    %c0 = arith.constant 0 : index
    %c0_1 = arith.constant 0 : index
    %3 = vector.load %arg1[%c0, %c0_1] : memref<16x32xbf16, #tpu.memory_space<vmem>>, vector<16x32xbf16>
    %c0_2 = arith.constant 0 : index
    %c0_3 = arith.constant 0 : index
    %4 = vector.load %arg2[%c0_2, %c0_3] : memref<32x1025xbf16, #tpu.memory_space<vmem>>, vector<32x1025xbf16>
    %cst = arith.constant dense<0.000000e+00> : vector<16x1025xf32>
    %5 = tpu.matmul %3, %4, %cst {dimension_numbers = #tpu.dot_dimension_numbers<[1], [0], [0], [1], [0, 0, 1, 1], [], []>} : vector<16x32xbf16>, vector<32x1025xbf16>, vector<16x1025xf32> -> vector<16x1025xf32>
    %c0_4 = arith.constant 0 : index
    %c0_5 = arith.constant 0 : index
    %6 = vector.load %arg3[%c0_4, %c0_5] : memref<1x1025xf32, #tpu.memory_space<vmem>>, vector<1x1025xf32>
    %7 = vector.broadcast %6 : vector<1x1025xf32> to vector<16x1025xf32>
    %8 = arith.addf %5, %7 : vector<16x1025xf32>
    %cst_6 = arith.constant dense<0xFF800000> : vector<16xf32>
    %9 = vector.multi_reduction <maximumf>, %8, %cst_6 [1] : vector<16x1025xf32> to vector<16xf32>
    %10 = vector.shape_cast %9 : vector<16xf32> to vector<16x1xf32>
    %11 = vector.broadcast %10 : vector<16x1xf32> to vector<16x1025xf32>
    %12 = arith.subf %8, %11 : vector<16x1025xf32>
    %13 = math.exp %12 : vector<16x1025xf32>
    %cst_7 = arith.constant dense<0.000000e+00> : vector<16xf32>
    %14 = vector.multi_reduction <add>, %13, %cst_7 [1] : vector<16x1025xf32> to vector<16xf32>
    %15 = vector.shape_cast %14 : vector<16xf32> to vector<16x1xf32>
    %16 = math.log %15 : vector<16x1xf32>
    %17 = arith.addf %16, %10 : vector<16x1xf32>
    %18 = tpu.iota {dimensions = array<i32: 1>} : vector<16x1025xi32>
    %c0_8 = arith.constant 0 : index
    %c0_9 = arith.constant 0 : index
    %19 = vector.load %arg4[%c0_8, %c0_9] : memref<16x1xi32, #tpu.memory_space<vmem>>, vector<16x1xi32>
    %20 = vector.broadcast %19 : vector<16x1xi32> to vector<16x1025xi32>
    %21 = arith.cmpi eq, %18, %20 : vector<16x1025xi32>
    %22 = arith.extui %21 : vector<16x1025xi1> to vector<16x1025xi32>
    %23 = arith.sitofp %22 : vector<16x1025xi32> to vector<16x1025xf32>
    %24 = arith.mulf %8, %23 : vector<16x1025xf32>
    %cst_10 = arith.constant dense<0.000000e+00> : vector<16xf32>
    %25 = vector.multi_reduction <add>, %24, %cst_10 [1] : vector<16x1025xf32> to vector<16xf32>
    %26 = vector.shape_cast %25 : vector<16xf32> to vector<16x1xf32>
    %c0_11 = arith.constant 0 : index
    %c0_12 = arith.constant 0 : index
    %27 = vector.load %arg6[%c0_11, %c0_12] : memref<1x1xf32, #tpu.memory_space<vmem>>, vector<1x1xf32>
    %28 = arith.subf %17, %26 : vector<16x1xf32>
    %c0_13 = arith.constant 0 : index
    %c0_14 = arith.constant 0 : index
    %29 = vector.load %arg5[%c0_13, %c0_14] : memref<16x1xf32, #tpu.memory_space<vmem>>, vector<16x1xf32>
    %30 = arith.mulf %28, %29 : vector<16x1xf32>
    %31 = vector.shape_cast %30 : vector<16x1xf32> to vector<1x16x1xf32>
    %cst_15 = arith.constant dense<0.000000e+00> : vector<1xf32>
    %32 = vector.multi_reduction <add>, %31, %cst_15 [1, 2] : vector<1x16x1xf32> to vector<1xf32>
    %33 = vector.shape_cast %32 : vector<1xf32> to vector<1x1x1xf32>
    %34 = vector.extract %33[0, 0, 0] : f32 from vector<1x1x1xf32>
    %35 = vector.broadcast %34 : f32 to vector<1x1xf32>
    %36 = arith.addf %27, %35 : vector<1x1xf32>
    %c0_16 = arith.constant 0 : index
    %c0_17 = arith.constant 0 : index
    %37 = vector.load %arg6[%c0_16, %c0_17] : memref<1x1xf32, #tpu.memory_space<vmem>>, vector<1x1xf32>
    tpu.vector_store %arg6[%c0_16, %c0_17], %36 {strides = array<i32>} : memref<1x1xf32, #tpu.memory_space<vmem>>, vector<1x1xf32>,
    return
  }
  func.func @transform_0(%arg0: i32) -> (i32, i32) {
    %c0_i32 = arith.constant 0 : i32
    %c0_i32_0 = arith.constant 0 : i32
    return %arg0, %c0_i32 : i32, i32
  }
  func.func @transform_1(%arg0: i32) -> (i32, i32) {
    %c0_i32 = arith.constant 0 : i32
    %c0_i32_0 = arith.constant 0 : i32
    %c0_i32_1 = arith.constant 0 : i32
    return %c0_i32, %c0_i32_0 : i32, i32
  }
  func.func @transform_2(%arg0: i32) -> (i32, i32) {
    %c0_i32 = arith.constant 0 : i32
    %c0_i32_0 = arith.constant 0 : i32
    %c0_i32_1 = arith.constant 0 : i32
    return %c0_i32, %c0_i32_0 : i32, i32
  }
  func.func @transform_3(%arg0: i32) -> (i32, i32) {
    %c0_i32 = arith.constant 0 : i32
    %c0_i32_0 = arith.constant 0 : i32
    return %arg0, %c0_i32 : i32, i32
  }
  func.func @transform_4(%arg0: i32) -> (i32, i32) {
    %c0_i32 = arith.constant 0 : i32
    %c0_i32_0 = arith.constant 0 : i32
    return %arg0, %c0_i32 : i32, i32
  }
  func.func @transform_5(%arg0: i32) -> (i32, i32) {
    %c0_i32 = arith.constant 0 : i32
    %c0_i32_0 = arith.constant 0 : i32
    %c0_i32_1 = arith.constant 0 : i32
    return %c0_i32, %c0_i32_0 : i32, i32
  }
}

</mosaic_0001>

<bundles_post_ra>
// kernel: vallf_forward.51
= control target key start
LH: loop header
LB: loop body
LE: loop exit
PB: predicated region body
PF: predicated region fallthrough
CT: control target
= control target key end

     0   :  { %vm19_vm0 = vcmask 785408   ;;  %v151_v0 = vmov 0.0   ;;  %vm152_vm1 = vmmov 0   ;;  %vm47_vm2 = vcmask 261120   ;;  %s195_s1 = inlined_call_operand.vmem [shape: bf16[32,96], index: 1, kind: input, shape index: {}]   ;;  %s196_s0 = inlined_call_operand.vmem [shape: bf16[16,32], index: 0, kind: input, shape index: {}]   ;;  %s197_s2 = inlined_call_operand.vmem [shape: f32[1,96], index: 2, kind: input, shape index: {}]   ;;  %s198_s3 = inlined_call_operand.vmem [shape: bf16[16,96], index: 3, kind: output, shape index: {}]  }
   0x1   :  { %138 = vmatprep.subr.bf16.mxu0 %v151_v0  ;;  %v148_v1 = vld [vmem:[%s195_s1] sm:$0xff]   ;;  %142 = vmatprep.mubr.msk.bf16.mxu0 %vm152_vm1, %v151_v0  ;;  %20 = vst.msk [vmem:[#allocation2] sm:$0xff] %vm19_vm0, %v151_v0  ;;  %21 = vst.msk [vmem:[#allocation2 + $0x8] sm:$0xff] %vm19_vm0, %v151_v0  ;;  %v149_v2 = vld [vmem:[%s195_s1 + $0x8] sm:$0xff]   ;;  %vm119_vm3 = vcmask 781312  }
   0x2   :  { %139 = vmatpush3.bf16.msra.mxu0 %v148_v1  ;;  %v150_v3 = vld [vmem:[%s196_s0] sm:$0xff]  }
   0x3   :  { %140 = vmatprep.subr.bf16.mxu0 %v151_v0  ;;  %v130_v12 = vld [vmem:[%s197_s2] ss:$0 sm:$0xff] }
   0x6   :  { %141 = vmatpush3.bf16.msra.mxu0 %v149_v2 }
   0x8   :  { %v22_v4 = vld [vmem:[#allocation2] sm:$0xff]  ;;  %v23_v6 = vld [vmem:[#allocation2 + $0x8] sm:$0xff] }
   0x9   :  { %143 = vmatmul.mubr.msk.bf16.vlgmr.msra.gmra.mrb[0].mxu0 %vm47_vm2, %v150_v3 }
  0xdc   :  { %v85_v5 = vpop.f32.mrb[0].mxu0 }
  0xdd   :  { %v92_v7 = vadd.f32 %v85_v5, %v22_v4  ;;  %v144_v8 = vpop.f32.mrb[1].mxu0 }
  0xde   :  { %v88_v9 = vpop.f32.mrb[2].mxu0 }
  0xdf   :  { %95 = vst.msk [vmem:[#allocation2] sm:$0xff] %vm19_vm0, %v92_v7  ;;  %v93_v10 = vadd.f32 %v88_v9, %v23_v6  ;;  %v145_v11 = vpop.f32.mrb[3].mxu0 }
  0xe1   :  { %96 = vst.msk [vmem:[#allocation2 + $0x8] sm:$0xff] %vm19_vm0, %v93_v10 }
  0xe6   :  { %v100_v13 = vld [vmem:[#allocation2] sm:$0xff] }
  0xe7   :  { %v109_v14 = vadd.f32 %v130_v12, %v100_v13 }
  0xe8   :  { %v101_v15 = vld [vmem:[#allocation2 + $0x8] sm:$0xff] }
  0xe9   :  { %v133_v16 = vpack.c.bf16 %v109_v14, %v109_v14  ;;  %v110_v17 = vadd.f32 %v130_v12, %v101_v15 }
  0xeb   :  { %120 = vst.msk [vmem:[%s198_s3] sm:$0xf] %vm119_vm3, %v133_v16  ;;  %v134_v18 = vpack.c.bf16 %v110_v17, %v110_v17 }
  0xed   :  { %121 = vst.msk [vmem:[%s198_s3 + $0x4] sm:$0xf] %vm119_vm3, %v134_v18 }

// kernel: vallf_forward.53
= control target key start
LH: loop header
LB: loop body
LE: loop exit
PB: predicated region body
PF: predicated region fallthrough
CT: control target
= control target key end

     0   :  { %vm28_vm0 = vcmask 261120   ;;  %v201_v0 = vmov 0.0   ;;  %vm202_vm1 = vmmov 0   ;;  %s279_s1 = inlined_call_operand.vmem [shape: bf16[32,32], index: 1, kind: input, shape index: {}]   ;;  %s280_s0 = inlined_call_operand.vmem [shape: bf16[16,32], index: 0, kind: input, shape index: {}]   ;;  %s281_s2 = inlined_call_operand.vmem [shape: f32[1,32], index: 2, kind: input, shape index: {}]   ;;  %s282_s3 = inlined_call_operand.vmem [shape: f32[16,32], index: 3, kind: input, shape index: {}]   ;;  %s283_s4 = inlined_call_operand.vmem [shape: f32[1,32], index: 4, kind: input, shape index: {}]   ;;  %s284_s5 = inlined_call_operand.vmem [shape: f32[1,32], index: 5, kind: input, shape index: {}]   ;;  %s285_s6 = inlined_call_operand.vmem [shape: f32[16,32], index: 6, kind: output, shape index: {}]  }
   0x1   :  { %184 = vmatprep.subr.bf16.mxu0 %v201_v0  ;;  %v194_v1 = vld [vmem:[%s279_s1] sm:$0xff]   ;;  %188 = vmatprep.mubr.msk.bf16.mxu0 %vm202_vm1, %v201_v0  ;;  %29 = vst.msk [vmem:[#allocation2] sm:$0xff] %vm28_vm0, %v201_v0  ;;  %30 = vst.msk [vmem:[#allocation2 + $0x8] sm:$0xff] %vm28_vm0, %v201_v0  ;;  %v195_v2 = vld [vmem:[%s279_s1 + $0x8] sm:$0xff]  }
   0x2   :  { %185 = vmatpush3.bf16.msra.mxu0 %v194_v1  ;;  %v196_v3 = vld [vmem:[%s280_s0] sm:$0xff]   ;;  %v120_v17 = vld [vmem:[%s282_s3 + $0x8] sm:$0xff] }
   0x3   :  { %186 = vmatprep.subr.bf16.mxu0 %v201_v0  ;;  %v178_v12 = vld [vmem:[%s281_s2] ss:$0 sm:$0xff] }
   0x4   :  { %v119_v14 = vld [vmem:[%s282_s3] sm:$0xff] }
   0x5   :  { %v179_v40 = vld [vmem:[%s283_s4] ss:$0 sm:$0xff] }
   0x6   :  { %187 = vmatpush3.bf16.msra.mxu0 %v195_v2  ;;  %v180_v42 = vld [vmem:[%s284_s5] ss:$0 sm:$0xff] }
   0x8   :  { %v31_v4 = vld [vmem:[#allocation2] sm:$0xff]  ;;  %v32_v6 = vld [vmem:[#allocation2 + $0x8] sm:$0xff] }
   0x9   :  { %189 = vmatmul.mubr.msk.bf16.vlgmr.msra.gmra.mrb[0].mxu0 %vm28_vm0, %v196_v3 }
  0xdc   :  { %v94_v5 = vpop.f32.mrb[0].mxu0 }
  0xdd   :  { %v101_v7 = vadd.f32 %v94_v5, %v31_v4  ;;  %v190_v8 = vpop.f32.mrb[1].mxu0 }
  0xde   :  { %v97_v9 = vpop.f32.mrb[2].mxu0 }
  0xdf   :  { %103 = vst.msk [vmem:[#allocation2] sm:$0xff] %vm28_vm0, %v101_v7  ;;  %v102_v10 = vadd.f32 %v97_v9, %v32_v6  ;;  %v191_v11 = vpop.f32.mrb[3].mxu0 }
  0xe1   :  { %104 = vst.msk [vmem:[#allocation2 + $0x8] sm:$0xff] %vm28_vm0, %v102_v10 }
  0xe6   :  { %v108_v13 = vld [vmem:[#allocation2] sm:$0xff] }
  0xe7   :  { %v117_v15 = vadd.f32 %v178_v12, %v108_v13 }
  0xe8   :  { %v109_v16 = vld [vmem:[#allocation2 + $0x8] sm:$0xff] }
  0xe9   :  { %v121_v18 = vadd.f32 %v119_v14, %v117_v15  ;;  %v118_v19 = vadd.f32 %v178_v12, %v109_v16 }
  0xeb   :  { %v123_v20 = vsel %vm28_vm0, %v121_v18, 0.0  ;;  %v122_v21 = vadd.f32 %v120_v17, %v118_v19 }
  0xec   :  { %124 = vadd.xlane.f32.xlu0 %v123_v20 }
  0xed   :  { %v126_v22 = vsel %vm28_vm0, %v122_v21, 0.0 }
  0xf0   :  { %127 = vadd.xlane.f32.xlu0 %v126_v22 }
 0x179   :  { %v125_v23 = vpop.xlane.xlu0 %124 }
 0x17a   :  { %v130_v24 = vmul.f32 0.03125, %v125_v23 }
 0x17c   :  { %v132_v25 = vsub.f32 %v121_v18, %v130_v24 }
 0x17d   :  { %v128_v26 = vpop.xlane.xlu0 %127 }
 0x17e   :  { %v131_v27 = vmul.f32 0.03125, %v128_v26  ;;  %v134_v28 = vmul.f32 %v132_v25, %v132_v25 }
 0x180   :  { %v133_v29 = vsub.f32 %v122_v21, %v131_v27  ;;  %v136_v30 = vsel %vm28_vm0, %v134_v28, 0.0 }
 0x181   :  { %137 = vadd.xlane.f32.xlu1 %v136_v30 }
 0x182   :  { %v135_v31 = vmul.f32 %v133_v29, %v133_v29 }
 0x184   :  { %v139_v32 = vsel %vm28_vm0, %v135_v31, 0.0 }
 0x185   :  { %140 = vadd.xlane.f32.xlu1 %v139_v32 }
 0x20e   :  { %v138_v33 = vpop.xlane.xlu1 %137 }
 0x20f   :  { %v142_v34 = vmul.f32 0.03125, %v138_v33 }
 0x211   :  { %v144_v35 = vadd.f32 1e-05, %v142_v34 }
 0x212   :  { %v141_v36 = vpop.xlane.xlu1 %140 }
 0x213   :  { %197 = vrsqrt.f32 %v144_v35  ;;  %v143_v37 = vmul.f32 0.03125, %v141_v36 }
 0x215   :  { %v145_v38 = vadd.f32 1e-05, %v143_v37 }
 0x217   :  { %199 = vrsqrt.f32 %v145_v38 }
 0x21d   :  { %v198_v39 = vpop.eup %197 }
 0x21e   :  { %v148_v41 = vmul.f32 %v198_v39, %v132_v25 }
 0x220   :  { %v157_v43 = vmul.f32 %v179_v40, %v148_v41 }
 0x221   :  { %v200_v44 = vpop.eup %199 }
 0x222   :  { %v166_v45 = vadd.f32 %v180_v42, %v157_v43  ;;  %v149_v46 = vmul.f32 %v200_v44, %v133_v29 }
 0x224   :  { %168 = vst.msk [vmem:[%s285_s6] sm:$0xff] %vm28_vm0, %v166_v45  ;;  %v158_v47 = vmul.f32 %v179_v40, %v149_v46 }
 0x226   :  { %v167_v48 = vadd.f32 %v180_v42, %v158_v47 }
 0x228   :  { %169 = vst.msk [vmem:[%s285_s6 + $0x8] sm:$0xff] %vm28_vm0, %v167_v48 }

// kernel: vallf_forward.52
= control target key start
LH: loop header
LB: loop body
LE: loop exit
PB: predicated region body
PF: predicated region fallthrough
CT: control target
= control target key end

     0   :  { %s1249_s15 = smov 0   ;;  %s1251_s16 = smov 0   ;;  %s1442_s0 = inlined_call_operand.vmem [shape: bf16[2,4,8,8], index: 0, kind: input, shape index: {}]   ;;  %s1443_s1 = inlined_call_operand.vmem [shape: bf16[2,4,8,8], index: 1, kind: input, shape index: {}]   ;;  %s1444_s2 = inlined_call_operand.vmem [shape: bf16[2,4,8,8], index: 2, kind: input, shape index: {}]   ;;  %s1445_s3 = inlined_call_operand.vmem [shape: f32[2,1,8], index: 3, kind: input, shape index: {}]   ;;  %s1446_s4 = inlined_call_operand.vmem [shape: bf16[2,4,8,8], index: 4, kind: output, shape index: {}]  }
   0x1   :  { %s1253_s17 = smov 0  }
   0x2 LB: > { %s33_s18 = sadd.s32 1, %s1214_s16  ;;  %p1054_p0 = scmp.ge.s32.totalorder %s1218_s17, 1  ;;  %s1218_s17 = sphi %s1253_s17, %s14_s17   ;;  %s1214_s16 = sphi %s1251_s16, %s1448_s16   ;;  %s1210_s15 = sphi %s1249_s15, %s1447_s15  }
   0x3   : > { %p35_p1 = scmp.ge.s32.totalorder %s33_s18, 2  ;;  %p231_p2 = scmp.lt.s32.totalorder %s1218_s17, 3 }
   0x5   : > { %s1450_s18 = smov (%p35_p1, %s33_s18), 0  ;;  %p232_p3 = pnand %p1054_p0, %p231_p2 }
   0x6   : > { %p285_p4 = scmp.lt.s32.totalorder (!%p232_p3), %s1210_s15, 1  ;;  %vm337_vm0 = vcmask (!%p232_p3), 64512   ;;  %v1220_v0 = vmov (!%p232_p3), 0.0   ;;  %vm1221_vm1 = vmmov (!%p232_p3), 0   ;;  %vm328_vm2 = vcmask (!%p232_p3), 7168  }
   0x7   : > { %235 = sbr.rel (%p232_p3) target bundleno = 837 (0x345), region = 36  ;;  %1094 = vmatprep.subr.bf16.mxu0 (!%p232_p3), %v1220_v0  ;;  %338 = vst.msk [vmem:[#allocation4] sm:$0xff] (!%p232_p3), %vm337_vm0, %v1220_v0  ;;  %339 = vst.msk [vmem:[#allocation4 + $0x8] sm:$0xff] (!%p232_p3), %vm337_vm0, %v1220_v0  ;;  %1100 = vmatprep.subr.bf16.mxu1 (!%p232_p3), %v1220_v0  ;;  %v1222_v13 = vmov (!%p232_p3), -inf   ;;  %v1223_v39 = vmov (!%p232_p3), 0   ;;  %vm674_vm3 = vcmask (!%p232_p3), 1043456  }
   0x8   : > { %340 = vst.msk [vmem:[#allocation4 + $0x10] sm:$0xff] (!%p232_p3), %vm337_vm0, %v1220_v0  ;;  %341 = vst.msk [vmem:[#allocation4 + $0x18] sm:$0xff] (!%p232_p3), %vm337_vm0, %v1220_v0  ;;  %1096 = vmatprep.mubr.msk.bf16.mxu0 (!%p232_p3), %vm1221_vm1, %v1220_v0  ;;  %1102 = vmatprep.mubr.msk.bf16.mxu1 (!%p232_p3), %vm1221_vm1, %v1220_v0  ;;  %vm911_vm4 = vcmask (!%p232_p3), 60416  }
   0x9   : > { %329 = vst.msk [vmem:[#allocation2] sm:$0xff] (!%p232_p3), %vm328_vm2, %v1222_v13  ;;  %330 = vst.msk [vmem:[#allocation2 + $0x8] sm:$0xff] (!%p232_p3), %vm328_vm2, %v1222_v13  ;;  %1170 = vset.pattern.permute.xlu0 (!%p232_p3), %v1223_v39  ;;  %1171 = vset.pattern.permute.xlu1 (!%p232_p3), %v1223_v39 }
   0xa   : > { %331 = vst.msk [vmem:[#allocation2 + $0x10] sm:$0xff] (!%p232_p3), %vm328_vm2, %v1222_v13  ;;  %332 = vst.msk [vmem:[#allocation2 + $0x18] sm:$0xff] (!%p232_p3), %vm328_vm2, %v1222_v13 }
   0xb   : > { %333 = vst.msk [vmem:[#allocation3] sm:$0xff] (!%p232_p3), %vm328_vm2, %v1220_v0  ;;  %334 = vst.msk [vmem:[#allocation3 + $0x8] sm:$0xff] (!%p232_p3), %vm328_vm2, %v1220_v0 }
   0xc   : > { %335 = vst.msk [vmem:[#allocation3 + $0x10] sm:$0xff] (!%p232_p3), %vm328_vm2, %v1220_v0  ;;  %336 = vst.msk [vmem:[#allocation3 + $0x18] sm:$0xff] (!%p232_p3), %vm328_vm2, %v1220_v0 }
   0xe   : > { %s1452_s15 = smov (!%p285_p4, %s1210_s15), 1 }
   0xf   : > { %s1284_s19 = sshll.u32 %s1452_s15, 4  ;;  %s314_s28 = scalar_lea.vmem %s1445_s3, %s1452_s15 }
  0x10   : > { %s300_s22 = scalar_lea.vmem %s1443_s1, %s1284_s19  ;;  %s292_s25 = scalar_lea.vmem %s1442_s0, %s1284_s19  ;;  %v1063_v14 = vld [vmem:[%s314_s28] ss:$0 sm:$0xff]  ;;  %v1351_v43 = vld [vmem:[#allocation2 + $0x8] sm:$0xff] }
  0x11   : > { %v346_v1 = vld [vmem:[%s300_s22] sm:$0xf]  ;;  %v347_v2 = vld [vmem:[%s300_s22 + $0x4] sm:$0xf]  ;;  %v348_v5 = vld [vmem:[%s300_s22 + $0x8] sm:$0xf]  ;;  %s308_s5 = scalar_lea.vmem %s1444_s2, %s1284_s19  ;;  %s322_s8 = scalar_lea.vmem %s1446_s4, %s1284_s19 }
  0x12   : > { %v362_v3 = vsel %vm337_vm0, %v346_v1, 0  ;;  %v408_v4 = vsel %vm337_vm0, %v347_v2, 0  ;;  %v349_v6 = vld [vmem:[%s300_s22 + $0xc] sm:$0xf]  ;;  %v342_v7 = vld [vmem:[%s292_s25] sm:$0xf] }
  0x13   : > { %1095 = vmatpush3.bf16.xpose.msra.mxu0 %v362_v3  ;;  %1101 = vmatpush3.bf16.xpose.msra.mxu1 %v408_v4  ;;  %v343_v8 = vld [vmem:[%s292_s25 + $0x4] sm:$0xf]  ;;  %v454_v9 = vsel %vm337_vm0, %v348_v5, 0  ;;  %v500_v10 = vsel %vm337_vm0, %v349_v6, 0  ;;  %v344_v11 = vld [vmem:[%s292_s25 + $0x8] sm:$0xf] }
  0x14   : > { %1106 = vmatprep.subr.bf16.mxu0 %v1220_v0  ;;  %1112 = vmatprep.subr.bf16.mxu1 %v1220_v0  ;;  %v345_v12 = vld [vmem:[%s292_s25 + $0xc] sm:$0xf]  ;;  %v1346_v40 = vld [vmem:[#allocation2] sm:$0xff]  ;;  %v1361_v47 = vld [vmem:[#allocation2 + $0x10] sm:$0xff] }
  0x15   : > { %v1371_v51 = vld [vmem:[#allocation2 + $0x18] sm:$0xff]  ;;  %v667_v56 = vld [vmem:[%s308_s5] sm:$0xf]  ;;  %v668_v58 = vld [vmem:[%s308_s5 + $0x4] sm:$0xf] }
  0x16   : > { %v676_v57 = vsel %vm674_vm3, %v667_v56, 0  ;;  %v722_v59 = vsel %vm674_vm3, %v668_v58, 0  ;;  %v669_v60 = vld [vmem:[%s308_s5 + $0x8] sm:$0xf]  ;;  %v670_v62 = vld [vmem:[%s308_s5 + $0xc] sm:$0xf] }
  0x17   : > { %v768_v61 = vsel %vm674_vm3, %v669_v60, 0  ;;  %v814_v63 = vsel %vm674_vm3, %v670_v62, 0  ;;  %v608_v39 = vld [vmem:[#allocation3 + $0x10] sm:$0xff]  ;;  %v635_v56 = vld [vmem:[#allocation4] sm:$0xff] }
  0x1a   : > { %1097 = vmatmul.mubr.msk.bf16.vlgmr.msra.gmra.mrb[0].mxu0 %vm337_vm0, %v342_v7  ;;  %1103 = vmatmul.mubr.msk.bf16.vlgmr.msra.gmra.mrb[0].mxu1 %vm337_vm0, %v343_v8 }
  0x1b   : > { %1107 = vmatpush3.bf16.xpose.msra.mxu0 %v454_v9  ;;  %1113 = vmatpush3.bf16.xpose.msra.mxu1 %v500_v10 }
  0x1c   : > { %1108 = vmatprep.mubr.msk.bf16.mxu0 %vm1221_vm1, %v1220_v0  ;;  %1114 = vmatprep.mubr.msk.bf16.mxu1 %vm1221_vm1, %v1220_v0 }
  0x1d   : > { %1118 = vmatprep.subr.bf16.mxu0 %v1220_v0  ;;  %1124 = vmatprep.subr.bf16.mxu1 %v1220_v0 }
  0x22   : > { %1109 = vmatmul.mubr.msk.bf16.vlgmr.msra.gmra.mrb[4].mxu0 %vm337_vm0, %v344_v11  ;;  %1115 = vmatmul.mubr.msk.bf16.vlgmr.msra.gmra.mrb[4].mxu1 %vm337_vm0, %v345_v12 }
  0x23   : > { %1120 = vmatprep.mubr.msk.bf16.mxu0 %vm1221_vm1, %v1220_v0  ;;  %1126 = vmatprep.mubr.msk.bf16.mxu1 %vm1221_vm1, %v1220_v0 }
  0x24   : > { %1119 = vmatpush3.bf16.msra.mxu0 %v676_v57  ;;  %1125 = vmatpush3.bf16.msra.mxu1 %v722_v59  ;;  %v636_v59 = vld [vmem:[#allocation4 + $0x8] sm:$0xff] }
  0x25   : > { %1130 = vmatprep.subr.bf16.mxu0 %v1220_v0  ;;  %1136 = vmatprep.subr.bf16.mxu1 %v1220_v0 }
  0xed   : > { %v398_v15 = vpop.f32.mrb[0].mxu0  ;;  %v444_v16 = vpop.f32.mrb[0].mxu1 }
  0xee   : > { %v1330_v17 = vadd.f32 %v1063_v14, %v398_v15  ;;  %v1098_v18 = vpop.f32.mrb[1].mxu0  ;;  %v1332_v19 = vadd.f32 %v1063_v14, %v444_v16  ;;  %v1104_v20 = vpop.f32.mrb[1].mxu1 }
  0xef   : > { %v401_v21 = vpop.f32.mrb[2].mxu0  ;;  %v447_v22 = vpop.f32.mrb[2].mxu1 }
  0xf0   : > { %v1099_v23 = vpop.f32.mrb[3].mxu0  ;;  %v546_v24 = vsel %vm337_vm0, %v1330_v17, -inf  ;;  %v1105_v25 = vpop.f32.mrb[3].mxu1  ;;  %v549_v26 = vsel %vm337_vm0, %v1332_v19, -inf }
  0xf1   : > { %547 = vmax.xlane.f32.xlu0 %v546_v24 }
  0xf5   : > { %550 = vmax.xlane.f32.xlu0 %v549_v26  ;;  %v490_v27 = vpop.f32.mrb[4].mxu0  ;;  %v536_v28 = vpop.f32.mrb[4].mxu1 }
  0xf6   : > { %v1338_v29 = vadd.f32 %v1063_v14, %v490_v27  ;;  %v1110_v30 = vpop.f32.mrb[5].mxu0  ;;  %v1340_v31 = vadd.f32 %v1063_v14, %v536_v28  ;;  %v1116_v32 = vpop.f32.mrb[5].mxu1 }
  0xf7   : > { %v493_v33 = vpop.f32.mrb[6].mxu0  ;;  %v539_v34 = vpop.f32.mrb[6].mxu1  ;;  %v606_v32 = vld [vmem:[#allocation3] sm:$0xff] }
  0xf8   : > { %v1111_v35 = vpop.f32.mrb[7].mxu0  ;;  %v552_v36 = vsel %vm337_vm0, %v1338_v29, -inf  ;;  %v1117_v37 = vpop.f32.mrb[7].mxu1  ;;  %v555_v38 = vsel %vm337_vm0, %v1340_v31, -inf }
  0xf9   : > { %553 = vmax.xlane.f32.xlu1 %v552_v36  ;;  %v607_v35 = vld [vmem:[#allocation3 + $0x8] sm:$0xff] }
  0xfd   : > { %556 = vmax.xlane.f32.xlu1 %v555_v38 }
 0x17e   : > { %v548_v41 = vpop.xlane.xlu0 %547 }
 0x17f   : > { %v1349_v42 = vmax.f32 %v1346_v40, %v548_v41 }
 0x181   : > { %v562_v44 = vsub.f32 %v1346_v40, %v1349_v42  ;;  %864 = vst.msk [vmem:[#allocation2] sm:$0xff] %vm328_vm2, %v1349_v42  ;;  %576 = vperm.xlu0 %1170, %v1349_v42  }
 0x182   : > { %v551_v45 = vpop.xlane.xlu0 %550 }
 0x183   : > { %v1359_v46 = vmax.f32 %v1351_v43, %v551_v45 }
 0x185   : > { %v563_v48 = vsub.f32 %v1351_v43, %v1359_v46  ;;  %865 = vst.msk [vmem:[#allocation2 + $0x8] sm:$0xff] %vm328_vm2, %v1359_v46  ;;  %581 = vperm.xlu1 %1171, %v1359_v46   ;;  %v609_v43 = vld [vmem:[#allocation3 + $0x18] sm:$0xff] }
 0x186   : > { %v554_v49 = vpop.xlane.xlu1 %553 }
 0x187   : > { %v1369_v50 = vmax.f32 %v1361_v47, %v554_v49  ;;  %v568_v23 = vmul.f32 1.442695, %v563_v48 }
 0x189   : > { %v564_v52 = vsub.f32 %v1361_v47, %v1369_v50  ;;  %866 = vst.msk [vmem:[#allocation2 + $0x10] sm:$0xff] %vm328_vm2, %v1369_v50  ;;  %586 = vperm.xlu1 %1171, %v1369_v50  }
 0x18a   : > { %v557_v53 = vpop.xlane.xlu1 %556 }
 0x18b   : > { %v1379_v54 = vmax.f32 %v1371_v51, %v557_v53  ;;  %v570_v26 = vmul.f32 1.442695, %v564_v52 }
 0x18d   : > { %v565_v55 = vsub.f32 %v1371_v51, %v1379_v54  ;;  %867 = vst.msk [vmem:[#allocation2 + $0x18] sm:$0xff] %vm328_vm2, %v1379_v54  ;;  %591 = vperm.xlu1 %1171, %v1379_v54  }
 0x18f   : > { %v572_v27 = vmul.f32 1.442695, %v565_v55 }
 0x200   : > { %v577_v1 = vpop.permute.xlu0 %576 }
 0x201   : > { %v594_v2 = vsub.f32 %v1330_v17, %v577_v1 }
 0x203   : > { %v598_v3 = vmul.f32 1.442695, %v594_v2 }
 0x204   : > { %v582_v4 = vpop.permute.xlu1 %581 }
 0x205   : > { %1172 = vpow2.f32 %v598_v3  ;;  %v595_v5 = vsub.f32 %v1332_v19, %v582_v4 }
 0x207   : > { %v600_v6 = vmul.f32 1.442695, %v595_v5  ;;  %v637_v5 = vld [vmem:[#allocation4 + $0x10] sm:$0xff] }
 0x208   : > { %v587_v7 = vpop.permute.xlu1 %586 }
 0x209   : > { %1174 = vpow2.f32 %v600_v6  ;;  %v596_v8 = vsub.f32 %v1338_v29, %v587_v7 }
 0x20b   : > { %v602_v9 = vmul.f32 1.442695, %v596_v8 }
 0x20c   : > { %v592_v10 = vpop.permute.xlu1 %591 }
 0x20d   : > { %1176 = vpow2.f32 %v602_v9  ;;  %v597_v11 = vsub.f32 %v1340_v31, %v592_v10 }
 0x20f   : > { %v1173_v12 = vpop.eup %1172  ;;  %v604_v13 = vmul.f32 1.442695, %v597_v11 }
 0x210   : > { %v614_v14 = vsel %vm337_vm0, %v1173_v12, 0.0  ;;  %v663_v15 = vpack.c.bf16 %v1173_v12, %v1173_v12  ;;  %v638_v12 = vld [vmem:[#allocation4 + $0x18] sm:$0xff] }
 0x211   : > { %1178 = vpow2.f32 %v604_v13  ;;  %615 = vadd.xlane.f32.xlu1 %v614_v14 }
 0x212   : > { %1121 = vmatmul.mubr.msk.bf16.vlgmr.msra.gmra.mrb[8].mxu0 %vm337_vm0, %v663_v15  ;;  %1180 = vpow2.f32 %v568_v23 }
 0x213   : > { %v1175_v16 = vpop.eup %1174  ;;  %1131 = vmatpush3.bf16.msra.mxu0 %v768_v61  ;;  %1132 = vmatprep.mubr.msk.bf16.mxu0 %vm1221_vm1, %v1220_v0 }
 0x214   : > { %v617_v17 = vsel %vm337_vm0, %v1175_v16, 0.0  ;;  %v664_v18 = vpack.c.bf16 %v1175_v16, %v1175_v16 }
 0x215   : > { %618 = vadd.xlane.f32.xlu0 %v617_v17 }
 0x216   : > { %1127 = vmatmul.mubr.msk.bf16.vlgmr.msra.gmra.mrb[8].mxu1 %vm337_vm0, %v664_v18 }
 0x217   : > { %v1177_v19 = vpop.eup %1176  ;;  %1137 = vmatpush3.bf16.msra.mxu1 %v814_v63  ;;  %1138 = vmatprep.mubr.msk.bf16.mxu1 %vm1221_vm1, %v1220_v0  ;;  %v566_v0 = vmul.f32 1.442695, %v562_v44 }
 0x218   : > { %v620_v20 = vsel %vm337_vm0, %v1177_v19, 0.0  ;;  %v665_v21 = vpack.c.bf16 %v1177_v19, %v1177_v19 }
 0x219   : > { %621 = vadd.xlane.f32.xlu1 %v620_v20  ;;  %1182 = vpow2.f32 %v566_v0 }
 0x21a   : > { %1133 = vmatmul.mubr.msk.bf16.vlgmr.msra.gmra.mrb[12].mxu0 %vm337_vm0, %v665_v21  ;;  %1184 = vpow2.f32 %v570_v26 }
 0x21b   : > { %v1179_v22 = vpop.eup %1178  ;;  %1186 = vpow2.f32 %v572_v27 }
 0x21c   : > { %v623_v24 = vsel %vm337_vm0, %v1179_v22, 0.0  ;;  %v666_v25 = vpack.c.bf16 %v1179_v22, %v1179_v22  ;;  %v1181_v28 = vpop.eup %1180 }
 0x21d   : > { %624 = vadd.xlane.f32.xlu1 %v623_v24  ;;  %v611_v37 = vmul.f32 %v1181_v28, %v607_v35 }
 0x21e   : > { %1139 = vmatmul.mubr.msk.bf16.vlgmr.msra.gmra.mrb[12].mxu1 %vm337_vm0, %v666_v25 }
 0x223   : > { %v1183_v29 = vpop.eup %1182 }
 0x224   : > { %v1185_v30 = vpop.eup %1184  ;;  %v610_v33 = vmul.f32 %v1183_v29, %v606_v32 }
 0x225   : > { %v1187_v31 = vpop.eup %1186  ;;  %v612_v41 = vmul.f32 %v1185_v30, %v608_v39 }
 0x226   : > { %v613_v46 = vmul.f32 %v1187_v31, %v609_v43 }
 0x22b   : > { %646 = vperm.xlu0 %1170, %v1181_v28  }
 0x22e   : > { %641 = vperm.xlu1 %1171, %v1183_v29  }
 0x232   : > { %651 = vperm.xlu1 %1171, %v1185_v30  }
 0x236   : > { %656 = vperm.xlu1 %1171, %v1187_v31  }
 0x29e   : > { %v616_v34 = vpop.xlane.xlu1 %615 }
 0x29f   : > { %v626_v36 = vadd.f32 %v616_v34, %v610_v33 }
 0x2a1   : > { %631 = vst.msk [vmem:[#allocation3] sm:$0xff] %vm328_vm2, %v626_v36 }
 0x2a2   : > { %v619_v38 = vpop.xlane.xlu0 %618 }
 0x2a3   : > { %v627_v40 = vadd.f32 %v619_v38, %v611_v37 }
 0x2a5   : > { %632 = vst.msk [vmem:[#allocation3 + $0x8] sm:$0xff] %vm328_vm2, %v627_v40 }
 0x2a6   : > { %v622_v42 = vpop.xlane.xlu1 %621 }
 0x2a7   : > { %v628_v44 = vadd.f32 %v622_v42, %v612_v41 }
 0x2a8   : > { %v875_v45 = vld [vmem:[#allocation3] sm:$0xff] }
 0x2a9   : > { %633 = vst.msk [vmem:[#allocation3 + $0x10] sm:$0xff] %vm328_vm2, %v628_v44  ;;  %1188 = vrcp.f32 %v875_v45 }
 0x2aa   : > { %v625_v47 = vpop.xlane.xlu1 %624  ;;  %v647_v60 = vpop.permute.xlu0 %646 }
 0x2ab   : > { %v629_v48 = vadd.f32 %v625_v47, %v613_v46  ;;  %v660_v3 = vmul.f32 %v647_v60, %v636_v59 }
 0x2ac   : > { %v876_v49 = vld [vmem:[#allocation3 + $0x8] sm:$0xff] }
 0x2ad   : > { %634 = vst.msk [vmem:[#allocation3 + $0x18] sm:$0xff] %vm328_vm2, %v629_v48  ;;  %1190 = vrcp.f32 %v876_v49 }
 0x2ae   : > { %v642_v57 = vpop.permute.xlu1 %641 }
 0x2af   : > { %v659_v58 = vmul.f32 %v642_v57, %v635_v56 }
 0x2b0   : > { %v877_v50 = vld [vmem:[#allocation3 + $0x10] sm:$0xff] }
 0x2b1   : > { %1192 = vrcp.f32 %v877_v50 }
 0x2b2   : > { %v652_v1 = vpop.permute.xlu1 %651 }
 0x2b3   : > { %v1189_v51 = vpop.eup %1188  ;;  %v661_v10 = vmul.f32 %v652_v1, %v637_v5 }
 0x2b4   : > { %885 = vperm.xlu1 %1171, %v1189_v51   ;;  %v878_v52 = vld [vmem:[#allocation3 + $0x18] sm:$0xff] }
 0x2b5   : > { %1194 = vrcp.f32 %v878_v52 }
 0x2b6   : > { %v657_v13 = vpop.permute.xlu1 %656 }
 0x2b7   : > { %v1191_v53 = vpop.eup %1190  ;;  %v662_v18 = vmul.f32 %v657_v13, %v638_v12 }
 0x2b8   : > { %890 = vperm.xlu0 %1170, %v1191_v53  }
 0x2bb   : > { %v1193_v54 = vpop.eup %1192 }
 0x2bc   : > { %895 = vperm.xlu1 %1171, %v1193_v54  }
 0x2bf   : > { %v1195_v55 = vpop.eup %1194 }
 0x2c0   : > { %900 = vperm.xlu0 %1170, %v1195_v55  }
 0x2e5   : > { %v712_v61 = vpop.f32.mrb[8].mxu0 }
 0x2e6   : > { %v856_v62 = vadd.f32 %v712_v61, %v659_v58  ;;  %v1122_v63 = vpop.f32.mrb[9].mxu0 }
 0x2e7   : > { %v715_v2 = vpop.f32.mrb[10].mxu0 }
 0x2e8   : > { %860 = vst.msk [vmem:[#allocation4] sm:$0xff] %vm337_vm0, %v856_v62  ;;  %v1123_v4 = vpop.f32.mrb[11].mxu0 }
 0x2e9   : > { %v758_v6 = vpop.f32.mrb[8].mxu1 }
 0x2ea   : > { %v857_v7 = vadd.f32 %v758_v6, %v660_v3  ;;  %v1128_v8 = vpop.f32.mrb[9].mxu1 }
 0x2eb   : > { %v761_v9 = vpop.f32.mrb[10].mxu1 }
 0x2ec   : > { %861 = vst.msk [vmem:[#allocation4 + $0x8] sm:$0xff] %vm337_vm0, %v857_v7  ;;  %v1129_v11 = vpop.f32.mrb[11].mxu1 }
 0x2ed   : > { %v804_v14 = vpop.f32.mrb[12].mxu0 }
 0x2ee   : > { %v858_v15 = vadd.f32 %v804_v14, %v661_v10  ;;  %v1134_v16 = vpop.f32.mrb[13].mxu0 }
 0x2ef   : > { %v807_v17 = vpop.f32.mrb[14].mxu0  ;;  %v871_v0 = vld [vmem:[#allocation4] sm:$0xff] }
 0x2f0   : > { %862 = vst.msk [vmem:[#allocation4 + $0x10] sm:$0xff] %vm337_vm0, %v858_v15  ;;  %v1135_v19 = vpop.f32.mrb[15].mxu0 }
 0x2f1   : > { %v850_v20 = vpop.f32.mrb[12].mxu1 }
 0x2f2   : > { %v859_v21 = vadd.f32 %v850_v20, %v662_v18  ;;  %v1140_v22 = vpop.f32.mrb[13].mxu1 }
 0x2f3   : > { %v853_v23 = vpop.f32.mrb[14].mxu1  ;;  %v872_v28 = vld [vmem:[#allocation4 + $0x8] sm:$0xff] }
 0x2f4   : > { %863 = vst.msk [vmem:[#allocation4 + $0x18] sm:$0xff] %vm337_vm0, %v859_v21  ;;  %v1141_v24 = vpop.f32.mrb[15].mxu1 }
 0x2f7   : > { %v873_v33 = vld [vmem:[#allocation4 + $0x10] sm:$0xff] }
 0x2fb   : > { %v874_v37 = vld [vmem:[#allocation4 + $0x18] sm:$0xff] }
 0x333   : > { %v886_v25 = vpop.permute.xlu1 %885 }
 0x334   : > { %v903_v26 = vmul.f32 %v886_v25, %v871_v0 }
 0x336   : > { %v907_v27 = vpack.c.bf16 %v903_v26, %v903_v26 }
 0x337   : > { %v891_v29 = vpop.permute.xlu0 %890 }
 0x338   : > { %912 = vst.msk [vmem:[%s322_s8] sm:$0xf] %vm911_vm4, %v907_v27  ;;  %v904_v30 = vmul.f32 %v891_v29, %v872_v28 }
 0x33a   : > { %v908_v31 = vpack.c.bf16 %v904_v30, %v904_v30 }
 0x33b   : > { %v896_v32 = vpop.permute.xlu1 %895 }
 0x33c   : > { %913 = vst.msk [vmem:[%s322_s8 + $0x4] sm:$0xf] %vm911_vm4, %v908_v31  ;;  %v905_v34 = vmul.f32 %v896_v32, %v873_v33 }
 0x33e   : > { %v909_v35 = vpack.c.bf16 %v905_v34, %v905_v34 }
 0x33f   : > { %v901_v36 = vpop.permute.xlu0 %900 }
 0x340   : > { %914 = vst.msk [vmem:[%s322_s8 + $0x8] sm:$0xf] %vm911_vm4, %v909_v35  ;;  %v906_v38 = vmul.f32 %v901_v36, %v874_v37 }
 0x342   : > { %v910_v39 = vpack.c.bf16 %v906_v38, %v906_v38 }
 0x344   : > { %915 = vst.msk [vmem:[%s322_s8 + $0xc] sm:$0xf] %vm911_vm4, %v910_v39 }
 0x345 PF: > { %s14_s17 = sadd.s32 1, %s1218_s17   ;;  %s1447_s15 = smov %s1214_s16 }
 0x346   : > { %p11_p5 = scmp.ge.s32.totalorder %s14_s17, 4   ;;  %s1448_s16 = smov %s1450_s18 }
 0x348   :  { %13 = sbr.rel (!%p11_p5) target bundleno = 2 (0x2), region = 83 }

// kernel: vallf_forward.54
= control target key start
LH: loop header
LB: loop body
LE: loop exit
PB: predicated region body
PF: predicated region fallthrough
CT: control target
= control target key end

     0   :  { %vm19_vm0 = vcmask 261120   ;;  %v150_v0 = vmov 0.0   ;;  %vm151_vm1 = vmmov 0   ;;  %vm118_vm2 = vcmask 257024   ;;  %s195_s1 = inlined_call_operand.vmem [shape: bf16[32,32], index: 1, kind: input, shape index: {}]   ;;  %s196_s0 = inlined_call_operand.vmem [shape: bf16[16,32], index: 0, kind: input, shape index: {}]   ;;  %s197_s2 = inlined_call_operand.vmem [shape: f32[1,32], index: 2, kind: input, shape index: {}]   ;;  %s198_s3 = inlined_call_operand.vmem [shape: bf16[16,32], index: 3, kind: output, shape index: {}]  }
   0x1   :  { %137 = vmatprep.subr.bf16.mxu0 %v150_v0  ;;  %v147_v1 = vld [vmem:[%s195_s1] sm:$0xff]   ;;  %141 = vmatprep.mubr.msk.bf16.mxu0 %vm151_vm1, %v150_v0  ;;  %20 = vst.msk [vmem:[#allocation2] sm:$0xff] %vm19_vm0, %v150_v0  ;;  %21 = vst.msk [vmem:[#allocation2 + $0x8] sm:$0xff] %vm19_vm0, %v150_v0  ;;  %v148_v2 = vld [vmem:[%s195_s1 + $0x8] sm:$0xff]  }
   0x2   :  { %138 = vmatpush3.bf16.msra.mxu0 %v147_v1  ;;  %v149_v3 = vld [vmem:[%s196_s0] sm:$0xff]  }
   0x3   :  { %139 = vmatprep.subr.bf16.mxu0 %v150_v0  ;;  %v129_v12 = vld [vmem:[%s197_s2] ss:$0 sm:$0xff] }
   0x6   :  { %140 = vmatpush3.bf16.msra.mxu0 %v148_v2 }
   0x8   :  { %v22_v4 = vld [vmem:[#allocation2] sm:$0xff]  ;;  %v23_v6 = vld [vmem:[#allocation2 + $0x8] sm:$0xff] }
   0x9   :  { %142 = vmatmul.mubr.msk.bf16.vlgmr.msra.gmra.mrb[0].mxu0 %vm19_vm0, %v149_v3 }
  0xdc   :  { %v85_v5 = vpop.f32.mrb[0].mxu0 }
  0xdd   :  { %v92_v7 = vadd.f32 %v85_v5, %v22_v4  ;;  %v143_v8 = vpop.f32.mrb[1].mxu0 }
  0xde   :  { %v88_v9 = vpop.f32.mrb[2].mxu0 }
  0xdf   :  { %94 = vst.msk [vmem:[#allocation2] sm:$0xff] %vm19_vm0, %v92_v7  ;;  %v93_v10 = vadd.f32 %v88_v9, %v23_v6  ;;  %v144_v11 = vpop.f32.mrb[3].mxu0 }
  0xe1   :  { %95 = vst.msk [vmem:[#allocation2 + $0x8] sm:$0xff] %vm19_vm0, %v93_v10 }
  0xe6   :  { %v99_v13 = vld [vmem:[#allocation2] sm:$0xff] }
  0xe7   :  { %v108_v14 = vadd.f32 %v129_v12, %v99_v13 }
  0xe8   :  { %v100_v15 = vld [vmem:[#allocation2 + $0x8] sm:$0xff] }
  0xe9   :  { %v132_v16 = vpack.c.bf16 %v108_v14, %v108_v14  ;;  %v109_v17 = vadd.f32 %v129_v12, %v100_v15 }
  0xeb   :  { %119 = vst.msk [vmem:[%s198_s3] sm:$0xf] %vm118_vm2, %v132_v16  ;;  %v133_v18 = vpack.c.bf16 %v109_v17, %v109_v17 }
  0xed   :  { %120 = vst.msk [vmem:[%s198_s3 + $0x4] sm:$0xf] %vm118_vm2, %v133_v18 }

// kernel: vallf_forward.55
= control target key start
LH: loop header
LB: loop body
LE: loop exit
PB: predicated region body
PF: predicated region fallthrough
CT: control target
= control target key end

     0   :  { %vm19_vm0 = vcmask 523264   ;;  %v151_v0 = vmov 0.0   ;;  %vm152_vm1 = vmmov 0   ;;  %vm47_vm2 = vcmask 261120   ;;  %s195_s1 = inlined_call_operand.vmem [shape: bf16[32,64], index: 1, kind: input, shape index: {}]   ;;  %s196_s0 = inlined_call_operand.vmem [shape: bf16[16,32], index: 0, kind: input, shape index: {}]   ;;  %s197_s2 = inlined_call_operand.vmem [shape: f32[1,64], index: 2, kind: input, shape index: {}]   ;;  %s198_s3 = inlined_call_operand.vmem [shape: bf16[16,64], index: 3, kind: output, shape index: {}]  }
   0x1   :  { %138 = vmatprep.subr.bf16.mxu0 %v151_v0  ;;  %v148_v1 = vld [vmem:[%s195_s1] sm:$0xff]   ;;  %142 = vmatprep.mubr.msk.bf16.mxu0 %vm152_vm1, %v151_v0  ;;  %20 = vst.msk [vmem:[#allocation2] sm:$0xff] %vm19_vm0, %v151_v0  ;;  %21 = vst.msk [vmem:[#allocation2 + $0x8] sm:$0xff] %vm19_vm0, %v151_v0  ;;  %v149_v2 = vld [vmem:[%s195_s1 + $0x8] sm:$0xff]   ;;  %vm119_vm3 = vcmask 519168  }
   0x2   :  { %139 = vmatpush3.bf16.msra.mxu0 %v148_v1  ;;  %v150_v3 = vld [vmem:[%s196_s0] sm:$0xff]  }
   0x3   :  { %140 = vmatprep.subr.bf16.mxu0 %v151_v0  ;;  %v130_v12 = vld [vmem:[%s197_s2] ss:$0 sm:$0xff] }
   0x6   :  { %141 = vmatpush3.bf16.msra.mxu0 %v149_v2 }
   0x8   :  { %v22_v4 = vld [vmem:[#allocation2] sm:$0xff]  ;;  %v23_v6 = vld [vmem:[#allocation2 + $0x8] sm:$0xff] }
   0x9   :  { %143 = vmatmul.mubr.msk.bf16.vlgmr.msra.gmra.mrb[0].mxu0 %vm47_vm2, %v150_v3 }
  0xdc   :  { %v85_v5 = vpop.f32.mrb[0].mxu0 }
  0xdd   :  { %v92_v7 = vadd.f32 %v85_v5, %v22_v4  ;;  %v144_v8 = vpop.f32.mrb[1].mxu0 }
  0xde   :  { %v88_v9 = vpop.f32.mrb[2].mxu0 }
  0xdf   :  { %95 = vst.msk [vmem:[#allocation2] sm:$0xff] %vm19_vm0, %v92_v7  ;;  %v93_v10 = vadd.f32 %v88_v9, %v23_v6  ;;  %v145_v11 = vpop.f32.mrb[3].mxu0 }
  0xe1   :  { %96 = vst.msk [vmem:[#allocation2 + $0x8] sm:$0xff] %vm19_vm0, %v93_v10 }
  0xe6   :  { %v100_v13 = vld [vmem:[#allocation2] sm:$0xff] }
  0xe7   :  { %v109_v14 = vadd.f32 %v130_v12, %v100_v13 }
  0xe8   :  { %v101_v15 = vld [vmem:[#allocation2 + $0x8] sm:$0xff] }
  0xe9   :  { %v133_v16 = vpack.c.bf16 %v109_v14, %v109_v14  ;;  %v110_v17 = vadd.f32 %v130_v12, %v101_v15 }
  0xeb   :  { %120 = vst.msk [vmem:[%s198_s3] sm:$0xf] %vm119_vm3, %v133_v16  ;;  %v134_v18 = vpack.c.bf16 %v110_v17, %v110_v17 }
  0xed   :  { %121 = vst.msk [vmem:[%s198_s3 + $0x4] sm:$0xf] %vm119_vm3, %v134_v18 }

// kernel: vallf_forward.58
= control target key start
LH: loop header
LB: loop body
LE: loop exit
PB: predicated region body
PF: predicated region fallthrough
CT: control target
= control target key end

     0   :  { %vm31_vm0 = vcmask 261120   ;;  %v359_v0 = vmov 0.0   ;;  %vm360_vm1 = vmmov 0   ;;  %s466_s1 = inlined_call_operand.vmem [shape: bf16[32,128], index: 1, kind: input, shape index: {}]   ;;  %s467_s0 = inlined_call_operand.vmem [shape: f32[16,32], index: 0, kind: input, shape index: {}]   ;;  %s468_s3 = inlined_call_operand.vmem [shape: bf16[128,32], index: 3, kind: input, shape index: {}]   ;;  %s469_s2 = inlined_call_operand.vmem [shape: f32[1,128], index: 2, kind: input, shape index: {}]   ;;  %s470_s4 = inlined_call_operand.vmem [shape: f32[1,32], index: 4, kind: input, shape index: {}]   ;;  %s471_s5 = inlined_call_operand.vmem [shape: f32[1,32], index: 5, kind: input, shape index: {}]   ;;  %s472_s6 = inlined_call_operand.vmem [shape: f32[1,32], index: 6, kind: input, shape index: {}]   ;;  %s473_s7 = inlined_call_operand.vmem [shape: f32[16,32], index: 7, kind: output, shape index: {}]  }
   0x1   :  { %315 = vmatprep.subr.bf16.mxu0 %v359_v0  ;;  %v345_v1 = vld [vmem:[%s466_s1] sm:$0xff]   ;;  %319 = vmatprep.mubr.msk.bf16.mxu0 %vm360_vm1, %v359_v0  ;;  %32 = vst.msk [vmem:[#allocation2] sm:$0xff] %vm31_vm0, %v359_v0  ;;  %33 = vst.msk [vmem:[#allocation2 + $0x8] sm:$0xff] %vm31_vm0, %v359_v0  ;;  %v346_v2 = vld [vmem:[%s466_s1 + $0x8] sm:$0xff]  }
   0x2   :  { %323 = vmatprep.subr.bf16.mxu1 %v359_v0  ;;  %339 = vmatprep.mubr.msk.bf16.mxu1 %vm360_vm1, %v359_v0  ;;  %v34_v3 = vld [vmem:[%s467_s0] sm:$0xff]  ;;  %v35_v4 = vld [vmem:[%s467_s0 + $0x8] sm:$0xff]  ;;  %v349_v8 = vld [vmem:[%s468_s3 + $0x10] sm:$0xff]  }
   0x3   :  { %316 = vmatpush3.bf16.msra.mxu0 %v345_v1  ;;  %v347_v5 = vld [vmem:[%s468_s3] sm:$0xff]   ;;  %v36_v6 = vpack.c.bf16 %v35_v4, %v34_v3  ;;  %v348_v7 = vld [vmem:[%s468_s3 + $0x8] sm:$0xff]   ;;  %v350_v9 = vld [vmem:[%s468_s3 + $0x18] sm:$0xff]  }
   0x4   :  { %317 = vmatprep.subr.bf16.mxu0 %v359_v0  ;;  %324 = vmatpush3.bf16.msra.mxu1 %v347_v5  ;;  %v351_v10 = vld [vmem:[%s468_s3 + $0x20] sm:$0xff]   ;;  %v352_v11 = vld [vmem:[%s468_s3 + $0x28] sm:$0xff]   ;;  %v353_v12 = vld [vmem:[%s468_s3 + $0x30] sm:$0xff]  }
   0x5   :  { %325 = vmatprep.subr.bf16.mxu1 %v359_v0  ;;  %v354_v13 = vld [vmem:[%s468_s3 + $0x38] sm:$0xff]   ;;  %v288_v14 = vld [vmem:[%s469_s2] ss:$0 sm:$0xff] }
   0x6   :  { %v300_v32 = vld [vmem:[%s470_s4] ss:$0 sm:$0xff] }
   0x7   :  { %318 = vmatpush3.bf16.msra.mxu0 %v346_v2  ;;  %v301_v58 = vld [vmem:[%s471_s5] ss:$0 sm:$0xff] }
   0x8   :  { %326 = vmatpush3.bf16.msra.mxu1 %v348_v7  ;;  %v108_v24 = vld [vmem:[#allocation2] sm:$0xff]  ;;  %v109_v26 = vld [vmem:[#allocation2 + $0x8] sm:$0xff] }
   0x9   :  { %327 = vmatprep.subr.bf16.mxu1 %v359_v0  ;;  %v302_v60 = vld [vmem:[%s472_s6] ss:$0 sm:$0xff] }
   0xa   :  { %320 = vmatmul.mubr.msk.bf16.vlgmr.msra.gmra.mrb[0].mxu0 %vm31_vm0, %v36_v6 }
   0xc   :  { %328 = vmatpush3.bf16.msra.mxu1 %v349_v8 }
   0xd   :  { %329 = vmatprep.subr.bf16.mxu1 %v359_v0 }
  0x10   :  { %330 = vmatpush3.bf16.msra.mxu1 %v350_v9 }
  0x11   :  { %331 = vmatprep.subr.bf16.mxu1 %v359_v0 }
  0x14   :  { %332 = vmatpush3.bf16.msra.mxu1 %v351_v10 }
  0x15   :  { %333 = vmatprep.subr.bf16.mxu1 %v359_v0 }
  0x18   :  { %334 = vmatpush3.bf16.msra.mxu1 %v352_v11 }
  0x19   :  { %335 = vmatprep.subr.bf16.mxu1 %v359_v0 }
  0x1c   :  { %336 = vmatpush3.bf16.msra.mxu1 %v353_v12 }
  0x1d   :  { %337 = vmatprep.subr.bf16.mxu1 %v359_v0 }
  0x20   :  { %338 = vmatpush3.bf16.msra.mxu1 %v354_v13 }
  0xdd   :  { %v98_v15 = vpop.f32.mrb[0].mxu0 }
  0xde   :  { %v99_v16 = vadd.f32 %v288_v14, %v98_v15  ;;  %v321_v17 = vpop.f32.mrb[1].mxu0 }
  0xdf   :  { %v101_v18 = vpop.f32.mrb[2].mxu0 }
  0xe0   :  { %v102_v19 = vadd.f32 %v288_v14, %v101_v18  ;;  %v322_v20 = vpop.f32.mrb[3].mxu0  ;;  %v105_v21 = vmax.f32 %v99_v16, 0.0 }
  0xe2   :  { %v106_v22 = vmax.f32 %v102_v19, 0.0 }
  0xe4   :  { %v107_v23 = vpack.c.bf16 %v106_v22, %v105_v21 }
  0xe6   :  { %340 = vmatmul.mubr.bf16.vlgmr.msra.gmra.mrb[0].mxu1 %v107_v23 }
 0x1b9   :  { %v208_v25 = vpop.f32.mrb[0].mxu1 }
 0x1ba   :  { %v215_v27 = vadd.f32 %v208_v25, %v108_v24  ;;  %v341_v28 = vpop.f32.mrb[1].mxu1 }
 0x1bb   :  { %v211_v29 = vpop.f32.mrb[2].mxu1 }
 0x1bc   :  { %217 = vst.msk [vmem:[#allocation2] sm:$0xff] %vm31_vm0, %v215_v27  ;;  %v216_v30 = vadd.f32 %v211_v29, %v109_v26  ;;  %v342_v31 = vpop.f32.mrb[3].mxu1 }
 0x1be   :  { %218 = vst.msk [vmem:[#allocation2 + $0x8] sm:$0xff] %vm31_vm0, %v216_v30 }
 0x1c3   :  { %v222_v33 = vld [vmem:[#allocation2] sm:$0xff] }
 0x1c4   :  { %v231_v34 = vadd.f32 %v300_v32, %v222_v33 }
 0x1c5   :  { %v223_v35 = vld [vmem:[#allocation2 + $0x8] sm:$0xff] }
 0x1c6   :  { %v235_v36 = vadd.f32 %v231_v34, %v34_v3  ;;  %v232_v37 = vadd.f32 %v300_v32, %v223_v35 }
 0x1c8   :  { %v237_v38 = vsel %vm31_vm0, %v235_v36, 0.0  ;;  %v236_v39 = vadd.f32 %v232_v37, %v35_v4 }
 0x1c9   :  { %238 = vadd.xlane.f32.xlu0 %v237_v38 }
 0x1ca   :  { %v240_v40 = vsel %vm31_vm0, %v236_v39, 0.0 }
 0x1cd   :  { %241 = vadd.xlane.f32.xlu0 %v240_v40 }
 0x256   :  { %v239_v41 = vpop.xlane.xlu0 %238 }
 0x257   :  { %v244_v42 = vmul.f32 0.03125, %v239_v41 }
 0x259   :  { %v246_v43 = vsub.f32 %v235_v36, %v244_v42 }
 0x25a   :  { %v242_v44 = vpop.xlane.xlu0 %241 }
 0x25b   :  { %v245_v45 = vmul.f32 0.03125, %v242_v44  ;;  %v248_v46 = vmul.f32 %v246_v43, %v246_v43 }
 0x25d   :  { %v247_v47 = vsub.f32 %v236_v39, %v245_v45  ;;  %v250_v48 = vsel %vm31_vm0, %v248_v46, 0.0 }
 0x25e   :  { %251 = vadd.xlane.f32.xlu1 %v250_v48 }
 0x25f   :  { %v249_v49 = vmul.f32 %v247_v47, %v247_v47 }
 0x261   :  { %v253_v50 = vsel %vm31_vm0, %v249_v49, 0.0 }
 0x262   :  { %254 = vadd.xlane.f32.xlu1 %v253_v50 }
 0x2eb   :  { %v252_v51 = vpop.xlane.xlu1 %251 }
 0x2ec   :  { %v256_v52 = vmul.f32 0.03125, %v252_v51 }
 0x2ee   :  { %v258_v53 = vadd.f32 1e-05, %v256_v52 }
 0x2ef   :  { %v255_v54 = vpop.xlane.xlu1 %254 }
 0x2f0   :  { %355 = vrsqrt.f32 %v258_v53  ;;  %v257_v55 = vmul.f32 0.03125, %v255_v54 }
 0x2f2   :  { %v259_v56 = vadd.f32 1e-05, %v257_v55 }
 0x2f4   :  { %357 = vrsqrt.f32 %v259_v56 }
 0x2fa   :  { %v356_v57 = vpop.eup %355 }
 0x2fb   :  { %v262_v59 = vmul.f32 %v356_v57, %v246_v43 }
 0x2fd   :  { %v271_v61 = vmul.f32 %v301_v58, %v262_v59 }
 0x2fe   :  { %v358_v62 = vpop.eup %357 }
 0x2ff   :  { %v280_v63 = vadd.f32 %v302_v60, %v271_v61  ;;  %v263_v0 = vmul.f32 %v358_v62, %v247_v47 }
 0x301   :  { %282 = vst.msk [vmem:[%s473_s7] sm:$0xff] %vm31_vm0, %v280_v63  ;;  %v272_v1 = vmul.f32 %v301_v58, %v263_v0 }
 0x303   :  { %v281_v2 = vadd.f32 %v302_v60, %v272_v1 }
 0x305   :  { %283 = vst.msk [vmem:[%s473_s7 + $0x8] sm:$0xff] %vm31_vm0, %v281_v2 }

// kernel: vallf_forward.67
= control target key start
LH: loop header
LB: loop body
LE: loop exit
PB: predicated region body
PF: predicated region fallthrough
CT: control target
= control target key end

     0   :  { %v681_v8 = vmov 0   ;;  %s977_s0 = inlined_call_operand.vmem [shape: bf16[16,32], index: 0, kind: input, shape index: {}]   ;;  %s978_s1 = inlined_call_operand.vmem [shape: bf16[32,1024], index: 1, kind: input, shape index: {}]   ;;  %s979_s2 = inlined_call_operand.vmem [shape: f32[1,1024], index: 2, kind: input, shape index: {}]   ;;  %s980_s3 = inlined_call_operand.vmem [shape: s32[16,1], index: 3, kind: input, shape index: {}]   ;;  %s981_s4 = inlined_call_operand.vmem [shape: f32[16,1], index: 4, kind: input, shape index: {}]   ;;  %s982_s5 = inlined_call_operand.hbm [shape: f32[1,1], index: 5, kind: output, shape index: {}]  }
   0x1   :  { %v30_v0 = vld [vmem:[%s978_s1] sm:$0xff]  ;;  %v31_v2 = vld [vmem:[%s978_s1 + $0x8] sm:$0xff]  ;;  %209 = vmatprep.mubr.bf16.mxu0 %v681_v8  ;;  %252 = vmatprep.mubr.bf16.mxu1 %v681_v8  ;;  %v32_v15 = vld [vmem:[%s978_s1 + $0x10] sm:$0xff] }
   0x2   :  { %v34_v1 = vld [vmem:[%s978_s1 + $0x20] sm:$0xff]  ;;  %v35_v4 = vld [vmem:[%s978_s1 + $0x28] sm:$0xff]  ;;  %618 = vset.pattern.permute.xlu1 %v681_v8  ;;  %619 = vset.pattern.permute.xlu0 %v681_v8  ;;  %v36_v17 = vld [vmem:[%s978_s1 + $0x30] sm:$0xff] }
   0x3   :  { %v578_v3 = vcombine.high %v30_v0, %v34_v1  ;;  %v577_v5 = vcombine.low %v30_v0, %v34_v1  ;;  %v38_v6 = vld [vmem:[%s978_s1 + $0x40] sm:$0xff]  ;;  %v580_v9 = vcombine.high %v31_v2, %v35_v4  ;;  %v579_v10 = vcombine.low %v31_v2, %v35_v4  ;;  %v39_v12 = vld [vmem:[%s978_s1 + $0x48] sm:$0xff]  ;;  %v33_v18 = vld [vmem:[%s978_s1 + $0x18] sm:$0xff] }
   0x4   :  { %v42_v7 = vld [vmem:[%s978_s1 + $0x60] sm:$0xff]  ;;  %v43_v13 = vld [vmem:[%s978_s1 + $0x68] sm:$0xff]  ;;  %v37_v19 = vld [vmem:[%s978_s1 + $0x38] sm:$0xff]  ;;  %v582_v22 = vcombine.high %v32_v15, %v36_v17 }
   0x5   :  { %v586_v11 = vcombine.high %v38_v6, %v42_v7  ;;  %177 = vmatprep.subr.bf16.mxu0 %v578_v3  ;;  %v588_v14 = vcombine.high %v39_v12, %v43_v13  ;;  %220 = vmatprep.subr.bf16.mxu1 %v580_v9  ;;  %v585_v16 = vcombine.low %v38_v6, %v42_v7  ;;  %v620_v21 = vld [vmem:[%s977_s0] sm:$0xff]   ;;  %v40_v24 = vld [vmem:[%s978_s1 + $0x50] sm:$0xff]  ;;  %v41_v27 = vld [vmem:[%s978_s1 + $0x58] sm:$0xff] }
   0x6   :  { %178 = vmatpush1.bf16.msra.mxu0 %v577_v5  ;;  %221 = vmatpush1.bf16.msra.mxu1 %v579_v10  ;;  %v587_v20 = vcombine.low %v39_v12, %v43_v13  ;;  %v584_v23 = vcombine.high %v33_v18, %v37_v19  ;;  %v44_v25 = vld [vmem:[%s978_s1 + $0x70] sm:$0xff]  ;;  %v448_v26 = vld [vmem:[%s980_s3] sm:$0xff]  ;;  %v45_v28 = vld [vmem:[%s978_s1 + $0x78] sm:$0xff] }
   0x7   :  { %179 = vmatprep.subr.bf16.mxu0 %v586_v11  ;;  %222 = vmatprep.subr.bf16.mxu1 %v588_v14 }
   0x8   :  { %451 = vperm.xlu1 %618, %v448_v26  }
   0x9   :  { %10 = vsyncpa [#allocation3], 0  ;;  %vm173_vm0 = vcmask 261120   ;;  %v581_v29 = vcombine.low %v32_v15, %v36_v17  ;;  %v449_v30 = vld [vmem:[%s980_s3 + $0x8] sm:$0xff]  ;;  %v583_v31 = vcombine.low %v33_v18, %v37_v19  ;;  %v590_v32 = vcombine.high %v40_v24, %v44_v25  ;;  %v46_v43 = vld [vmem:[%s979_s2] sm:$0xff] }
   0xa   :  { %180 = vmatpush1.bf16.msra.mxu0 %v585_v16  ;;  %223 = vmatpush1.bf16.msra.mxu1 %v587_v20  ;;  %v592_v33 = vcombine.high %v41_v27, %v45_v28  ;;  %v589_v34 = vcombine.low %v40_v24, %v44_v25  ;;  %v591_v35 = vcombine.low %v41_v27, %v45_v28  ;;  %v48_v36 = vlaneseq }
   0xb   :  { %263 = vmatprep.subr.bf16.mxu0 %v582_v22  ;;  %306 = vmatprep.subr.bf16.mxu1 %v584_v23 }
   0xc   :  { %454 = vperm.xlu1 %618, %v449_v30   ;;  %v49_v37 = vshrl.u32 %v48_v36, 7 }
   0xd   :  { %593 = vmatmul.mubr.msk.bf16.vlgmr.msra.gmra.mrb[0].mxu0 %vm173_vm0, %v620_v21  ;;  %594 = vmatmul.mubr.msk.bf16.vlgmr.msra.gmra.mrb[0].mxu1 %vm173_vm0, %v620_v21 }
   0xe   :  { %264 = vmatpush1.bf16.msra.mxu0 %v581_v29  ;;  %307 = vmatpush1.bf16.msra.mxu1 %v583_v31  ;;  %v50_v38 = vsub.s32 0, %v49_v37  ;;  %v58_v40 = vsub.s32 2, %v49_v37  ;;  %v54_v41 = vsub.s32 1, %v49_v37  ;;  %v62_v42 = vsub.s32 3, %v49_v37 }
   0xf   :  { %265 = vmatprep.subr.bf16.mxu0 %v590_v32  ;;  %308 = vmatprep.subr.bf16.mxu1 %v592_v33  ;;  %v66_v50 = vsub.s32 4, %v49_v37  ;;  %v74_v51 = vsub.s32 6, %v49_v37  ;;  %v70_v52 = vsub.s32 5, %v49_v37  ;;  %v78_v53 = vsub.s32 7, %v49_v37 }
  0x10   :  { %295 = vmatprep.mubr.bf16.mxu0 %v681_v8  ;;  %338 = vmatprep.mubr.bf16.mxu1 %v681_v8  ;;  %v51_v54 = vrot.slane %v46_v43, %v50_v38  ;;  %v59_v55 = vrot.slane %v46_v43, %v58_v40  ;;  %v55_v56 = vrot.slane %v46_v43, %v54_v41  ;;  %v828_v38 = vand.u32 127, %v48_v36 }
  0x11   :  { %v63_v57 = vrot.slane %v46_v43, %v62_v42  ;;  %v67_v59 = vrot.slane %v46_v43, %v66_v50  ;;  %v75_v60 = vrot.slane %v46_v43, %v74_v51  ;;  %v71_v61 = vrot.slane %v46_v43, %v70_v52 }
  0x12   :  { %266 = vmatpush1.bf16.msra.mxu0 %v589_v34  ;;  %309 = vmatpush1.bf16.msra.mxu1 %v591_v35  ;;  %v79_v62 = vrot.slane %v46_v43, %v78_v53  ;;  %v442_v40 = vadd.s32 256, %v828_v38  ;;  %v441_v41 = vadd.s32 128, %v828_v38  ;;  %v835_v42 = vadd.s32 384, %v828_v38 }
  0x13   :  { %v844_v36 = vadd.s32 512, %v828_v38  ;;  %v847_v43 = vadd.s32 640, %v828_v38 }
  0x15   :  { %595 = vmatmul.mubr.msk.bf16.vlgmr.msra.gmra.mrb[4].mxu0 %vm173_vm0, %v620_v21  ;;  %596 = vmatmul.mubr.msk.bf16.vlgmr.msra.gmra.mrb[4].mxu1 %vm173_vm0, %v620_v21 }
  0xe0   :  { %v211_v39 = vpop.f32.mrb[0].mxu0  ;;  %v254_v44 = vpop.f32.mrb[0].mxu1 }
  0xe1   :  { %v213_v45 = vpop.f32.mrb[1].mxu0  ;;  %v256_v46 = vpop.f32.mrb[1].mxu1  ;;  %v779_v63 = vadd.f32 %v211_v39, %v51_v54  ;;  %v781_v0 = vadd.f32 %v254_v44, %v59_v55 }
  0xe2   :  { %v215_v47 = vpop.f32.mrb[2].mxu0  ;;  %v258_v48 = vpop.f32.mrb[2].mxu1  ;;  %v783_v1 = vadd.f32 %v213_v45, %v55_v56  ;;  %v785_v2 = vadd.f32 %v256_v46, %v63_v57  ;;  %v682_v45 = vmov 0.0  }
  0xe3   :  { %v217_v49 = vpop.f32.mrb[3].mxu0  ;;  %v260_v58 = vpop.f32.mrb[3].mxu1  ;;  %v787_v4 = vadd.f32 %v215_v47, %v51_v54  ;;  %v789_v5 = vadd.f32 %v258_v48, %v59_v55  ;;  %v349_v17 = vmax.f32 %v779_v63, %v781_v0 }
  0xe4   :  { %v791_v6 = vadd.f32 %v217_v49, %v55_v56  ;;  %v793_v7 = vadd.f32 %v260_v58, %v63_v57  ;;  %v350_v18 = vmax.f32 %v783_v1, %v785_v2  ;;  %v830_v39 = vpop.permute.xlu1 %451  ;;  %v855_v49 = vadd.s32 768, %v828_v38 }
  0xe5   :  { %v358_v21 = vmax.f32 %v787_v4, %v789_v5  ;;  %vm456_vm1 = vcmp.eq.s32.totalorder %v828_v38, %v830_v39  ;;  %vm458_vm2 = vcmp.eq.s32.totalorder %v442_v40, %v830_v39  ;;  %vm457_vm3 = vcmp.eq.s32.totalorder %v441_v41, %v830_v39 }
  0xe6   :  { %v359_v22 = vmax.f32 %v791_v6, %v793_v7  ;;  %vm459_vm4 = vcmp.eq.s32.totalorder %v835_v42, %v830_v39  ;;  %v597_v46 = vsel %vm456_vm1, 1.0, %v682_v45  ;;  %v599_v47 = vsel %vm458_vm2, 1.0, %v682_v45 }
  0xe7   :  { %v598_v48 = vsel %vm457_vm3, 1.0, %v682_v45  ;;  %v600_v51 = vsel %vm459_vm4, 1.0, %v682_v45  ;;  %vm460_vm6 = vcmp.eq.s32.totalorder %v844_v36, %v830_v39  ;;  %vm461_vm7 = vcmp.eq.s32.totalorder %v847_v43, %v830_v39 }
  0xe8   :  { %v297_v3 = vpop.f32.mrb[4].mxu0  ;;  %v340_v8 = vpop.f32.mrb[4].mxu1  ;;  %vm462_vm13 = vcmp.eq.s32.totalorder %v855_v49, %v830_v39  ;;  %vm545_vm1 = vcmask 7168   ;;  %vm26_vm2 = vcmask 0  }
  0xe9   :  { %v299_v9 = vpop.f32.mrb[5].mxu0  ;;  %v342_v10 = vpop.f32.mrb[5].mxu1  ;;  %v795_v12 = vadd.f32 %v297_v3, %v67_v59  ;;  %v811_v23 = vadd.f32 %v340_v8, %v75_v60  ;;  %27 = vst.msk [vmem:[#allocation2] sm:$0x1] %vm26_vm2, %v682_v45 }
  0xea   :  { %v301_v11 = vpop.f32.mrb[6].mxu0  ;;  %v797_v13 = vadd.f32 %v299_v9, %v71_v61  ;;  %v344_v15 = vpop.f32.mrb[6].mxu1  ;;  %v813_v24 = vadd.f32 %v342_v10, %v79_v62  ;;  %v601_v9 = vsel %vm460_vm6, 1.0, %v682_v45 }
  0xeb   :  { %v799_v14 = vadd.f32 %v301_v11, %v67_v59  ;;  %v303_v16 = vpop.f32.mrb[7].mxu0  ;;  %v346_v20 = vpop.f32.mrb[7].mxu1  ;;  %v351_v27 = vmax.f32 %v349_v17, %v795_v12  ;;  %v819_v29 = vadd.f32 %v344_v15, %v75_v60  ;;  %v504_v59 = vmul.f32 %v597_v46, %v779_v63 }
  0xec   :  { %v805_v19 = vadd.f32 %v303_v16, %v71_v61  ;;  %v352_v28 = vmax.f32 %v350_v18, %v797_v13  ;;  %v821_v30 = vadd.f32 %v346_v20, %v79_v62  ;;  %v849_v44 = vpop.permute.xlu1 %454  ;;  %v505_v60 = vmul.f32 %v598_v48, %v783_v1 }
  0xed   :  { %v360_v25 = vmax.f32 %v358_v21, %v799_v14  ;;  %v353_v31 = vmax.f32 %v351_v27, %v811_v23  ;;  %vm464_vm5 = vcmp.eq.s32.totalorder %v828_v38, %v849_v44  ;;  %vm465_vm8 = vcmp.eq.s32.totalorder %v441_v41, %v849_v44 }
  0xee   :  { %v361_v26 = vmax.f32 %v359_v22, %v805_v19  ;;  %v354_v32 = vmax.f32 %v352_v28, %v813_v24  ;;  %v605_v8 = vsel %vm464_vm5, 1.0, %v682_v45  ;;  %v606_v11 = vsel %vm465_vm8, 1.0, %v682_v45 }
  0xef   :  { %v362_v34 = vmax.f32 %v360_v25, %v819_v29  ;;  %v506_v15 = vmul.f32 %v599_v47, %v781_v0  ;;  %vm466_vm9 = vcmp.eq.s32.totalorder %v442_v40, %v849_v44  ;;  %v520_v18 = vadd.f32 %v505_v60, %v504_v59 }
  0xf0   :  { %v355_v33 = vmax.f32 %v353_v31, %v354_v32  ;;  %v363_v35 = vmax.f32 %v361_v26, %v821_v30  ;;  %v512_v22 = vmul.f32 %v605_v8, %v787_v4  ;;  %v513_v25 = vmul.f32 %v606_v11, %v791_v6 }
  0xf1   :  { %vm467_vm10 = vcmp.eq.s32.totalorder %v835_v42, %v849_v44  ;;  %v607_v31 = vsel %vm466_vm9, 1.0, %v682_v45  ;;  %v521_v32 = vadd.f32 %v520_v18, %v506_v15  ;;  %v507_v41 = vmul.f32 %v600_v51, %v785_v2 }
  0xf2   :  { %356 = vmax.xlane.f32.xlu0 %v355_v33  ;;  %v364_v37 = vmax.f32 %v362_v34, %v363_v35  ;;  %v529_v35 = vadd.f32 %v513_v25, %v512_v22  ;;  %v514_v48 = vmul.f32 %v607_v31, %v789_v5  ;;  %vm468_vm11 = vcmp.eq.s32.totalorder %v844_v36, %v849_v44 }
  0xf3   :  { %vm469_vm12 = vcmp.eq.s32.totalorder %v847_v43, %v849_v44  ;;  %v603_v43 = vsel %vm462_vm13, 1.0, %v682_v45  ;;  %vm470_vm15 = vcmp.eq.s32.totalorder %v855_v49, %v849_v44 }
  0xf4   :  { %v610_v8 = vsel %vm469_vm12, 1.0, %v682_v45 }
  0xf5   :  { %v517_v18 = vmul.f32 %v610_v8, %v805_v19 }
  0xf6   :  { %365 = vmax.xlane.f32.xlu0 %v364_v37  ;;  %v608_v37 = vsel %vm467_vm10, 1.0, %v682_v45 }
  0xf7   :  { %v515_v59 = vmul.f32 %v608_v37, %v793_v7 }
 0x17f   :  { %v857_v50 = vpop.xlane.xlu0 %356 }
 0x180   :  { %v367_v52 = vsub.f32 %v779_v63, %v857_v50  ;;  %v368_v53 = vsub.f32 %v783_v1, %v857_v50  ;;  %v369_v54 = vsub.f32 %v781_v0, %v857_v50  ;;  %v370_v55 = vsub.f32 %v785_v2, %v857_v50 }
 0x181   :  { %v371_v56 = vsub.f32 %v795_v12, %v857_v50  ;;  %v372_v62 = vsub.f32 %v797_v13, %v857_v50  ;;  %v373_v16 = vsub.f32 %v811_v23, %v857_v50  ;;  %v374_v26 = vsub.f32 %v813_v24, %v857_v50 }
 0x182   :  { %v383_v57 = vmul.f32 1.442695, %v367_v52  ;;  %v385_v58 = vmul.f32 1.442695, %v368_v53  ;;  %v387_v3 = vmul.f32 1.442695, %v369_v54  ;;  %v522_v53 = vadd.f32 %v521_v32, %v507_v41 }
 0x183   :  { %v879_v61 = vpop.xlane.xlu0 %365  ;;  %v389_v1 = vmul.f32 1.442695, %v370_v55  ;;  %v391_v17 = vmul.f32 1.442695, %v371_v56  ;;  %v393_v20 = vmul.f32 1.442695, %v372_v62  ;;  %v530_v54 = vadd.f32 %v529_v35, %v514_v48 }
 0x184   :  { %v375_v10 = vsub.f32 %v787_v4, %v879_v61  ;;  %621 = vpow2.f32 %v383_v57  ;;  %v376_v63 = vsub.f32 %v791_v6, %v879_v61  ;;  %v377_v21 = vsub.f32 %v789_v5, %v879_v61 }
 0x185   :  { %623 = vpow2.f32 %v385_v58  ;;  %v378_v27 = vsub.f32 %v793_v7, %v879_v61  ;;  %v602_v4 = vsel %vm461_vm7, 1.0, %v682_v45  ;;  %v395_v6 = vmul.f32 1.442695, %v373_v16 }
 0x186   :  { %625 = vpow2.f32 %v387_v3  ;;  %v399_v0 = vmul.f32 1.442695, %v375_v10  ;;  %v401_v28 = vmul.f32 1.442695, %v376_v63  ;;  %v379_v33 = vsub.f32 %v799_v14, %v879_v61 }
 0x187   :  { %627 = vpow2.f32 %v389_v1  ;;  %v403_v34 = vmul.f32 1.442695, %v377_v21  ;;  %v397_v40 = vmul.f32 1.442695, %v374_v26  ;;  %v380_v42 = vsub.f32 %v805_v19, %v879_v61 }
 0x188   :  { %629 = vpow2.f32 %v391_v17  ;;  %v405_v46 = vmul.f32 1.442695, %v378_v27  ;;  %v381_v2 = vsub.f32 %v819_v29, %v879_v61  ;;  %v407_v51 = vmul.f32 1.442695, %v379_v33 }
 0x189   :  { %631 = vpow2.f32 %v393_v20  ;;  %v508_v55 = vmul.f32 %v601_v9, %v795_v12  ;;  %v609_v57 = vsel %vm468_vm11, 1.0, %v682_v45  ;;  %v382_v36 = vsub.f32 %v821_v30, %v879_v61 }
 0x18a   :  { %633 = vpow2.f32 %v399_v0  ;;  %v409_v58 = vmul.f32 1.442695, %v380_v42  ;;  %v447_v62 = vadd.s32 896, %v828_v38  ;;  %v509_v12 = vmul.f32 %v602_v4, %v797_v13 }
 0x18b   :  { %635 = vpow2.f32 %v401_v28  ;;  %v411_v9 = vmul.f32 1.442695, %v381_v2  ;;  %v531_v11 = vadd.f32 %v530_v54, %v515_v59  ;;  %v523_v63 = vadd.f32 %v522_v53, %v508_v55 }
 0x18c   :  { %637 = vpow2.f32 %v395_v6  ;;  %v516_v7 = vmul.f32 %v609_v57, %v799_v14  ;;  %v413_v16 = vmul.f32 1.442695, %v382_v36  ;;  %vm463_vm14 = vcmp.eq.s32.totalorder %v447_v62, %v830_v39 }
 0x18d   :  { %639 = vpow2.f32 %v403_v34  ;;  %v524_v25 = vadd.f32 %v523_v63, %v509_v12  ;;  %v510_v27 = vmul.f32 %v603_v43, %v811_v23  ;;  %v611_v6 = vsel %vm470_vm15, 1.0, %v682_v45 }
 0x18e   :  { %v622_v47 = vpop.eup %621  ;;  %641 = vpow2.f32 %v397_v40  ;;  %v532_v20 = vadd.f32 %v531_v11, %v516_v7  ;;  %v604_v19 = vsel %vm463_vm14, 1.0, %v682_v45  ;;  %vm471_vm0 = vcmp.eq.s32.totalorder %v447_v62, %v849_v44 }
 0x18f   :  { %v624_v52 = vpop.eup %623  ;;  %643 = vpow2.f32 %v405_v46  ;;  %v525_v33 = vadd.f32 %v524_v25, %v510_v27  ;;  %v518_v37 = vmul.f32 %v611_v6, %v819_v29  ;;  %v511_v40 = vmul.f32 %v604_v19, %v813_v24 }
 0x190   :  { %v415_v56 = vadd.f32 %v624_v52, %v622_v47  ;;  %v626_v5 = vpop.eup %625  ;;  %645 = vpow2.f32 %v407_v51  ;;  %v533_v34 = vadd.f32 %v532_v20, %v517_v18  ;;  %v612_v42 = vsel %vm471_vm0, 1.0, %v682_v45 }
 0x191   :  { %v628_v3 = vpop.eup %627  ;;  %647 = vpow2.f32 %v409_v58  ;;  %v526_v47 = vadd.f32 %v525_v33, %v511_v40  ;;  %v519_v44 = vmul.f32 %v612_v42, %v821_v30  ;;  %v541_v30 = vld [vmem:[%s981_s4] sm:$0xff] }
 0x192   :  { %v416_v60 = vadd.f32 %v626_v5, %v415_v56  ;;  %v630_v10 = vpop.eup %629  ;;  %649 = vpow2.f32 %v411_v9  ;;  %v534_v39 = vadd.f32 %v533_v34, %v518_v37 }
 0x193   :  { %v632_v15 = vpop.eup %631  ;;  %651 = vpow2.f32 %v413_v16 }
 0x194   :  { %v417_v1 = vadd.f32 %v628_v3, %v416_v60  ;;  %v634_v38 = vpop.eup %633  ;;  %v535_v51 = vadd.f32 %v534_v39, %v519_v44  ;;  %v542_v60 = vld [vmem:[%s981_s4 + $0x8] sm:$0xff]  ;;  %s683_s4 = smov [#allocation2]  }
 0x195   :  { %v636_v13 = vpop.eup %635  ;;  %s568_s8 = sshll.u32 %s683_s4, 4  ;;  %s569_s8 = int_to_ptr.vmem [resolvable:$true] %s568_s8 }
 0x196   :  { %v418_v17 = vadd.f32 %v630_v10, %v417_v1  ;;  %v638_v14 = vpop.eup %637  ;;  %v424_v22 = vadd.f32 %v636_v13, %v634_v38  ;;  %v538_v38 = vld [vmem:[#allocation2] sm:$0x1]  ;;  %s657_s10 = scalar_lea.vmem %s569_s8, 16  ;;  %s661_s11 = scalar_lea.vmem %s569_s8, 32 }
 0x197   :  { %v640_v26 = vpop.eup %639  ;;  %p658_p0 = scmp.ne.s32.totalorder %s569_s8, %s657_s10  ;;  %p662_p1 = scmp.lt.s32.totalorder %s569_s8, %s569_s8 }
 0x198   :  { %v419_v21 = vadd.f32 %v632_v15, %v418_v17  ;;  %v642_v0 = vpop.eup %641  ;;  %v425_v31 = vadd.f32 %v640_v26, %v424_v22  ;;  %p663_p2 = scmp.lt.s32.totalorder %s661_s11, %s657_s10 }
 0x199   :  { %v644_v4 = vpop.eup %643 }
 0x19a   :  { %v420_v28 = vadd.f32 %v638_v14, %v419_v21  ;;  %v426_v32 = vadd.f32 %v644_v4, %v425_v31  ;;  %v646_v35 = vpop.eup %645  ;;  %p664_p3 = por %p663_p2, %p662_p1 }
 0x19b   :  { %v648_v41 = vpop.eup %647 }
 0x19c   :  { %v421_v49 = vadd.f32 %v642_v0, %v420_v28  ;;  %v427_v23 = vadd.f32 %v646_v35, %v426_v32  ;;  %v650_v48 = vpop.eup %649  ;;  %p665_p4 = pnand %p664_p3, %p658_p0 }
 0x19d   :  { %v652_v53 = vpop.eup %651 }
 0x19e   :  { %422 = vadd.xlane.f32.xlu0 %v421_v49  ;;  %v428_v46 = vadd.f32 %v648_v41, %v427_v23 }
 0x1a0   :  { %v429_v52 = vadd.f32 %v650_v48, %v428_v46 }
 0x1a2   :  { %527 = vadd.xlane.f32.xlu0 %v526_v47  ;;  %v430_v2 = vadd.f32 %v652_v53, %v429_v52 }
 0x1a4   :  { %431 = vadd.xlane.f32.xlu1 %v430_v2 }
 0x1a6   :  { %536 = vadd.xlane.f32.xlu0 %v535_v51 }
 0x22b   :  { %v423_v29 = vpop.xlane.xlu0 %422 }
 0x22c   :  { %653 = vlog2.f32 %v423_v29 }
 0x22f   :  { %v528_v5 = vpop.xlane.xlu0 %527 }
 0x231   :  { %v432_v54 = vpop.xlane.xlu1 %431 }
 0x232   :  { %655 = vlog2.f32 %v432_v54 }
 0x233   :  { %v537_v62 = vpop.xlane.xlu0 %536 }
 0x236   :  { %v654_v24 = vpop.eup %653 }
 0x237   :  { %v434_v55 = vmul.f32 0.6931472, %v654_v24 }
 0x239   :  { %v437_v56 = vadd.f32 %v434_v55, %v857_v50 }
 0x23b   :  { %v539_v58 = vsub.f32 %v437_v56, %v528_v5 }
 0x23c   :  { %v656_v57 = vpop.eup %655 }
 0x23d   :  { %v436_v36 = vmul.f32 0.6931472, %v656_v57  ;;  %v543_v3 = vmul.f32 %v541_v30, %v539_v58 }
 0x23f   :  { %v438_v59 = vadd.f32 %v436_v36, %v879_v61  ;;  %v546_v50 = vsel %vm545_vm1, %v543_v3, 0.0 }
 0x241   :  { %v540_v12 = vsub.f32 %v438_v59, %v537_v62 }
 0x243   :  { %v544_v8 = vmul.f32 %v542_v60, %v540_v12 }
 0x245   :  { %v547_v9 = vsel %vm545_vm1, %v544_v8, 0.0 }
 0x246   :  { %v548_v10 = vadd.f32 %v547_v9, %v546_v50 }
 0x248   :  { %549 = vadd.xlane.f32.xlu0 %v548_v10 }
 0x2d5   :  { %v550_v11 = vpop.xlane.xlu0 %549 }
 0x2d6   :  { %v551_v63 = vrot.slane %v550_v11, 4 }
 0x2d8   :  { %v552_v61 = vadd.f32 %v551_v63, %v550_v11 }
 0x2da   :  { %v553_v7 = vrot.slane %v552_v61, 2 }
 0x2dc   :  { %v554_v1 = vadd.f32 %v553_v7, %v552_v61 }
 0x2de   :  { %v555_v15 = vrot.slane %v554_v1, 1 }
 0x2e0   :  { %v556_v16 = vadd.f32 %v555_v15, %v554_v1 }
 0x2e2   :  { %613 = vpush %v556_v16 }
 0x313   :  { %s614_s9 = spop %613 }
 0x314   :  { %v558_v17 = vstv %s614_s9 }
 0x315   :  { %v559_v13 = vadd.f32 %v558_v17, %v538_v38 }
 0x317   :  { %561 = vst.msk [vmem:[#allocation2] sm:$0x1] %vm26_vm2, %v559_v13 }
 0x318   :  { %668 = shalt.err (!%p665_p4)
}
 0x319   :  { %s669_s14 = scalar_lea.hbm %s982_s5, 16 }
 0x31a   :  { %p670_p5 = scmp.ne.s32.totalorder %s982_s5, %s669_s14  ;;  %p673_p6 = scmp.lt.u32.totalorder %s669_s14, %s982_s5 }
 0x31c   :  { %p675_p7 = pnand %p673_p6, %p670_p5 }
 0x31e   :  { %678 = shalt.err (!%p675_p7)
}
 0x31f   :  { %571 = dma.vmem_to_hbm [thread:$0]  %s569_s8, 16, %s982_s5, [#allocation3]  }
 0x320   :  { %679 = dma.done.wait [#allocation3], 16  }
 0x321   :  { %680 = vsyncadd [#allocation3], 4294967280 }
 0x322   :  { %575 = vsyncpa [#allocation3], 1 }

// kernel: vallf_forward.50
= control target key start
LH: loop header
LB: loop body
LE: loop exit
PB: predicated region body
PF: predicated region fallthrough
CT: control target
= control target key end

     0   :  { %v820_v2 = vmov 0   ;;  %vm196_vm0 = vcmask 261120   ;;  %s1165_s0 = inlined_call_operand.vmem [shape: bf16[16,32], index: 0, kind: input, shape index: {}]   ;;  %s1166_s1 = inlined_call_operand.vmem [shape: bf16[32,1025], index: 1, kind: input, shape index: {}]   ;;  %s1167_s2 = inlined_call_operand.vmem [shape: f32[1,1025], index: 2, kind: input, shape index: {}]   ;;  %s1168_s3 = inlined_call_operand.vmem [shape: s32[16,1], index: 3, kind: input, shape index: {}]   ;;  %s1169_s4 = inlined_call_operand.vmem [shape: f32[16,1], index: 4, kind: input, shape index: {}]   ;;  %s1170_s5 = inlined_call_operand.hbm [shape: f32[1,1], index: 5, kind: output, shape index: {}]  }
   0x1   :  { %v729_v0 = vld [vmem:[%s1166_s1 + $0x4] ss:$36 sps:$4 sm:$0xff]   ;;  %v731_v1 = vld [vmem:[%s1166_s1 + $0xc] ss:$36 sps:$4 sm:$0xff]   ;;  %232 = vmatprep.mubr.bf16.mxu0 %v820_v2  ;;  %275 = vmatprep.mubr.bf16.mxu1 %v820_v2  ;;  %v737_v6 = vld [vmem:[%s1166_s1 + $0x54] ss:$36 sps:$4 sm:$0xff]  }
   0x2   :  { %200 = vmatprep.subr.bf16.mxu0 %v729_v0  ;;  %v733_v3 = vld [vmem:[%s1166_s1] ss:$36 sps:$4 sm:$0xff]   ;;  %v734_v4 = vld [vmem:[%s1166_s1 + $0x8] ss:$36 sps:$4 sm:$0xff]   ;;  %727 = vset.pattern.permute.xlu1 %v820_v2  ;;  %v740_v8 = vld [vmem:[%s1166_s1 + $0x50] ss:$36 sps:$4 sm:$0xff]  }
   0x3   :  { %243 = vmatprep.subr.bf16.mxu1 %v731_v1  ;;  %v735_v5 = vld [vmem:[%s1166_s1 + $0x4c] ss:$36 sps:$4 sm:$0xff]   ;;  %728 = vset.pattern.permute.xlu0 %v820_v2  ;;  %v741_v9 = vld [vmem:[%s1165_s0] sm:$0xff]   ;;  %v744_v11 = vld [vmem:[%s1166_s1 + $0x14] ss:$36 sps:$4 sm:$0xff]  }
   0x4   :  { %201 = vmatpush1.bf16.msra.mxu0 %v733_v3  ;;  %244 = vmatpush1.bf16.msra.mxu1 %v734_v4  ;;  %v739_v7 = vld [vmem:[%s1166_s1 + $0x48] ss:$36 sps:$4 sm:$0xff]   ;;  %v742_v10 = vld [vmem:[%s1166_s1 + $0x10] ss:$36 sps:$4 sm:$0xff]   ;;  %v745_v12 = vld [vmem:[%s1166_s1 + $0x18] ss:$36 sps:$4 sm:$0xff]  }
   0x5   :  { %202 = vmatprep.subr.bf16.mxu0 %v735_v5  ;;  %245 = vmatprep.subr.bf16.mxu1 %v737_v6  ;;  %v747_v13 = vld [vmem:[%s1166_s1 + $0x1c] ss:$36 sps:$4 sm:$0xff]   ;;  %v753_v16 = vld [vmem:[%s1166_s1 + $0x64] ss:$36 sps:$4 sm:$0xff]  }
   0x6   :  { %v750_v14 = vld [vmem:[%s1166_s1 + $0x5c] ss:$36 sps:$4 sm:$0xff]  }
   0x7   :  { %v748_v15 = vld [vmem:[%s1166_s1 + $0x58] ss:$36 sps:$4 sm:$0xff]   ;;  %v751_v17 = vld [vmem:[%s1166_s1 + $0x60] ss:$36 sps:$4 sm:$0xff]  }
   0x8   :  { %203 = vmatpush1.bf16.msra.mxu0 %v739_v7  ;;  %246 = vmatpush1.bf16.msra.mxu1 %v740_v8  ;;  %v528_v18 = vld [vmem:[%s1168_s3] sm:$0xff] }
   0x9   :  { %286 = vmatprep.subr.bf16.mxu0 %v744_v11  ;;  %329 = vmatprep.subr.bf16.mxu1 %v747_v13 }
   0xb   :  { %687 = vmatmul.mubr.msk.bf16.vlgmr.msra.gmra.mrb[0].mxu0 %vm196_vm0, %v741_v9  ;;  %688 = vmatmul.mubr.msk.bf16.vlgmr.msra.gmra.mrb[0].mxu1 %vm196_vm0, %v741_v9 }
   0xc   :  { %287 = vmatpush1.bf16.msra.mxu0 %v742_v10  ;;  %330 = vmatpush1.bf16.msra.mxu1 %v745_v12 }
   0xd   :  { %288 = vmatprep.subr.bf16.mxu0 %v750_v14  ;;  %331 = vmatprep.subr.bf16.mxu1 %v753_v16 }
   0xe   :  { %318 = vmatprep.mubr.bf16.mxu0 %v820_v2  ;;  %361 = vmatprep.mubr.bf16.mxu1 %v820_v2 }
   0xf   :  { %10 = vsyncpa [#allocation3], 0  ;;  %531 = vperm.xlu1 %727, %v528_v18   ;;  %v754_v19 = vld [vmem:[%s1166_s1 + $0x20] ss:$36 sps:$4 sm:$0xff]   ;;  %v821_v20 = vmov 0.0   ;;  %v529_v21 = vld [vmem:[%s1168_s3 + $0x8] sm:$0xff]  ;;  %v54_v23 = vlaneseq }
  0x10   :  { %289 = vmatpush1.bf16.msra.mxu0 %v748_v15  ;;  %332 = vmatpush1.bf16.msra.mxu1 %v751_v17  ;;  %v755_v22 = vld [vmem:[%s1166_s1 + $0x68] ss:$36 sps:$4 sm:$0xff]   ;;  %vm822_vm1 = vmmov 0   ;;  %v50_v29 = vld [vmem:[%s1167_s2] sm:$0xff]  ;;  %vm419_vm2 = vcmask 7168  }
  0x11   :  { %713 = vmatprep.subr.bf16.mxu0 %v821_v20  ;;  %v55_v24 = vshrl.u32 %v54_v23, 7  ;;  %v667_v10 = vld [vmem:[%s1167_s2 + $0x8] ss:$0 sm:$0xff] }
  0x13   :  { %689 = vmatmul.mubr.msk.bf16.vlgmr.msra.gmra.mrb[4].mxu0 %vm196_vm0, %v741_v9  ;;  %690 = vmatmul.mubr.msk.bf16.vlgmr.msra.gmra.mrb[4].mxu1 %vm196_vm0, %v741_v9  ;;  %v56_v25 = vsub.s32 0, %v55_v24  ;;  %v64_v27 = vsub.s32 2, %v55_v24  ;;  %v60_v30 = vsub.s32 1, %v55_v24  ;;  %v68_v33 = vsub.s32 3, %v55_v24 }
  0x14   :  { %714 = vmatpush3.bf16.msra.mxu0 %v754_v19  ;;  %717 = vmatprep.mubr.msk.bf16.mxu0 %vm822_vm1, %v821_v20  ;;  %v72_v36 = vsub.s32 4, %v55_v24  ;;  %v76_v41 = vsub.s32 5, %v55_v24  ;;  %v80_v43 = vsub.s32 6, %v55_v24  ;;  %v84_v51 = vsub.s32 7, %v55_v24 }
  0x15   :  { %715 = vmatprep.subr.bf16.mxu0 %v821_v20  ;;  %534 = vperm.xlu1 %727, %v529_v21   ;;  %v57_v39 = vrot.slane %v50_v29, %v56_v25  ;;  %v65_v40 = vrot.slane %v50_v29, %v64_v27  ;;  %v61_v42 = vrot.slane %v50_v29, %v60_v30 }
  0x16   :  { %v69_v44 = vrot.slane %v50_v29, %v68_v33  ;;  %v73_v45 = vrot.slane %v50_v29, %v72_v36  ;;  %v77_v49 = vrot.slane %v50_v29, %v76_v41  ;;  %v81_v54 = vrot.slane %v50_v29, %v80_v43 }
  0x17   :  { %v85_v3 = vrot.slane %v50_v29, %v84_v51 }
  0x18   :  { %716 = vmatpush3.bf16.msra.mxu0 %v755_v22 }
  0x1b   :  { %718 = vmatmul.mubr.msk.bf16.vlgmr.msra.gmra.mrb[8].mxu0 %vm196_vm0, %v741_v9 }
  0xde   :  { %v234_v26 = vpop.f32.mrb[0].mxu0  ;;  %v277_v28 = vpop.f32.mrb[0].mxu1 }
  0xdf   :  { %v236_v31 = vpop.f32.mrb[1].mxu0  ;;  %v279_v32 = vpop.f32.mrb[1].mxu1  ;;  %v929_v46 = vadd.f32 %v234_v26, %v57_v39  ;;  %v931_v47 = vadd.f32 %v277_v28, %v65_v40 }
  0xe0   :  { %v238_v34 = vpop.f32.mrb[2].mxu0  ;;  %v281_v35 = vpop.f32.mrb[2].mxu1  ;;  %v933_v52 = vadd.f32 %v236_v31, %v61_v42  ;;  %v935_v56 = vadd.f32 %v279_v32, %v69_v44 }
  0xe1   :  { %v240_v37 = vpop.f32.mrb[3].mxu0  ;;  %v283_v38 = vpop.f32.mrb[3].mxu1  ;;  %v937_v57 = vadd.f32 %v238_v34, %v57_v39  ;;  %v939_v58 = vadd.f32 %v281_v35, %v65_v40  ;;  %v413_v0 = vmax.f32 %v929_v46, %v931_v47 }
  0xe2   :  { %v949_v4 = vadd.f32 %v240_v37, %v61_v42  ;;  %v951_v5 = vadd.f32 %v283_v38, %v69_v44  ;;  %v414_v6 = vmax.f32 %v933_v52, %v935_v56  ;;  %v988_v37 = vpop.permute.xlu1 %531  ;;  %v519_v38 = vand.u32 127, %v54_v23 }
  0xe3   :  { %v425_v7 = vmax.f32 %v937_v57, %v939_v58 }
  0xe4   :  { %v426_v17 = vmax.f32 %v949_v4, %v951_v5  ;;  %v521_v39 = vadd.s32 256, %v519_v38  ;;  %v520_v40 = vadd.s32 128, %v519_v38  ;;  %v522_v41 = vadd.s32 384, %v519_v38 }
  0xe5   :  { %v991_v42 = vadd.s32 512, %v519_v38  ;;  %v993_v43 = vadd.s32 640, %v519_v38  ;;  %vm536_vm3 = vcmp.eq.s32.totalorder %v519_v38, %v988_v37 }
  0xe6   :  { %v320_v48 = vpop.f32.mrb[4].mxu0  ;;  %v363_v50 = vpop.f32.mrb[4].mxu1  ;;  %vm538_vm4 = vcmp.eq.s32.totalorder %v521_v39, %v988_v37  ;;  %vm537_vm5 = vcmp.eq.s32.totalorder %v520_v40, %v988_v37  ;;  %vm539_vm6 = vcmp.eq.s32.totalorder %v522_v41, %v988_v37  ;;  %v692_v23 = vsel %vm536_vm3, 1.0, %v821_v20 }
  0xe7   :  { %v322_v53 = vpop.f32.mrb[5].mxu0  ;;  %v365_v55 = vpop.f32.mrb[5].mxu1  ;;  %v941_v59 = vadd.f32 %v320_v48, %v73_v45  ;;  %v958_v9 = vadd.f32 %v363_v50, %v81_v54  ;;  %vm540_vm8 = vcmp.eq.s32.totalorder %v991_v42, %v988_v37  ;;  %vm541_vm9 = vcmp.eq.s32.totalorder %v993_v43, %v988_v37 }
  0xe8   :  { %v324_v60 = vpop.f32.mrb[6].mxu0  ;;  %v367_v61 = vpop.f32.mrb[6].mxu1  ;;  %v945_v1 = vadd.f32 %v322_v53, %v77_v49  ;;  %v966_v13 = vadd.f32 %v365_v55, %v85_v3  ;;  %v1010_v48 = vadd.s32 896, %v519_v38  ;;  %v694_v50 = vsel %vm538_vm4, 1.0, %v821_v20 }
  0xe9   :  { %v326_v62 = vpop.f32.mrb[7].mxu0  ;;  %v369_v63 = vpop.f32.mrb[7].mxu1  ;;  %v947_v2 = vadd.f32 %v324_v60, %v73_v45  ;;  %v415_v8 = vmax.f32 %v413_v0, %v941_v59  ;;  %v968_v14 = vadd.f32 %v367_v61, %v81_v54  ;;  %v998_v45 = vadd.s32 768, %v519_v38 }
  0xea   :  { %v963_v11 = vadd.f32 %v326_v62, %v77_v49  ;;  %v416_v16 = vmax.f32 %v414_v6, %v945_v1  ;;  %v982_v29 = vadd.f32 %v369_v63, %v85_v3  ;;  %v995_v44 = vpop.permute.xlu1 %534  ;;  %v1012_v49 = vadd.s32 1024, %v519_v38 }
  0xeb   :  { %v427_v12 = vmax.f32 %v425_v7, %v947_v2  ;;  %v417_v22 = vmax.f32 %v415_v8, %v958_v9  ;;  %vm545_vm7 = vcmp.eq.s32.totalorder %v519_v38, %v995_v44  ;;  %vm546_vm10 = vcmp.eq.s32.totalorder %v520_v40, %v995_v44 }
  0xec   :  { %v428_v24 = vmax.f32 %v426_v17, %v963_v11  ;;  %v418_v30 = vmax.f32 %v416_v16, %v966_v13  ;;  %v693_v51 = vsel %vm537_vm5, 1.0, %v821_v20  ;;  %v695_v53 = vsel %vm539_vm6, 1.0, %v821_v20 }
  0xed   :  { %v429_v28 = vmax.f32 %v427_v12, %v968_v14  ;;  %vm542_vm11 = vcmp.eq.s32.totalorder %v998_v45, %v988_v37  ;;  %v701_v54 = vsel %vm545_vm7, 1.0, %v821_v20  ;;  %vm547_vm12 = vcmp.eq.s32.totalorder %v521_v39, %v995_v44 }
  0xee   :  { %v406_v15 = vpop.f32.mrb[8].mxu0  ;;  %v430_v35 = vmax.f32 %v428_v24, %v982_v29  ;;  %v696_v55 = vsel %vm540_vm8, 1.0, %v821_v20  ;;  %v1023_v60 = vsel %vm541_vm9, 1.0, %v821_v20  ;;  %v702_v62 = vsel %vm546_vm10, 1.0, %v821_v20 }
  0xef   :  { %v973_v18 = vadd.f32 %v667_v10, %v406_v15  ;;  %v719_v19 = vpop.f32.mrb[9].mxu0  ;;  %v590_v6 = vmul.f32 %v692_v23, %v929_v46  ;;  %v591_v7 = vmul.f32 %v693_v51, %v933_v52  ;;  %vm548_vm13 = vcmp.eq.s32.totalorder %v522_v41, %v995_v44 }
  0xf0   :  { %v409_v21 = vpop.f32.mrb[10].mxu0  ;;  %v599_v17 = vmul.f32 %v701_v54, %v937_v57  ;;  %v600_v19 = vmul.f32 %v702_v62, %v949_v4  ;;  %v1053_v24 = vsel %vm542_vm11, 1.0, %v821_v20  ;;  %v593_v38 = vmul.f32 %v695_v53, %v935_v56 }
  0xf1   :  { %v977_v25 = vadd.f32 %v667_v10, %v409_v21  ;;  %v720_v26 = vpop.f32.mrb[11].mxu0  ;;  %v420_v27 = vsel %vm419_vm2, %v973_v18, -inf  ;;  %v703_v10 = vsel %vm547_vm12, 1.0, %v821_v20  ;;  %vm549_vm14 = vcmp.eq.s32.totalorder %v991_v42, %v995_v44 }
  0xf2   :  { %v421_v31 = vmax.f32 %v417_v22, %v420_v27  ;;  %v592_v22 = vmul.f32 %v694_v50, %v931_v47  ;;  %v608_v27 = vadd.f32 %v591_v7, %v590_v6  ;;  %vm543_vm15 = vcmp.eq.s32.totalorder %v1010_v48, %v988_v37 }
  0xf3   :  { %v431_v32 = vsel %vm419_vm2, %v977_v25, -inf  ;;  %vm550_vm0 = vcmp.eq.s32.totalorder %v993_v43, %v995_v44  ;;  %vm551_vm1 = vcmp.eq.s32.totalorder %v998_v45, %v995_v44  ;;  %vm544_vm3 = vcmp.eq.s32.totalorder %v1012_v49, %v988_v37 }
  0xf4   :  { %v422_v33 = vmax.f32 %v421_v31, %v418_v30  ;;  %v432_v34 = vmax.f32 %v429_v28, %v431_v32  ;;  %v601_v31 = vmul.f32 %v703_v10, %v939_v58  ;;  %v609_v40 = vadd.f32 %v608_v27, %v592_v22 }
  0xf5   :  { %v699_v22 = vsel %vm543_vm15, 1.0, %v821_v20  ;;  %v700_v45 = vsel %vm544_vm3, 1.0, %v821_v20  ;;  %vm552_vm4 = vcmp.eq.s32.totalorder %v1010_v48, %v995_v44  ;;  %vm553_vm5 = vcmp.eq.s32.totalorder %v1012_v49, %v995_v44 }
  0xf6   :  { %423 = vmax.xlane.f32.xlu0 %v422_v33  ;;  %v433_v36 = vmax.f32 %v432_v34, %v430_v35  ;;  %v619_v34 = vadd.f32 %v600_v19, %v599_v17  ;;  %v610_v62 = vadd.f32 %v609_v40, %v593_v38  ;;  %v708_v48 = vsel %vm552_vm4, 1.0, %v821_v20 }
  0xf7   :  { %vm26_vm6 = vcmask 0  }
  0xf8   :  { %v620_v51 = vadd.f32 %v619_v34, %v601_v31  ;;  %27 = vst.msk [vmem:[#allocation2] sm:$0x1] %vm26_vm6, %v821_v20 }
  0xfa   :  { %434 = vmax.xlane.f32.xlu0 %v433_v36 }
 0x183   :  { %v1025_v61 = vpop.xlane.xlu0 %423 }
 0x184   :  { %v436_v63 = vsub.f32 %v929_v46, %v1025_v61  ;;  %v437_v0 = vsub.f32 %v933_v52, %v1025_v61  ;;  %v438_v3 = vsub.f32 %v931_v47, %v1025_v61  ;;  %v439_v8 = vsub.f32 %v935_v56, %v1025_v61 }
 0x185   :  { %v440_v12 = vsub.f32 %v941_v59, %v1025_v61  ;;  %v441_v46 = vsub.f32 %v945_v1, %v1025_v61  ;;  %v442_v26 = vsub.f32 %v958_v9, %v1025_v61  ;;  %v704_v47 = vsel %vm548_vm13, 1.0, %v821_v20 }
 0x186   :  { %v454_v15 = vmul.f32 1.442695, %v436_v63  ;;  %v456_v16 = vmul.f32 1.442695, %v437_v0  ;;  %v458_v52 = vmul.f32 1.442695, %v438_v3  ;;  %v444_v35 = vsub.f32 %v973_v18, %v1025_v61 }
 0x187   :  { %v1044_v21 = vpop.xlane.xlu0 %434  ;;  %v460_v28 = vmul.f32 1.442695, %v439_v8  ;;  %v462_v32 = vmul.f32 1.442695, %v440_v12  ;;  %v464_v36 = vmul.f32 1.442695, %v441_v46  ;;  %v602_v50 = vmul.f32 %v704_v47, %v951_v5 }
 0x188   :  { %756 = vpow2.f32 %v454_v15  ;;  %v445_v30 = vsub.f32 %v937_v57, %v1044_v21  ;;  %v446_v33 = vsub.f32 %v949_v4, %v1044_v21  ;;  %v466_v57 = vmul.f32 1.442695, %v442_v26 }
 0x189   :  { %758 = vpow2.f32 %v456_v16  ;;  %v447_v39 = vsub.f32 %v939_v58, %v1044_v21  ;;  %v443_v4 = vsub.f32 %v966_v13, %v1025_v61  ;;  %v448_v56 = vsub.f32 %v951_v5, %v1044_v21 }
 0x18a   :  { %760 = vpow2.f32 %v458_v52  ;;  %v472_v41 = vmul.f32 1.442695, %v445_v30  ;;  %v474_v23 = vmul.f32 1.442695, %v446_v33  ;;  %v470_v53 = vmul.f32 1.442695, %v444_v35 }
 0x18b   :  { %762 = vpow2.f32 %v460_v28  ;;  %v449_v58 = vsub.f32 %v947_v2, %v1044_v21  ;;  %v476_v54 = vmul.f32 1.442695, %v447_v39  ;;  %v594_v63 = vmul.f32 %v696_v55, %v941_v59 }
 0x18c   :  { %764 = vpow2.f32 %v462_v32  ;;  %v468_v0 = vmul.f32 1.442695, %v443_v4  ;;  %v705_v5 = vsel %vm549_vm14, 1.0, %v821_v20  ;;  %v450_v6 = vsub.f32 %v963_v11, %v1044_v21 }
 0x18d   :  { %766 = vpow2.f32 %v464_v36  ;;  %v478_v7 = vmul.f32 1.442695, %v448_v56  ;;  %v621_v10 = vadd.f32 %v620_v51, %v602_v50  ;;  %v595_v12 = vmul.f32 %v1023_v60, %v945_v1 }
 0x18e   :  { %768 = vpow2.f32 %v466_v57  ;;  %v706_v59 = vsel %vm550_vm0, 1.0, %v821_v20  ;;  %v451_v42 = vsub.f32 %v968_v14, %v1044_v21  ;;  %v480_v15 = vmul.f32 1.442695, %v449_v58 }
 0x18f   :  { %770 = vpow2.f32 %v472_v41  ;;  %v611_v17 = vadd.f32 %v610_v62, %v594_v63  ;;  %v603_v19 = vmul.f32 %v705_v5, %v947_v2  ;;  %v453_v1 = vsub.f32 %v977_v25, %v1044_v21 }
 0x190   :  { %772 = vpow2.f32 %v474_v23  ;;  %v452_v43 = vsub.f32 %v982_v29, %v1044_v21  ;;  %v482_v46 = vmul.f32 1.442695, %v450_v6  ;;  %v707_v26 = vsel %vm551_vm1, 1.0, %v821_v20 }
 0x191   :  { %774 = vpow2.f32 %v470_v53  ;;  %v484_v28 = vmul.f32 1.442695, %v451_v42  ;;  %v612_v31 = vadd.f32 %v611_v17, %v595_v12  ;;  %v596_v47 = vmul.f32 %v1053_v24, %v958_v9 }
 0x192   :  { %v757_v3 = vpop.eup %756  ;;  %776 = vpow2.f32 %v476_v54  ;;  %v604_v32 = vmul.f32 %v706_v59, %v963_v11  ;;  %v488_v33 = vmul.f32 1.442695, %v453_v1  ;;  %v622_v35 = vadd.f32 %v621_v10, %v603_v19 }
 0x193   :  { %v759_v8 = vpop.eup %758  ;;  %778 = vpow2.f32 %v468_v0  ;;  %v486_v38 = vmul.f32 1.442695, %v452_v43  ;;  %v597_v11 = vmul.f32 %v699_v22, %v966_v13  ;;  %v605_v24 = vmul.f32 %v707_v26, %v968_v14 }
 0x194   :  { %v490_v55 = vadd.f32 %v759_v8, %v757_v3  ;;  %v761_v16 = vpop.eup %760  ;;  %780 = vpow2.f32 %v478_v7  ;;  %v623_v56 = vadd.f32 %v622_v35, %v604_v32  ;;  %v613_v23 = vadd.f32 %v612_v31, %v596_v47  ;;  %v634_v31 = vld [vmem:[%s1169_s4 + $0x8] sm:$0xff] }
 0x195   :  { %v763_v52 = vpop.eup %762  ;;  %782 = vpow2.f32 %v480_v15  ;;  %v598_v51 = vmul.f32 %v700_v45, %v973_v18  ;;  %v709_v13 = vsel %vm553_vm5, 1.0, %v821_v20  ;;  %v606_v0 = vmul.f32 %v708_v48, %v982_v29 }
 0x196   :  { %v491_v60 = vadd.f32 %v761_v16, %v490_v55  ;;  %v765_v2 = vpop.eup %764  ;;  %784 = vpow2.f32 %v482_v46  ;;  %v614_v5 = vadd.f32 %v613_v23, %v597_v11  ;;  %v624_v6 = vadd.f32 %v623_v56, %v605_v24  ;;  %v630_v11 = vld [vmem:[#allocation2] sm:$0x1] }
 0x197   :  { %v767_v30 = vpop.eup %766  ;;  %786 = vpow2.f32 %v484_v28  ;;  %v615_v7 = vsel %vm419_vm2, %v598_v51, 0.0  ;;  %v607_v8 = vmul.f32 %v709_v13, %v977_v25  ;;  %v633_v28 = vld [vmem:[%s1169_s4] sm:$0xff]  ;;  %s823_s4 = smov [#allocation2]  }
 0x198   :  { %v492_v27 = vadd.f32 %v763_v52, %v491_v60  ;;  %v769_v34 = vpop.eup %768  ;;  %788 = vpow2.f32 %v488_v33  ;;  %v616_v44 = vadd.f32 %v615_v7, %v614_v5  ;;  %v625_v49 = vadd.f32 %v624_v6, %v606_v0  ;;  %s659_s14 = sshll.u32 %s823_s4, 4  ;;  %s660_s14 = int_to_ptr.vmem [resolvable:$true] %s659_s14 }
 0x199   :  { %v771_v57 = vpop.eup %770  ;;  %790 = vpow2.f32 %v486_v38  ;;  %v626_v15 = vsel %vm419_vm2, %v607_v8, 0.0  ;;  %s796_s16 = scalar_lea.vmem %s660_s14, 16  ;;  %s800_s17 = scalar_lea.vmem %s660_s14, 32 }
 0x19a   :  { %v493_v36 = vadd.f32 %v765_v2, %v492_v27  ;;  %v773_v39 = vpop.eup %772  ;;  %v627_v19 = vadd.f32 %v626_v15, %v625_v49  ;;  %p797_p0 = scmp.ne.s32.totalorder %s660_s14, %s796_s16  ;;  %p801_p1 = scmp.lt.s32.totalorder %s660_s14, %s660_s14 }
 0x19b   :  { %v775_v9 = vpop.eup %774  ;;  %v501_v4 = vadd.f32 %v773_v39, %v771_v57  ;;  %p802_p2 = scmp.lt.s32.totalorder %s800_s17, %s796_s16 }
 0x19c   :  { %v494_v40 = vadd.f32 %v767_v30, %v493_v36  ;;  %v777_v41 = vpop.eup %776  ;;  %v497_v14 = vsel %vm419_vm2, %v775_v9, 0.0 }
 0x19d   :  { %v779_v50 = vpop.eup %778  ;;  %v502_v53 = vadd.f32 %v777_v41, %v501_v4  ;;  %p803_p3 = por %p802_p2, %p801_p1 }
 0x19e   :  { %v495_v37 = vadd.f32 %v769_v34, %v494_v40  ;;  %v781_v58 = vpop.eup %780 }
 0x19f   :  { %v503_v62 = vadd.f32 %v781_v58, %v502_v53  ;;  %v783_v63 = vpop.eup %782  ;;  %p804_p4 = pnand %p803_p3, %p797_p0 }
 0x1a0   :  { %v496_v54 = vadd.f32 %v779_v50, %v495_v37  ;;  %v785_v10 = vpop.eup %784 }
 0x1a1   :  { %v504_v18 = vadd.f32 %v783_v63, %v503_v62  ;;  %v787_v59 = vpop.eup %786 }
 0x1a2   :  { %v498_v3 = vadd.f32 %v497_v14, %v496_v54  ;;  %v789_v55 = vpop.eup %788 }
 0x1a3   :  { %v505_v12 = vadd.f32 %v785_v10, %v504_v18  ;;  %v791_v16 = vpop.eup %790  ;;  %v508_v17 = vsel %vm419_vm2, %v789_v55, 0.0 }
 0x1a4   :  { %499 = vadd.xlane.f32.xlu0 %v498_v3 }
 0x1a5   :  { %v506_v42 = vadd.f32 %v787_v59, %v505_v12 }
 0x1a7   :  { %v507_v29 = vadd.f32 %v791_v16, %v506_v42 }
 0x1a8   :  { %617 = vadd.xlane.f32.xlu0 %v616_v44 }
 0x1a9   :  { %v509_v1 = vadd.f32 %v508_v17, %v507_v29 }
 0x1ab   :  { %510 = vadd.xlane.f32.xlu1 %v509_v1 }
 0x1ac   :  { %628 = vadd.xlane.f32.xlu0 %v627_v19 }
 0x231   :  { %v500_v25 = vpop.xlane.xlu0 %499 }
 0x232   :  { %792 = vlog2.f32 %v500_v25 }
 0x235   :  { %v618_v22 = vpop.xlane.xlu0 %617 }
 0x238   :  { %v511_v60 = vpop.xlane.xlu1 %510 }
 0x239   :  { %794 = vlog2.f32 %v511_v60  ;;  %v629_v47 = vpop.xlane.xlu0 %628 }
 0x23c   :  { %v793_v43 = vpop.eup %792 }
 0x23d   :  { %v513_v46 = vmul.f32 0.6931472, %v793_v43 }
 0x23f   :  { %v516_v52 = vadd.f32 %v513_v46, %v1025_v61 }
 0x241   :  { %v631_v27 = vsub.f32 %v516_v52, %v618_v22 }
 0x243   :  { %v795_v2 = vpop.eup %794  ;;  %v635_v32 = vmul.f32 %v633_v28, %v631_v27 }
 0x244   :  { %v515_v26 = vmul.f32 0.6931472, %v795_v2 }
 0x245   :  { %v637_v61 = vsel %vm419_vm2, %v635_v32, 0.0 }
 0x246   :  { %v517_v30 = vadd.f32 %v515_v26, %v1044_v21 }
 0x248   :  { %v632_v33 = vsub.f32 %v517_v30, %v629_v47 }
 0x24a   :  { %v636_v34 = vmul.f32 %v634_v31, %v632_v33 }
 0x24c   :  { %v638_v35 = vsel %vm419_vm2, %v636_v34, 0.0 }
 0x24d   :  { %v639_v36 = vadd.f32 %v638_v35, %v637_v61 }
 0x24f   :  { %640 = vadd.xlane.f32.xlu0 %v639_v36 }
 0x2dc   :  { %v641_v38 = vpop.xlane.xlu0 %640 }
 0x2dd   :  { %v642_v21 = vrot.slane %v641_v38, 4 }
 0x2df   :  { %v643_v57 = vadd.f32 %v642_v21, %v641_v38 }
 0x2e1   :  { %v644_v45 = vrot.slane %v643_v57, 2 }
 0x2e3   :  { %v645_v39 = vadd.f32 %v644_v45, %v643_v57 }
 0x2e5   :  { %v646_v40 = vrot.slane %v645_v39, 1 }
 0x2e7   :  { %v647_v9 = vadd.f32 %v646_v40, %v645_v39 }
 0x2e9   :  { %721 = vpush %v647_v9 }
 0x31a   :  { %s722_s15 = spop %721 }
 0x31b   :  { %v649_v24 = vstv %s722_s15 }
 0x31c   :  { %v650_v4 = vadd.f32 %v649_v24, %v630_v11 }
 0x31e   :  { %652 = vst.msk [vmem:[#allocation2] sm:$0x1] %vm26_vm6, %v650_v4 }
 0x31f   :  { %807 = shalt.err (!%p804_p4)
}
 0x320   :  { %s808_s19 = scalar_lea.hbm %s1170_s5, 16 }
 0x321   :  { %p809_p5 = scmp.ne.s32.totalorder %s1170_s5, %s808_s19  ;;  %p812_p6 = scmp.lt.u32.totalorder %s808_s19, %s1170_s5 }
 0x323   :  { %p814_p7 = pnand %p812_p6, %p809_p5 }
 0x325   :  { %817 = shalt.err (!%p814_p7)
}
 0x326   :  { %662 = dma.vmem_to_hbm [thread:$0]  %s660_s14, 16, %s1170_s5, [#allocation3]  }
 0x327   :  { %818 = dma.done.wait [#allocation3], 16  }
 0x328   :  { %819 = vsyncadd [#allocation3], 4294967280 }
 0x329   :  { %666 = vsyncpa [#allocation3], 1 }

// kernel: vallf_forward.35
= control target key start
LH: loop header
LB: loop body
LE: loop exit
PB: predicated region body
PF: predicated region fallthrough
CT: control target
= control target key end

     0   :  { %s1264_s15 = smov 0   ;;  %s1266_s16 = smov 0   ;;  %s1453_s0 = inlined_call_operand.vmem [shape: bf16[2,4,8,8], index: 0, kind: input, shape index: {}]   ;;  %s1454_s1 = inlined_call_operand.vmem [shape: bf16[2,4,8,8], index: 1, kind: input, shape index: {}]   ;;  %s1455_s2 = inlined_call_operand.vmem [shape: bf16[2,4,8,8], index: 2, kind: input, shape index: {}]   ;;  %s1456_s3 = inlined_call_operand.vmem [shape: f32[2,1,8], index: 3, kind: input, shape index: {}]   ;;  %s1457_s4 = inlined_call_operand.vmem [shape: bf16[2,4,8,8], index: 4, kind: output, shape index: {}]  }
   0x1   :  { %s1268_s17 = smov 0  }
   0x2 LB: > { %s33_s18 = sadd.s32 1, %s1229_s16  ;;  %p1069_p0 = scmp.ge.s32.totalorder %s1233_s17, 1  ;;  %s1233_s17 = sphi %s1268_s17, %s14_s17   ;;  %s1229_s16 = sphi %s1266_s16, %s1459_s16   ;;  %s1225_s15 = sphi %s1264_s15, %s1458_s15  }
   0x3   : > { %p35_p1 = scmp.ge.s32.totalorder %s33_s18, 2  ;;  %p231_p2 = scmp.lt.s32.totalorder %s1233_s17, 3 }
   0x5   : > { %s1461_s18 = smov (%p35_p1, %s33_s18), 0  ;;  %p232_p3 = pnand %p1069_p0, %p231_p2 }
   0x6   : > { %p285_p4 = scmp.lt.s32.totalorder (!%p232_p3), %s1225_s15, 1  ;;  %vm337_vm0 = vcmask (!%p232_p3), 64512   ;;  %v1235_v0 = vmov (!%p232_p3), 0.0   ;;  %vm1236_vm1 = vmmov (!%p232_p3), 0   ;;  %vm328_vm2 = vcmask (!%p232_p3), 7168  }
   0x7   : > { %235 = sbr.rel (%p232_p3) target bundleno = 838 (0x346), region = 36  ;;  %1109 = vmatprep.subr.bf16.mxu0 (!%p232_p3), %v1235_v0  ;;  %338 = vst.msk [vmem:[#allocation4] sm:$0xff] (!%p232_p3), %vm337_vm0, %v1235_v0  ;;  %339 = vst.msk [vmem:[#allocation4 + $0x8] sm:$0xff] (!%p232_p3), %vm337_vm0, %v1235_v0  ;;  %1115 = vmatprep.subr.bf16.mxu1 (!%p232_p3), %v1235_v0  ;;  %v1237_v13 = vmov (!%p232_p3), -inf   ;;  %v542_v14 = vlaneseq (!%p232_p3)  ;;  %v1238_v46 = vmov (!%p232_p3), 0   ;;  %vm689_vm4 = vcmask (!%p232_p3), 1043456  }
   0x8   : > { %340 = vst.msk [vmem:[#allocation4 + $0x10] sm:$0xff] (!%p232_p3), %vm337_vm0, %v1235_v0  ;;  %341 = vst.msk [vmem:[#allocation4 + $0x18] sm:$0xff] (!%p232_p3), %vm337_vm0, %v1235_v0  ;;  %1111 = vmatprep.mubr.msk.bf16.mxu0 (!%p232_p3), %vm1236_vm1, %v1235_v0  ;;  %1117 = vmatprep.mubr.msk.bf16.mxu1 (!%p232_p3), %vm1236_vm1, %v1235_v0  ;;  %vm926_vm5 = vcmask (!%p232_p3), 60416  }
   0x9   : > { %329 = vst.msk [vmem:[#allocation2] sm:$0xff] (!%p232_p3), %vm328_vm2, %v1237_v13  ;;  %330 = vst.msk [vmem:[#allocation2 + $0x8] sm:$0xff] (!%p232_p3), %vm328_vm2, %v1237_v13  ;;  %v543_v15 = vshrl.u32 (!%p232_p3), %v542_v14, 7  ;;  %v548_v16 = vand.u32 (!%p232_p3), 127, %v542_v14  ;;  %1185 = vset.pattern.permute.xlu0 (!%p232_p3), %v1238_v46  ;;  %1186 = vset.pattern.permute.xlu1 (!%p232_p3), %v1238_v46 }
   0xa   : > { %331 = vst.msk [vmem:[#allocation2 + $0x10] sm:$0xff] (!%p232_p3), %vm328_vm2, %v1237_v13  ;;  %332 = vst.msk [vmem:[#allocation2 + $0x18] sm:$0xff] (!%p232_p3), %vm328_vm2, %v1237_v13 }
   0xb   : > { %333 = vst.msk [vmem:[#allocation3] sm:$0xff] (!%p232_p3), %vm328_vm2, %v1235_v0  ;;  %334 = vst.msk [vmem:[#allocation3 + $0x8] sm:$0xff] (!%p232_p3), %vm328_vm2, %v1235_v0  ;;  %vm552_vm3 = vcmp.gt.s32.totalorder (!%p232_p3), %v548_v16, %v543_v15 }
   0xc   : > { %335 = vst.msk [vmem:[#allocation3 + $0x10] sm:$0xff] (!%p232_p3), %vm328_vm2, %v1235_v0  ;;  %336 = vst.msk [vmem:[#allocation3 + $0x18] sm:$0xff] (!%p232_p3), %vm328_vm2, %v1235_v0 }
   0xe   : > { %s1463_s15 = smov (!%p285_p4, %s1225_s15), 1 }
   0xf   : > { %s1299_s19 = sshll.u32 %s1463_s15, 4  ;;  %s314_s28 = scalar_lea.vmem %s1456_s3, %s1463_s15 }
  0x10   : > { %s300_s22 = scalar_lea.vmem %s1454_s1, %s1299_s19  ;;  %s292_s25 = scalar_lea.vmem %s1453_s0, %s1299_s19  ;;  %v1078_v17 = vld [vmem:[%s314_s28] ss:$0 sm:$0xff]  ;;  %v1364_v50 = vld [vmem:[#allocation2 + $0x8] sm:$0xff] }
  0x11   : > { %v346_v1 = vld [vmem:[%s300_s22] sm:$0xf]  ;;  %v347_v2 = vld [vmem:[%s300_s22 + $0x4] sm:$0xf]  ;;  %v348_v5 = vld [vmem:[%s300_s22 + $0x8] sm:$0xf]  ;;  %s308_s5 = scalar_lea.vmem %s1455_s2, %s1299_s19  ;;  %s322_s8 = scalar_lea.vmem %s1457_s4, %s1299_s19 }
  0x12   : > { %v362_v3 = vsel %vm337_vm0, %v346_v1, 0  ;;  %v408_v4 = vsel %vm337_vm0, %v347_v2, 0  ;;  %v349_v6 = vld [vmem:[%s300_s22 + $0xc] sm:$0xf]  ;;  %v342_v7 = vld [vmem:[%s292_s25] sm:$0xf] }
  0x13   : > { %1110 = vmatpush3.bf16.xpose.msra.mxu0 %v362_v3  ;;  %1116 = vmatpush3.bf16.xpose.msra.mxu1 %v408_v4  ;;  %v343_v8 = vld [vmem:[%s292_s25 + $0x4] sm:$0xf]  ;;  %v454_v9 = vsel %vm337_vm0, %v348_v5, 0  ;;  %v500_v10 = vsel %vm337_vm0, %v349_v6, 0  ;;  %v344_v11 = vld [vmem:[%s292_s25 + $0x8] sm:$0xf] }
  0x14   : > { %1121 = vmatprep.subr.bf16.mxu0 %v1235_v0  ;;  %1127 = vmatprep.subr.bf16.mxu1 %v1235_v0  ;;  %v345_v12 = vld [vmem:[%s292_s25 + $0xc] sm:$0xf]  ;;  %v1359_v47 = vld [vmem:[#allocation2] sm:$0xff]  ;;  %v1374_v54 = vld [vmem:[#allocation2 + $0x10] sm:$0xff] }
  0x15   : > { %v1384_v58 = vld [vmem:[#allocation2 + $0x18] sm:$0xff]  ;;  %v682_v63 = vld [vmem:[%s308_s5] sm:$0xf]  ;;  %v683_v2 = vld [vmem:[%s308_s5 + $0x4] sm:$0xf] }
  0x16   : > { %v691_v1 = vsel %vm689_vm4, %v682_v63, 0  ;;  %v737_v3 = vsel %vm689_vm4, %v683_v2, 0  ;;  %v684_v4 = vld [vmem:[%s308_s5 + $0x8] sm:$0xf]  ;;  %v685_v6 = vld [vmem:[%s308_s5 + $0xc] sm:$0xf] }
  0x17   : > { %v783_v5 = vsel %vm689_vm4, %v684_v4, 0  ;;  %v623_v46 = vld [vmem:[#allocation3 + $0x10] sm:$0xff]  ;;  %v650_v63 = vld [vmem:[#allocation4] sm:$0xff] }
  0x1a   : > { %1112 = vmatmul.mubr.msk.bf16.vlgmr.msra.gmra.mrb[0].mxu0 %vm337_vm0, %v342_v7  ;;  %1118 = vmatmul.mubr.msk.bf16.vlgmr.msra.gmra.mrb[0].mxu1 %vm337_vm0, %v343_v8  ;;  %v829_v7 = vsel %vm689_vm4, %v685_v6, 0 }
  0x1b   : > { %1122 = vmatpush3.bf16.xpose.msra.mxu0 %v454_v9  ;;  %1128 = vmatpush3.bf16.xpose.msra.mxu1 %v500_v10 }
  0x1c   : > { %1123 = vmatprep.mubr.msk.bf16.mxu0 %vm1236_vm1, %v1235_v0  ;;  %1129 = vmatprep.mubr.msk.bf16.mxu1 %vm1236_vm1, %v1235_v0 }
  0x1d   : > { %1133 = vmatprep.subr.bf16.mxu0 %v1235_v0  ;;  %1139 = vmatprep.subr.bf16.mxu1 %v1235_v0 }
  0x22   : > { %1124 = vmatmul.mubr.msk.bf16.vlgmr.msra.gmra.mrb[4].mxu0 %vm337_vm0, %v344_v11  ;;  %1130 = vmatmul.mubr.msk.bf16.vlgmr.msra.gmra.mrb[4].mxu1 %vm337_vm0, %v345_v12 }
  0x23   : > { %1135 = vmatprep.mubr.msk.bf16.mxu0 %vm1236_vm1, %v1235_v0  ;;  %1141 = vmatprep.mubr.msk.bf16.mxu1 %vm1236_vm1, %v1235_v0 }
  0x24   : > { %1134 = vmatpush3.bf16.msra.mxu0 %v691_v1  ;;  %1140 = vmatpush3.bf16.msra.mxu1 %v737_v3  ;;  %v651_v3 = vld [vmem:[#allocation4 + $0x8] sm:$0xff] }
  0x25   : > { %1145 = vmatprep.subr.bf16.mxu0 %v1235_v0  ;;  %1151 = vmatprep.subr.bf16.mxu1 %v1235_v0 }
  0xed   : > { %v398_v18 = vpop.f32.mrb[0].mxu0  ;;  %v444_v19 = vpop.f32.mrb[0].mxu1 }
  0xee   : > { %v399_v20 = vadd.f32 %v1078_v17, %v398_v18  ;;  %v1113_v21 = vpop.f32.mrb[1].mxu0  ;;  %v445_v22 = vadd.f32 %v1078_v17, %v444_v19  ;;  %v1119_v23 = vpop.f32.mrb[1].mxu1 }
  0xef   : > { %v401_v24 = vpop.f32.mrb[2].mxu0  ;;  %v447_v25 = vpop.f32.mrb[2].mxu1 }
  0xf0   : > { %v1114_v26 = vpop.f32.mrb[3].mxu0  ;;  %v1120_v27 = vpop.f32.mrb[3].mxu1  ;;  %v1346_v28 = vsel %vm552_vm3, -1e+30, %v399_v20  ;;  %v1349_v29 = vsel %vm552_vm3, -1e+30, %v445_v22 }
  0xf1   : > { %v561_v30 = vsel %vm337_vm0, %v1346_v28, -inf  ;;  %v564_v31 = vsel %vm337_vm0, %v1349_v29, -inf }
  0xf2   : > { %562 = vmax.xlane.f32.xlu0 %v561_v30 }
  0xf5   : > { %v490_v32 = vpop.f32.mrb[4].mxu0  ;;  %v536_v33 = vpop.f32.mrb[4].mxu1 }
  0xf6   : > { %v491_v34 = vadd.f32 %v1078_v17, %v490_v32  ;;  %565 = vmax.xlane.f32.xlu0 %v564_v31  ;;  %v1125_v35 = vpop.f32.mrb[5].mxu0  ;;  %v537_v36 = vadd.f32 %v1078_v17, %v536_v33  ;;  %v1131_v37 = vpop.f32.mrb[5].mxu1 }
  0xf7   : > { %v493_v38 = vpop.f32.mrb[6].mxu0  ;;  %v539_v39 = vpop.f32.mrb[6].mxu1 }
  0xf8   : > { %v1126_v40 = vpop.f32.mrb[7].mxu0  ;;  %v1132_v41 = vpop.f32.mrb[7].mxu1  ;;  %v555_v42 = vsel %vm552_vm3, -1e+30, %v491_v34  ;;  %v556_v43 = vsel %vm552_vm3, -1e+30, %v537_v36 }
  0xf9   : > { %v567_v44 = vsel %vm337_vm0, %v555_v42, -inf  ;;  %v570_v45 = vsel %vm337_vm0, %v556_v43, -inf  ;;  %v621_v39 = vld [vmem:[#allocation3] sm:$0xff] }
  0xfa   : > { %568 = vmax.xlane.f32.xlu1 %v567_v44 }
  0xfe   : > { %571 = vmax.xlane.f32.xlu1 %v570_v45 }
 0x17f   : > { %v563_v48 = vpop.xlane.xlu0 %562 }
 0x180   : > { %v1362_v49 = vmax.f32 %v1359_v47, %v563_v48 }
 0x182   : > { %v577_v51 = vsub.f32 %v1359_v47, %v1362_v49  ;;  %879 = vst.msk [vmem:[#allocation2] sm:$0xff] %vm328_vm2, %v1362_v49  ;;  %591 = vperm.xlu0 %1185, %v1362_v49  }
 0x183   : > { %v566_v52 = vpop.xlane.xlu0 %565 }
 0x184   : > { %v1372_v53 = vmax.f32 %v1364_v50, %v566_v52 }
 0x186   : > { %v578_v55 = vsub.f32 %v1364_v50, %v1372_v53  ;;  %880 = vst.msk [vmem:[#allocation2 + $0x8] sm:$0xff] %vm328_vm2, %v1372_v53  ;;  %596 = vperm.xlu1 %1186, %v1372_v53   ;;  %v624_v50 = vld [vmem:[#allocation3 + $0x18] sm:$0xff] }
 0x187   : > { %v569_v56 = vpop.xlane.xlu1 %568 }
 0x188   : > { %v1382_v57 = vmax.f32 %v1374_v54, %v569_v56  ;;  %v583_v30 = vmul.f32 1.442695, %v578_v55 }
 0x18a   : > { %v579_v59 = vsub.f32 %v1374_v54, %v1382_v57  ;;  %881 = vst.msk [vmem:[#allocation2 + $0x10] sm:$0xff] %vm328_vm2, %v1382_v57  ;;  %601 = vperm.xlu1 %1186, %v1382_v57  }
 0x18b   : > { %v572_v60 = vpop.xlane.xlu1 %571 }
 0x18c   : > { %v1392_v61 = vmax.f32 %v1384_v58, %v572_v60  ;;  %v585_v33 = vmul.f32 1.442695, %v579_v59 }
 0x18e   : > { %v580_v62 = vsub.f32 %v1384_v58, %v1392_v61  ;;  %882 = vst.msk [vmem:[#allocation2 + $0x18] sm:$0xff] %vm328_vm2, %v1392_v61  ;;  %606 = vperm.xlu1 %1186, %v1392_v61  }
 0x190   : > { %v587_v34 = vmul.f32 1.442695, %v580_v62 }
 0x201   : > { %v592_v8 = vpop.permute.xlu0 %591 }
 0x202   : > { %v609_v9 = vsub.f32 %v1346_v28, %v592_v8 }
 0x204   : > { %v613_v10 = vmul.f32 1.442695, %v609_v9 }
 0x205   : > { %v597_v11 = vpop.permute.xlu1 %596 }
 0x206   : > { %1187 = vpow2.f32 %v613_v10  ;;  %v610_v12 = vsub.f32 %v1349_v29, %v597_v11 }
 0x208   : > { %v615_v13 = vmul.f32 1.442695, %v610_v12  ;;  %v652_v12 = vld [vmem:[#allocation4 + $0x10] sm:$0xff] }
 0x209   : > { %v602_v14 = vpop.permute.xlu1 %601 }
 0x20a   : > { %1189 = vpow2.f32 %v615_v13  ;;  %v611_v15 = vsub.f32 %v555_v42, %v602_v14  ;;  %v622_v42 = vld [vmem:[#allocation3 + $0x8] sm:$0xff] }
 0x20c   : > { %v617_v16 = vmul.f32 1.442695, %v611_v15 }
 0x20d   : > { %v607_v17 = vpop.permute.xlu1 %606 }
 0x20e   : > { %1191 = vpow2.f32 %v617_v16  ;;  %v612_v18 = vsub.f32 %v556_v43, %v607_v17 }
 0x210   : > { %v1188_v19 = vpop.eup %1187  ;;  %v619_v20 = vmul.f32 1.442695, %v612_v18 }
 0x211   : > { %v629_v21 = vsel %vm337_vm0, %v1188_v19, 0.0  ;;  %v678_v22 = vpack.c.bf16 %v1188_v19, %v1188_v19  ;;  %v653_v19 = vld [vmem:[#allocation4 + $0x18] sm:$0xff] }
 0x212   : > { %1193 = vpow2.f32 %v619_v20  ;;  %630 = vadd.xlane.f32.xlu1 %v629_v21 }
 0x213   : > { %1136 = vmatmul.mubr.msk.bf16.vlgmr.msra.gmra.mrb[8].mxu0 %vm337_vm0, %v678_v22  ;;  %1195 = vpow2.f32 %v583_v30 }
 0x214   : > { %v1190_v23 = vpop.eup %1189  ;;  %1146 = vmatpush3.bf16.msra.mxu0 %v783_v5  ;;  %1147 = vmatprep.mubr.msk.bf16.mxu0 %vm1236_vm1, %v1235_v0 }
 0x215   : > { %v632_v24 = vsel %vm337_vm0, %v1190_v23, 0.0  ;;  %v679_v25 = vpack.c.bf16 %v1190_v23, %v1190_v23 }
 0x216   : > { %633 = vadd.xlane.f32.xlu0 %v632_v24 }
 0x217   : > { %1142 = vmatmul.mubr.msk.bf16.vlgmr.msra.gmra.mrb[8].mxu1 %vm337_vm0, %v679_v25 }
 0x218   : > { %v1192_v26 = vpop.eup %1191  ;;  %1152 = vmatpush3.bf16.msra.mxu1 %v829_v7  ;;  %1153 = vmatprep.mubr.msk.bf16.mxu1 %vm1236_vm1, %v1235_v0  ;;  %v581_v0 = vmul.f32 1.442695, %v577_v51 }
 0x219   : > { %v635_v27 = vsel %vm337_vm0, %v1192_v26, 0.0  ;;  %v680_v28 = vpack.c.bf16 %v1192_v26, %v1192_v26 }
 0x21a   : > { %636 = vadd.xlane.f32.xlu1 %v635_v27  ;;  %1197 = vpow2.f32 %v581_v0 }
 0x21b   : > { %1148 = vmatmul.mubr.msk.bf16.vlgmr.msra.gmra.mrb[12].mxu0 %vm337_vm0, %v680_v28  ;;  %1199 = vpow2.f32 %v585_v33 }
 0x21c   : > { %v1194_v29 = vpop.eup %1193  ;;  %1201 = vpow2.f32 %v587_v34 }
 0x21d   : > { %v638_v31 = vsel %vm337_vm0, %v1194_v29, 0.0  ;;  %v681_v32 = vpack.c.bf16 %v1194_v29, %v1194_v29  ;;  %v1196_v35 = vpop.eup %1195 }
 0x21e   : > { %639 = vadd.xlane.f32.xlu1 %v638_v31  ;;  %v626_v44 = vmul.f32 %v1196_v35, %v622_v42 }
 0x21f   : > { %1154 = vmatmul.mubr.msk.bf16.vlgmr.msra.gmra.mrb[12].mxu1 %vm337_vm0, %v681_v32 }
 0x224   : > { %v1198_v36 = vpop.eup %1197 }
 0x225   : > { %v1200_v37 = vpop.eup %1199  ;;  %v625_v40 = vmul.f32 %v1198_v36, %v621_v39 }
 0x226   : > { %v1202_v38 = vpop.eup %1201  ;;  %v627_v48 = vmul.f32 %v1200_v37, %v623_v46 }
 0x227   : > { %v628_v53 = vmul.f32 %v1202_v38, %v624_v50 }
 0x22c   : > { %661 = vperm.xlu0 %1185, %v1196_v35  }
 0x22f   : > { %656 = vperm.xlu1 %1186, %v1198_v36  }
 0x233   : > { %666 = vperm.xlu1 %1186, %v1200_v37  }
 0x237   : > { %671 = vperm.xlu1 %1186, %v1202_v38  }
 0x29f   : > { %v631_v41 = vpop.xlane.xlu1 %630 }
 0x2a0   : > { %v641_v43 = vadd.f32 %v631_v41, %v625_v40 }
 0x2a2   : > { %646 = vst.msk [vmem:[#allocation3] sm:$0xff] %vm328_vm2, %v641_v43 }
 0x2a3   : > { %v634_v45 = vpop.xlane.xlu0 %633 }
 0x2a4   : > { %v642_v47 = vadd.f32 %v634_v45, %v626_v44 }
 0x2a6   : > { %647 = vst.msk [vmem:[#allocation3 + $0x8] sm:$0xff] %vm328_vm2, %v642_v47 }
 0x2a7   : > { %v637_v49 = vpop.xlane.xlu1 %636 }
 0x2a8   : > { %v643_v51 = vadd.f32 %v637_v49, %v627_v48 }
 0x2a9   : > { %v890_v52 = vld [vmem:[#allocation3] sm:$0xff] }
 0x2aa   : > { %648 = vst.msk [vmem:[#allocation3 + $0x10] sm:$0xff] %vm328_vm2, %v643_v51  ;;  %1203 = vrcp.f32 %v890_v52 }
 0x2ab   : > { %v640_v54 = vpop.xlane.xlu1 %639  ;;  %v662_v4 = vpop.permute.xlu0 %661 }
 0x2ac   : > { %v644_v55 = vadd.f32 %v640_v54, %v628_v53  ;;  %v675_v10 = vmul.f32 %v662_v4, %v651_v3 }
 0x2ad   : > { %v891_v56 = vld [vmem:[#allocation3 + $0x8] sm:$0xff] }
 0x2ae   : > { %649 = vst.msk [vmem:[#allocation3 + $0x18] sm:$0xff] %vm328_vm2, %v644_v55  ;;  %1205 = vrcp.f32 %v891_v56 }
 0x2af   : > { %v657_v1 = vpop.permute.xlu1 %656 }
 0x2b0   : > { %v674_v2 = vmul.f32 %v657_v1, %v650_v63 }
 0x2b1   : > { %v892_v57 = vld [vmem:[#allocation3 + $0x10] sm:$0xff] }
 0x2b2   : > { %1207 = vrcp.f32 %v892_v57 }
 0x2b3   : > { %v667_v8 = vpop.permute.xlu1 %666 }
 0x2b4   : > { %v1204_v58 = vpop.eup %1203  ;;  %v676_v17 = vmul.f32 %v667_v8, %v652_v12 }
 0x2b5   : > { %900 = vperm.xlu1 %1186, %v1204_v58   ;;  %v893_v59 = vld [vmem:[#allocation3 + $0x18] sm:$0xff] }
 0x2b6   : > { %1209 = vrcp.f32 %v893_v59 }
 0x2b7   : > { %v672_v20 = vpop.permute.xlu1 %671 }
 0x2b8   : > { %v1206_v60 = vpop.eup %1205  ;;  %v677_v25 = vmul.f32 %v672_v20, %v653_v19 }
 0x2b9   : > { %905 = vperm.xlu0 %1185, %v1206_v60  }
 0x2bc   : > { %v1208_v61 = vpop.eup %1207 }
 0x2bd   : > { %910 = vperm.xlu1 %1186, %v1208_v61  }
 0x2c0   : > { %v1210_v62 = vpop.eup %1209 }
 0x2c1   : > { %915 = vperm.xlu0 %1185, %v1210_v62  }
 0x2e6   : > { %v727_v5 = vpop.f32.mrb[8].mxu0 }
 0x2e7   : > { %v871_v6 = vadd.f32 %v727_v5, %v674_v2  ;;  %v1137_v7 = vpop.f32.mrb[9].mxu0 }
 0x2e8   : > { %v730_v9 = vpop.f32.mrb[10].mxu0 }
 0x2e9   : > { %875 = vst.msk [vmem:[#allocation4] sm:$0xff] %vm337_vm0, %v871_v6  ;;  %v1138_v11 = vpop.f32.mrb[11].mxu0 }
 0x2ea   : > { %v773_v13 = vpop.f32.mrb[8].mxu1 }
 0x2eb   : > { %v872_v14 = vadd.f32 %v773_v13, %v675_v10  ;;  %v1143_v15 = vpop.f32.mrb[9].mxu1 }
 0x2ec   : > { %v776_v16 = vpop.f32.mrb[10].mxu1 }
 0x2ed   : > { %876 = vst.msk [vmem:[#allocation4 + $0x8] sm:$0xff] %vm337_vm0, %v872_v14  ;;  %v1144_v18 = vpop.f32.mrb[11].mxu1 }
 0x2ee   : > { %v819_v21 = vpop.f32.mrb[12].mxu0 }
 0x2ef   : > { %v873_v22 = vadd.f32 %v819_v21, %v676_v17  ;;  %v1149_v23 = vpop.f32.mrb[13].mxu0 }
 0x2f0   : > { %v822_v24 = vpop.f32.mrb[14].mxu0  ;;  %v886_v0 = vld [vmem:[#allocation4] sm:$0xff] }
 0x2f1   : > { %877 = vst.msk [vmem:[#allocation4 + $0x10] sm:$0xff] %vm337_vm0, %v873_v22  ;;  %v1150_v26 = vpop.f32.mrb[15].mxu0 }
 0x2f2   : > { %v865_v27 = vpop.f32.mrb[12].mxu1 }
 0x2f3   : > { %v874_v28 = vadd.f32 %v865_v27, %v677_v25  ;;  %v1155_v29 = vpop.f32.mrb[13].mxu1 }
 0x2f4   : > { %v868_v30 = vpop.f32.mrb[14].mxu1  ;;  %v887_v35 = vld [vmem:[#allocation4 + $0x8] sm:$0xff] }
 0x2f5   : > { %878 = vst.msk [vmem:[#allocation4 + $0x18] sm:$0xff] %vm337_vm0, %v874_v28  ;;  %v1156_v31 = vpop.f32.mrb[15].mxu1 }
 0x2f8   : > { %v888_v40 = vld [vmem:[#allocation4 + $0x10] sm:$0xff] }
 0x2fc   : > { %v889_v44 = vld [vmem:[#allocation4 + $0x18] sm:$0xff] }
 0x334   : > { %v901_v32 = vpop.permute.xlu1 %900 }
 0x335   : > { %v918_v33 = vmul.f32 %v901_v32, %v886_v0 }
 0x337   : > { %v922_v34 = vpack.c.bf16 %v918_v33, %v918_v33 }
 0x338   : > { %v906_v36 = vpop.permute.xlu0 %905 }
 0x339   : > { %927 = vst.msk [vmem:[%s322_s8] sm:$0xf] %vm926_vm5, %v922_v34  ;;  %v919_v37 = vmul.f32 %v906_v36, %v887_v35 }
 0x33b   : > { %v923_v38 = vpack.c.bf16 %v919_v37, %v919_v37 }
 0x33c   : > { %v911_v39 = vpop.permute.xlu1 %910 }
 0x33d   : > { %928 = vst.msk [vmem:[%s322_s8 + $0x4] sm:$0xf] %vm926_vm5, %v923_v38  ;;  %v920_v41 = vmul.f32 %v911_v39, %v888_v40 }
 0x33f   : > { %v924_v42 = vpack.c.bf16 %v920_v41, %v920_v41 }
 0x340   : > { %v916_v43 = vpop.permute.xlu0 %915 }
 0x341   : > { %929 = vst.msk [vmem:[%s322_s8 + $0x8] sm:$0xf] %vm926_vm5, %v924_v42  ;;  %v921_v45 = vmul.f32 %v916_v43, %v889_v44 }
 0x343   : > { %v925_v46 = vpack.c.bf16 %v921_v45, %v921_v45 }
 0x345   : > { %930 = vst.msk [vmem:[%s322_s8 + $0xc] sm:$0xf] %vm926_vm5, %v925_v46 }
 0x346 PF: > { %s14_s17 = sadd.s32 1, %s1233_s17   ;;  %s1458_s15 = smov %s1229_s16 }
 0x347   : > { %p11_p5 = scmp.ge.s32.totalorder %s14_s17, 4   ;;  %s1459_s16 = smov %s1461_s18 }
 0x349   :  { %13 = sbr.rel (!%p11_p5) target bundleno = 2 (0x2), region = 83 }

</bundles_post_ra>
